<compile_context>
chip_gen: v6e
topology: v6e:2x2x1
jax: 0.10.0
libtpu: 0.0.40
codegen_flags: <defaults>
</compile_context>

<pallas_src>
import functools

import numpy as np

import jax
import jax.numpy as jnp
from jax.experimental import pallas as pl
from jax.experimental.pallas import tpu as pltpu

# ----------------------------------------------------------------------------
# Model constants (Burgess architecture)
# ----------------------------------------------------------------------------
HID_CH = 32
KERNEL = 4
HIDDEN = 256
FEAT_HW = 4                       # spatial size after 3 stride-2 convs on 32x32
FLAT = HID_CH * FEAT_HW * FEAT_HW  # 512

# Set to jnp.bfloat16 on v6e/v7x for 2x MXU throughput (accumulation stays f32).
# Kept f32 here to preserve PyTorch-equivalent numerics.
MXU_DTYPE = jnp.float32

_VMEM = pl.BlockSpec(memory_space=pltpu.MemorySpace.VMEM)


# ----------------------------------------------------------------------------
# Pallas kernels
# ----------------------------------------------------------------------------
def _mxu_dot(a, b):
    return jnp.dot(a.astype(MXU_DTYPE), b.astype(MXU_DTYPE),
                   preferred_element_type=jnp.float32)


def _apply_act(y, act):
    if act == "relu":
        return jnp.maximum(y, 0.0)
    if act == "sigmoid":
        return jax.nn.sigmoid(y)
    return y


def _mm_bias_act_kernel(x_ref, w_ref, b_ref, o_ref, *, act):
    """Fused (M,K)@(K,N) + bias + activation, single VMEM block."""
    y = _mxu_dot(x_ref[...], w_ref[...]) + b_ref[...]
    o_ref[...] = _apply_act(y, act).astype(o_ref.dtype)


def matmul_bias_act(x, w, b, act="none"):
    M, K = x.shape
    K2, N = w.shape
    assert K == K2
    return pl.pallas_call(
        functools.partial(_mm_bias_act_kernel, act=act),
        out_shape=jax.ShapeDtypeStruct((M, N), jnp.float32),
        in_specs=[_VMEM, _VMEM, _VMEM],
        out_specs=_VMEM,
    )(x, w, b.reshape(1, N))


def _enc_head_kernel(h_ref, w1_ref, b1_ref, w2_ref, b2_ref, w3_ref, b3_ref,
                     eps_ref, mu_ref, logvar_ref, z_ref, *, latent_dim):
    """lin1 -> ReLU -> lin2 -> ReLU -> mu/logvar head -> reparameterize.

    All intermediates stay in VMEM; head weights are pre-permuted so the
    output columns are [mu | logvar] contiguous.
    """
    h = jnp.maximum(_mxu_dot(h_ref[...], w1_ref[...]) + b1_ref[...], 0.0)
    h = jnp.maximum(_mxu_dot(h, w2_ref[...]) + b2_ref[...], 0.0)
    ml = _mxu_dot(h, w3_ref[...]) + b3_ref[...]
    mu = ml[:, :latent_dim]
    logvar = ml[:, latent_dim:]
    mu_ref[...] = mu
    logvar_ref[...] = logvar
    # training-mode reparameterization trick, fused into the epilogue
    z_ref[...] = mu + jnp.exp(0.5 * logvar) * eps_ref[...]


def encoder_head(h, w1, b1, w2, b2, w3, b3, eps, latent_dim):
    B = h.shape[0]
    out = jax.ShapeDtypeStruct((B, latent_dim), jnp.float32)
    return pl.pallas_call(
        functools.partial(_enc_head_kernel, latent_dim=latent_dim),
        out_shape=(out, out, out),
        in_specs=[_VMEM] * 8,
        out_specs=(_VMEM, _VMEM, _VMEM),
    )(h, w1, b1.reshape(1, -1), w2, b2.reshape(1, -1), w3, b3.reshape(1, -1), eps)


def _dec_mlp_kernel(z_ref, w1_ref, b1_ref, w2_ref, b2_ref, w3_ref, b3_ref, o_ref):
    """Fused decoder MLP: lin1 -> ReLU -> lin2 -> ReLU -> lin3 -> ReLU."""
    h = jnp.maximum(_mxu_dot(z_ref[...], w1_ref[...]) + b1_ref[...], 0.0)
    h = jnp.maximum(_mxu_dot(h, w2_ref[...]) + b2_ref[...], 0.0)
    h = jnp.maximum(_mxu_dot(h, w3_ref[...]) + b3_ref[...], 0.0)
    o_ref[...] = h.astype(o_ref.dtype)


def decoder_mlp(z, w1, b1, w2, b2, w3, b3):
    B = z.shape[0]
    return pl.pallas_call(
        _dec_mlp_kernel,
        out_shape=jax.ShapeDtypeStruct((B, FLAT), jnp.float32),
        in_specs=[_VMEM] * 7,
        out_specs=_VMEM,
    )(z, w1, b1.reshape(1, -1), w2, b2.reshape(1, -1), w3, b3.reshape(1, -1))


# ----------------------------------------------------------------------------
# XLA-side glue: patch extraction (pure data movement), channel-last layout
# ----------------------------------------------------------------------------
def extract_patches_s2k4(x):
    """NHWC input, pad=1, kernel 4x4, stride 2 -> (B*Ho*Wo, 16*C), (ky,kx,c)."""
    B, H, W, C = x.shape
    xp = jnp.pad(x, ((0, 0), (1, 1), (1, 1), (0, 0)))
    Ho, Wo = H // 2, W // 2
    cols = [xp[:, ky:ky + 2 * Ho:2, kx:kx + 2 * Wo:2, :]
            for ky in range(KERNEL) for kx in range(KERNEL)]
    patches = jnp.concatenate(cols, axis=-1)            # (B, Ho, Wo, 16*C)
    return patches.reshape(B * Ho * Wo, KERNEL * KERNEL * C), Ho, Wo


def extract_patches_s1k3(x):
    """NHWC input, pad=1, kernel 3x3, stride 1 -> (B*H*W, 9*C), (dy,dx,c)."""
    B, H, W, C = x.shape
    xp = jnp.pad(x, ((0, 0), (1, 1), (1, 1), (0, 0)))
    cols = [xp[:, dy:dy + H, dx:dx + W, :] for dy in range(3) for dx in range(3)]
    patches = jnp.concatenate(cols, axis=-1)             # (B, H, W, 9*C)
    return patches.reshape(B * H * W, 9 * C)


def conv2d_s2(x_nhwc, w_mat, b, act):
    """Conv2d(k=4, s=2, p=1), PyTorch semantics, NHWC activations."""
    B = x_nhwc.shape[0]
    cout = w_mat.shape[1]
    patches, Ho, Wo = extract_patches_s2k4(x_nhwc)
    y = matmul_bias_act(patches, w_mat, b, act)          # (B*Ho*Wo, Cout)
    return y.reshape(B, Ho, Wo, cout)


def conv_transpose2d_s2(x_nhwc, w_ps, b_ps, cout, act):
    """ConvTranspose2d(k=4, s=2, p=1) via sub-pixel (pixel-shuffle) matmul."""
    B, H, W, _ = x_nhwc.shape
    patches = extract_patches_s1k3(x_nhwc)               # (B*H*W, 9*Cin)
    y = matmul_bias_act(patches, w_ps, b_ps, act)        # (B*H*W, 4*Cout)
    y = y.reshape(B, H, W, 2, 2, cout)
    y = y.transpose(0, 1, 3, 2, 4, 5).reshape(B, 2 * H, 2 * W, cout)
    return y


# ----------------------------------------------------------------------------
# Parameters: synthetic PyTorch-layout weights + one-time preparation
# ----------------------------------------------------------------------------
def init_params_torch_layout(key, n_chan, latent_dim):
    def nrm(k, shape, scale=0.05):
        return scale * jax.random.normal(k, shape, dtype=jnp.float32)

    ks = jax.random.split(key, 12)
    z = lambda n: jnp.zeros((n,), jnp.float32)
    p = {}
    # Encoder (PyTorch layouts: Conv2d (Cout,Cin,KH,KW), Linear (out,in))
    p["e_conv1_w"] = nrm(ks[0], (HID_CH, n_chan, KERNEL, KERNEL)); p["e_conv1_b"] = z(HID_CH)
    p["e_conv2_w"] = nrm(ks[1], (HID_CH, HID_CH, KERNEL, KERNEL)); p["e_conv2_b"] = z(HID_CH)
    p["e_conv3_w"] = nrm(ks[2], (HID_CH, HID_CH, KERNEL, KERNEL)); p["e_conv3_b"] = z(HID_CH)
    p["e_lin1_w"] = nrm(ks[3], (HIDDEN, FLAT));          p["e_lin1_b"] = z(HIDDEN)
    p["e_lin2_w"] = nrm(ks[4], (HIDDEN, HIDDEN));        p["e_lin2_b"] = z(HIDDEN)
    p["e_mulogvar_w"] = nrm(ks[5], (2 * latent_dim, HIDDEN)); p["e_mulogvar_b"] = z(2 * latent_dim)
    # Decoder (ConvTranspose2d weight (Cin,Cout,KH,KW))
    p["d_lin1_w"] = nrm(ks[6], (HIDDEN, latent_dim));    p["d_lin1_b"] = z(HIDDEN)
    p["d_lin2_w"] = nrm(ks[7], (HIDDEN, HIDDEN));        p["d_lin2_b"] = z(HIDDEN)
    p["d_lin3_w"] = nrm(ks[8], (FLAT, HIDDEN));          p["d_lin3_b"] = z(FLAT)
    p["d_convT1_w"] = nrm(ks[9], (HID_CH, HID_CH, KERNEL, KERNEL));  p["d_convT1_b"] = z(HID_CH)
    p["d_convT2_w"] = nrm(ks[10], (HID_CH, HID_CH, KERNEL, KERNEL)); p["d_convT2_b"] = z(HID_CH)
    p["d_convT3_w"] = nrm(ks[11], (HID_CH, n_chan, KERNEL, KERNEL)); p["d_convT3_b"] = z(n_chan)
    return p


def _nhwc_flat_perm(c, h, w):
    """perm[i_nhwc] = i_nchw : map NHWC-flat feature index -> NCHW-flat index."""
    idx = np.arange(c * h * w).reshape(c, h, w)
    return jnp.asarray(idx.transpose(1, 2, 0).reshape(-1))


def _conv_w_to_mat(w):
    """Conv2d weight (Cout, Cin, KH, KW) -> (KH*KW*Cin, Cout), rows (ky,kx,cin)."""
    cout, cin, kh, kw = w.shape
    return jnp.transpose(w, (2, 3, 1, 0)).reshape(kh * kw * cin, cout)


# (phase r, 3x3-window offset d, original 4x4 tap k) for stride=2, pad=1, K=4.
_PS_TAPS = ((0, 0, 3), (0, 1, 1), (1, 1, 2), (1, 2, 0))


def _convT_w_to_ps_mat(w_t):
    """ConvTranspose2d weight (Cin, Cout, 4, 4) -> pixel-shuffle matmul weight
    of shape (9*Cin, 4*Cout); rows (dy,dx,cin), cols (ry,rx,cout)."""
    w_np = np.asarray(w_t)
    cin, cout = w_np.shape[0], w_np.shape[1]
    W = np.zeros((3, 3, cin, 2, 2, cout), dtype=np.float32)
    for ry, dy, ky in _PS_TAPS:
        for rx, dx, kx in _PS_TAPS:
            W[dy, dx, :, ry, rx, :] = w_np[:, :, ky, kx]
    return jnp.asarray(W.reshape(9 * cin, 4 * cout))


def prepare_params(p, latent_dim):
    """One-time conversion of PyTorch-layout weights into kernel-ready layouts.

    Pure relabeling/permutation: the forward math is identical to the
    PyTorch module with the original weights.
    """
    q = {}
    # encoder convs -> (K, Cout) matmul weights, activations NHWC
    for name in ("e_conv1", "e_conv2", "e_conv3"):
        q[name + "_w"] = _conv_w_to_mat(p[name + "_w"])
        q[name + "_b"] = p[name + "_b"]

    nhwc_perm = _nhwc_flat_perm(HID_CH, FEAT_HW, FEAT_HW)

    # e_lin1 consumes NCHW-flattened features in PyTorch; ours are NHWC-flat.
    q["e_lin1_w"] = p["e_lin1_w"].T[nhwc_perm, :]
    q["e_lin1_b"] = p["e_lin1_b"]
    q["e_lin2_w"] = p["e_lin2_w"].T
    q["e_lin2_b"] = p["e_lin2_b"]
    # head: de-interleave so output columns are [mu_0..mu_L-1 | logvar_0..logvar_L-1]
    head_perm = jnp.asarray(np.concatenate([np.arange(0, 2 * latent_dim, 2),
                                            np.arange(1, 2 * latent_dim, 2)]))
    q["e_head_w"] = p["e_mulogvar_w"].T[:, head_perm]
    q["e_head_b"] = p["e_mulogvar_b"][head_perm]

    q["d_lin1_w"] = p["d_lin1_w"].T
    q["d_lin1_b"] = p["d_lin1_b"]
    q["d_lin2_w"] = p["d_lin2_w"].T
    q["d_lin2_b"] = p["d_lin2_b"]
    # d_lin3 produces NCHW-flattened (B, 32*4*4) in PyTorch; we want NHWC-flat.
    q["d_lin3_w"] = p["d_lin3_w"].T[:, nhwc_perm]
    q["d_lin3_b"] = p["d_lin3_b"][nhwc_perm]

    for name in ("d_convT1", "d_convT2", "d_convT3"):
        q[name + "_w"] = _convT_w_to_ps_mat(p[name + "_w"])
        q[name + "_b"] = jnp.tile(p[name + "_b"], 4)   # bias per output phase
    return q


# ----------------------------------------------------------------------------
# VAE forward (training mode: reparameterize with externally supplied eps)
# ----------------------------------------------------------------------------
def encoder(q, x_nhwc, eps, latent_dim):
    B = x_nhwc.shape[0]
    h = conv2d_s2(x_nhwc, q["e_conv1_w"], q["e_conv1_b"], "relu")   # (B,16,16,32)
    h = conv2d_s2(h, q["e_conv2_w"], q["e_conv2_b"], "relu")        # (B, 8, 8,32)
    h = conv2d_s2(h, q["e_conv3_w"], q["e_conv3_b"], "relu")        # (B, 4, 4,32)
    h = h.reshape(B, FLAT)                                          # NHWC-flat
    mu, logvar, z = encoder_head(h,
                                 q["e_lin1_w"], q["e_lin1_b"],
                                 q["e_lin2_w"], q["e_lin2_b"],
                                 q["e_head_w"], q["e_head_b"],
                                 eps, latent_dim)
    return mu, logvar, z


def decoder(q, z, n_chan):
    B = z.shape[0]
    h = decoder_mlp(z,
                    q["d_lin1_w"], q["d_lin1_b"],
                    q["d_lin2_w"], q["d_lin2_b"],
                    q["d_lin3_w"], q["d_lin3_b"])                   # (B, 512)
    h = h.reshape(B, FEAT_HW, FEAT_HW, HID_CH)                      # NHWC
    h = conv_transpose2d_s2(h, q["d_convT1_w"], q["d_convT1_b"], HID_CH, "relu")
    h = conv_transpose2d_s2(h, q["d_convT2_w"], q["d_convT2_b"], HID_CH, "relu")
    h = conv_transpose2d_s2(h, q["d_convT3_w"], q["d_convT3_b"], n_chan, "sigmoid")
    return h                                                        # (B,32,32,n_chan)


def vae_forward(q, x_nchw, eps, latent_dim, n_chan):
    x_nhwc = jnp.transpose(x_nchw, (0, 2, 3, 1))
    mu, logvar, latent_sample = encoder(q, x_nhwc, eps, latent_dim)
    recon_nhwc = decoder(q, latent_sample, n_chan)
    reconstruct = jnp.transpose(recon_nhwc, (0, 3, 1, 2))           # back to NCHW
    return reconstruct, (mu, logvar), latent_sample


# ----------------------------------------------------------------------------
# Main
# ----------------------------------------------------------------------------
if __name__ == "__main__":
    B = 2
    IMG_SIZE = (1, 32, 32)   # (n_chan, H, W)
    LATENT_DIM = 10

    key = jax.random.PRNGKey(0)
    k_params, k_x, k_eps = jax.random.split(key, 3)

    torch_params = init_params_torch_layout(k_params, IMG_SIZE[0], LATENT_DIM)
    params = prepare_params(torch_params, LATENT_DIM)

    x = jax.random.uniform(k_x, (B,) + IMG_SIZE, dtype=jnp.float32)
    eps = jax.random.normal(k_eps, (B, LATENT_DIM), dtype=jnp.float32)

    fwd = jax.jit(functools.partial(vae_forward,
                                    latent_dim=LATENT_DIM, n_chan=IMG_SIZE[0]))
    recon, (mu, logvar), z = fwd(params, x, eps)
    jax.block_until_ready((recon, mu, logvar, z))

    assert recon.shape == (B,) + IMG_SIZE
    assert mu.shape == (B, LATENT_DIM) and logvar.shape == (B, LATENT_DIM)
    assert z.shape == (B, LATENT_DIM)
    print("KERNEL_OK")
</pallas_src>

<mosaic_0001>
module attributes {stable_mosaic.version = 11 : i64} {
  func.func @_mm_bias_act_kernel(%arg0: memref<512x16xf32, #tpu.memory_space<vmem>>, %arg1: memref<16x32xf32, #tpu.memory_space<vmem>>, %arg2: memref<1x32xf32, #tpu.memory_space<vmem>>, %arg3: memref<512x32xf32, #tpu.memory_space<vmem>>) attributes {dimension_semantics = [], scalar_prefetch = 0 : i64, scratch_operands = 0 : i64, tpu.core_type = #tpu.core_type<tc>} {
    %c0 = arith.constant 0 : index
    %c0_0 = arith.constant 0 : index
    %0 = vector.load %arg0[%c0, %c0_0] : memref<512x16xf32, #tpu.memory_space<vmem>>, vector<512x16xf32>
    %c0_1 = arith.constant 0 : index
    %c0_2 = arith.constant 0 : index
    %1 = vector.load %arg1[%c0_1, %c0_2] : memref<16x32xf32, #tpu.memory_space<vmem>>, vector<16x32xf32>
    %cst = arith.constant dense<0.000000e+00> : vector<512x32xf32>
    %2 = tpu.matmul %0, %1, %cst {dimension_numbers = #tpu.dot_dimension_numbers<[1], [0], [0], [1], [0, 0, 1, 1], [], []>} : vector<512x16xf32>, vector<16x32xf32>, vector<512x32xf32> -> vector<512x32xf32>
    %c0_3 = arith.constant 0 : index
    %c0_4 = arith.constant 0 : index
    %3 = vector.load %arg2[%c0_3, %c0_4] : memref<1x32xf32, #tpu.memory_space<vmem>>, vector<1x32xf32>
    %4 = vector.broadcast %3 : vector<1x32xf32> to vector<512x32xf32>
    %5 = arith.addf %2, %4 : vector<512x32xf32>
    %cst_5 = arith.constant 0.000000e+00 : f32
    %6 = vector.broadcast %cst_5 : f32 to vector<512x32xf32>
    %7 = arith.maximumf %5, %6 : vector<512x32xf32>
    %c0_6 = arith.constant 0 : index
    %c0_7 = arith.constant 0 : index
    %8 = vector.load %arg3[%c0_6, %c0_7] : memref<512x32xf32, #tpu.memory_space<vmem>>, vector<512x32xf32>
    tpu.vector_store %arg3[%c0_6, %c0_7], %7 {strides = array<i32>} : memref<512x32xf32, #tpu.memory_space<vmem>>, vector<512x32xf32>,
    return
  }
}

module attributes {stable_mosaic.version = 11 : i64} {
  func.func @_mm_bias_act_kernel(%arg0: memref<128x512xf32, #tpu.memory_space<vmem>>, %arg1: memref<512x32xf32, #tpu.memory_space<vmem>>, %arg2: memref<1x32xf32, #tpu.memory_space<vmem>>, %arg3: memref<128x32xf32, #tpu.memory_space<vmem>>) attributes {dimension_semantics = [], scalar_prefetch = 0 : i64, scratch_operands = 0 : i64, tpu.core_type = #tpu.core_type<tc>} {
    %c0 = arith.constant 0 : index
    %c0_0 = arith.constant 0 : index
    %0 = vector.load %arg0[%c0, %c0_0] : memref<128x512xf32, #tpu.memory_space<vmem>>, vector<128x512xf32>
    %c0_1 = arith.constant 0 : index
    %c0_2 = arith.constant 0 : index
    %1 = vector.load %arg1[%c0_1, %c0_2] : memref<512x32xf32, #tpu.memory_space<vmem>>, vector<512x32xf32>
    %cst = arith.constant dense<0.000000e+00> : vector<128x32xf32>
    %2 = tpu.matmul %0, %1, %cst {dimension_numbers = #tpu.dot_dimension_numbers<[1], [0], [0], [1], [0, 0, 1, 1], [], []>} : vector<128x512xf32>, vector<512x32xf32>, vector<128x32xf32> -> vector<128x32xf32>
    %c0_3 = arith.constant 0 : index
    %c0_4 = arith.constant 0 : index
    %3 = vector.load %arg2[%c0_3, %c0_4] : memref<1x32xf32, #tpu.memory_space<vmem>>, vector<1x32xf32>
    %4 = vector.broadcast %3 : vector<1x32xf32> to vector<128x32xf32>
    %5 = arith.addf %2, %4 : vector<128x32xf32>
    %cst_5 = arith.constant 0.000000e+00 : f32
    %6 = vector.broadcast %cst_5 : f32 to vector<128x32xf32>
    %7 = arith.maximumf %5, %6 : vector<128x32xf32>
    %c0_6 = arith.constant 0 : index
    %c0_7 = arith.constant 0 : index
    %8 = vector.load %arg3[%c0_6, %c0_7] : memref<128x32xf32, #tpu.memory_space<vmem>>, vector<128x32xf32>
    tpu.vector_store %arg3[%c0_6, %c0_7], %7 {strides = array<i32>} : memref<128x32xf32, #tpu.memory_space<vmem>>, vector<128x32xf32>,
    return
  }
}

module attributes {stable_mosaic.version = 11 : i64} {
  func.func @_mm_bias_act_kernel(%arg0: memref<32x512xf32, #tpu.memory_space<vmem>>, %arg1: memref<512x32xf32, #tpu.memory_space<vmem>>, %arg2: memref<1x32xf32, #tpu.memory_space<vmem>>, %arg3: memref<32x32xf32, #tpu.memory_space<vmem>>) attributes {dimension_semantics = [], scalar_prefetch = 0 : i64, scratch_operands = 0 : i64, tpu.core_type = #tpu.core_type<tc>} {
    %c0 = arith.constant 0 : index
    %c0_0 = arith.constant 0 : index
    %0 = vector.load %arg0[%c0, %c0_0] : memref<32x512xf32, #tpu.memory_space<vmem>>, vector<32x512xf32>
    %c0_1 = arith.constant 0 : index
    %c0_2 = arith.constant 0 : index
    %1 = vector.load %arg1[%c0_1, %c0_2] : memref<512x32xf32, #tpu.memory_space<vmem>>, vector<512x32xf32>
    %cst = arith.constant dense<0.000000e+00> : vector<32x32xf32>
    %2 = tpu.matmul %0, %1, %cst {dimension_numbers = #tpu.dot_dimension_numbers<[1], [0], [0], [1], [0, 0, 1, 1], [], []>} : vector<32x512xf32>, vector<512x32xf32>, vector<32x32xf32> -> vector<32x32xf32>
    %c0_3 = arith.constant 0 : index
    %c0_4 = arith.constant 0 : index
    %3 = vector.load %arg2[%c0_3, %c0_4] : memref<1x32xf32, #tpu.memory_space<vmem>>, vector<1x32xf32>
    %4 = vector.broadcast %3 : vector<1x32xf32> to vector<32x32xf32>
    %5 = arith.addf %2, %4 : vector<32x32xf32>
    %cst_5 = arith.constant 0.000000e+00 : f32
    %6 = vector.broadcast %cst_5 : f32 to vector<32x32xf32>
    %7 = arith.maximumf %5, %6 : vector<32x32xf32>
    %c0_6 = arith.constant 0 : index
    %c0_7 = arith.constant 0 : index
    %8 = vector.load %arg3[%c0_6, %c0_7] : memref<32x32xf32, #tpu.memory_space<vmem>>, vector<32x32xf32>
    tpu.vector_store %arg3[%c0_6, %c0_7], %7 {strides = array<i32>} : memref<32x32xf32, #tpu.memory_space<vmem>>, vector<32x32xf32>,
    return
  }
}

module attributes {stable_mosaic.version = 11 : i64} {
  func.func @_enc_head_kernel(%arg0: memref<2x512xf32, #tpu.memory_space<vmem>>, %arg1: memref<512x256xf32, #tpu.memory_space<vmem>>, %arg2: memref<1x256xf32, #tpu.memory_space<vmem>>, %arg3: memref<256x256xf32, #tpu.memory_space<vmem>>, %arg4: memref<1x256xf32, #tpu.memory_space<vmem>>, %arg5: memref<256x20xf32, #tpu.memory_space<vmem>>, %arg6: memref<1x20xf32, #tpu.memory_space<vmem>>, %arg7: memref<2x10xf32, #tpu.memory_space<vmem>>, %arg8: memref<2x10xf32, #tpu.memory_space<vmem>>, %arg9: memref<2x10xf32, #tpu.memory_space<vmem>>, %arg10: memref<2x10xf32, #tpu.memory_space<vmem>>) attributes {dimension_semantics = [], scalar_prefetch = 0 : i64, scratch_operands = 0 : i64, tpu.core_type = #tpu.core_type<tc>} {
    %c0 = arith.constant 0 : index
    %c0_0 = arith.constant 0 : index
    %0 = vector.load %arg0[%c0, %c0_0] : memref<2x512xf32, #tpu.memory_space<vmem>>, vector<2x512xf32>
    %c0_1 = arith.constant 0 : index
    %c0_2 = arith.constant 0 : index
    %1 = vector.load %arg1[%c0_1, %c0_2] : memref<512x256xf32, #tpu.memory_space<vmem>>, vector<512x256xf32>
    %cst = arith.constant dense<0.000000e+00> : vector<2x256xf32>
    %2 = tpu.matmul %0, %1, %cst {dimension_numbers = #tpu.dot_dimension_numbers<[1], [0], [0], [1], [0, 0, 1, 1], [], []>} : vector<2x512xf32>, vector<512x256xf32>, vector<2x256xf32> -> vector<2x256xf32>
    %c0_3 = arith.constant 0 : index
    %c0_4 = arith.constant 0 : index
    %3 = vector.load %arg2[%c0_3, %c0_4] : memref<1x256xf32, #tpu.memory_space<vmem>>, vector<1x256xf32>
    %4 = vector.broadcast %3 : vector<1x256xf32> to vector<2x256xf32>
    %5 = arith.addf %2, %4 : vector<2x256xf32>
    %cst_5 = arith.constant 0.000000e+00 : f32
    %6 = vector.broadcast %cst_5 : f32 to vector<2x256xf32>
    %7 = arith.maximumf %5, %6 : vector<2x256xf32>
    %c0_6 = arith.constant 0 : index
    %c0_7 = arith.constant 0 : index
    %8 = vector.load %arg3[%c0_6, %c0_7] : memref<256x256xf32, #tpu.memory_space<vmem>>, vector<256x256xf32>
    %cst_8 = arith.constant dense<0.000000e+00> : vector<2x256xf32>
    %9 = tpu.matmul %7, %8, %cst_8 {dimension_numbers = #tpu.dot_dimension_numbers<[1], [0], [0], [1], [0, 0, 1, 1], [], []>} : vector<2x256xf32>, vector<256x256xf32>, vector<2x256xf32> -> vector<2x256xf32>
    %c0_9 = arith.constant 0 : index
    %c0_10 = arith.constant 0 : index
    %10 = vector.load %arg4[%c0_9, %c0_10] : memref<1x256xf32, #tpu.memory_space<vmem>>, vector<1x256xf32>
    %11 = vector.broadcast %10 : vector<1x256xf32> to vector<2x256xf32>
    %12 = arith.addf %9, %11 : vector<2x256xf32>
    %cst_11 = arith.constant 0.000000e+00 : f32
    %13 = vector.broadcast %cst_11 : f32 to vector<2x256xf32>
    %14 = arith.maximumf %12, %13 : vector<2x256xf32>
    %c0_12 = arith.constant 0 : index
    %c0_13 = arith.constant 0 : index
    %15 = vector.load %arg5[%c0_12, %c0_13] : memref<256x20xf32, #tpu.memory_space<vmem>>, vector<256x20xf32>
    %cst_14 = arith.constant dense<0.000000e+00> : vector<2x20xf32>
    %16 = tpu.matmul %14, %15, %cst_14 {dimension_numbers = #tpu.dot_dimension_numbers<[1], [0], [0], [1], [0, 0, 1, 1], [], []>} : vector<2x256xf32>, vector<256x20xf32>, vector<2x20xf32> -> vector<2x20xf32>
    %c0_15 = arith.constant 0 : index
    %c0_16 = arith.constant 0 : index
    %17 = vector.load %arg6[%c0_15, %c0_16] : memref<1x20xf32, #tpu.memory_space<vmem>>, vector<1x20xf32>
    %18 = vector.broadcast %17 : vector<1x20xf32> to vector<2x20xf32>
    %19 = arith.addf %16, %18 : vector<2x20xf32>
    %20 = vector.extract_strided_slice %19 {offsets = [0, 0], sizes = [2, 10], strides = [1, 1]} : vector<2x20xf32> to vector<2x10xf32>
    %21 = vector.extract_strided_slice %19 {offsets = [0, 10], sizes = [2, 10], strides = [1, 1]} : vector<2x20xf32> to vector<2x10xf32>
    %c0_17 = arith.constant 0 : index
    %c0_18 = arith.constant 0 : index
    %22 = vector.load %arg8[%c0_17, %c0_18] : memref<2x10xf32, #tpu.memory_space<vmem>>, vector<2x10xf32>
    tpu.vector_store %arg8[%c0_17, %c0_18], %20 {strides = array<i32>} : memref<2x10xf32, #tpu.memory_space<vmem>>, vector<2x10xf32>,
    %c0_19 = arith.constant 0 : index
    %c0_20 = arith.constant 0 : index
    %23 = vector.load %arg9[%c0_19, %c0_20] : memref<2x10xf32, #tpu.memory_space<vmem>>, vector<2x10xf32>
    tpu.vector_store %arg9[%c0_19, %c0_20], %21 {strides = array<i32>} : memref<2x10xf32, #tpu.memory_space<vmem>>, vector<2x10xf32>,
    %cst_21 = arith.constant 5.000000e-01 : f32
    %24 = vector.broadcast %cst_21 : f32 to vector<2x10xf32>
    %25 = arith.mulf %24, %21 : vector<2x10xf32>
    %26 = math.exp %25 : vector<2x10xf32>
    %c0_22 = arith.constant 0 : index
    %c0_23 = arith.constant 0 : index
    %27 = vector.load %arg7[%c0_22, %c0_23] : memref<2x10xf32, #tpu.memory_space<vmem>>, vector<2x10xf32>
    %28 = arith.mulf %26, %27 : vector<2x10xf32>
    %29 = arith.addf %20, %28 : vector<2x10xf32>
    %c0_24 = arith.constant 0 : index
    %c0_25 = arith.constant 0 : index
    %30 = vector.load %arg10[%c0_24, %c0_25] : memref<2x10xf32, #tpu.memory_space<vmem>>, vector<2x10xf32>
    tpu.vector_store %arg10[%c0_24, %c0_25], %29 {strides = array<i32>} : memref<2x10xf32, #tpu.memory_space<vmem>>, vector<2x10xf32>,
    return
  }
}

module attributes {stable_mosaic.version = 11 : i64} {
  func.func @_dec_mlp_kernel(%arg0: memref<2x10xf32, #tpu.memory_space<vmem>>, %arg1: memref<10x256xf32, #tpu.memory_space<vmem>>, %arg2: memref<1x256xf32, #tpu.memory_space<vmem>>, %arg3: memref<256x256xf32, #tpu.memory_space<vmem>>, %arg4: memref<1x256xf32, #tpu.memory_space<vmem>>, %arg5: memref<256x512xf32, #tpu.memory_space<vmem>>, %arg6: memref<1x512xf32, #tpu.memory_space<vmem>>, %arg7: memref<2x512xf32, #tpu.memory_space<vmem>>) attributes {dimension_semantics = [], scalar_prefetch = 0 : i64, scratch_operands = 0 : i64, tpu.core_type = #tpu.core_type<tc>} {
    %c0 = arith.constant 0 : index
    %c0_0 = arith.constant 0 : index
    %0 = vector.load %arg0[%c0, %c0_0] : memref<2x10xf32, #tpu.memory_space<vmem>>, vector<2x10xf32>
    %c0_1 = arith.constant 0 : index
    %c0_2 = arith.constant 0 : index
    %1 = vector.load %arg1[%c0_1, %c0_2] : memref<10x256xf32, #tpu.memory_space<vmem>>, vector<10x256xf32>
    %cst = arith.constant dense<0.000000e+00> : vector<2x256xf32>
    %2 = tpu.matmul %0, %1, %cst {dimension_numbers = #tpu.dot_dimension_numbers<[1], [0], [0], [1], [0, 0, 1, 1], [], []>} : vector<2x10xf32>, vector<10x256xf32>, vector<2x256xf32> -> vector<2x256xf32>
    %c0_3 = arith.constant 0 : index
    %c0_4 = arith.constant 0 : index
    %3 = vector.load %arg2[%c0_3, %c0_4] : memref<1x256xf32, #tpu.memory_space<vmem>>, vector<1x256xf32>
    %4 = vector.broadcast %3 : vector<1x256xf32> to vector<2x256xf32>
    %5 = arith.addf %2, %4 : vector<2x256xf32>
    %cst_5 = arith.constant 0.000000e+00 : f32
    %6 = vector.broadcast %cst_5 : f32 to vector<2x256xf32>
    %7 = arith.maximumf %5, %6 : vector<2x256xf32>
    %c0_6 = arith.constant 0 : index
    %c0_7 = arith.constant 0 : index
    %8 = vector.load %arg3[%c0_6, %c0_7] : memref<256x256xf32, #tpu.memory_space<vmem>>, vector<256x256xf32>
    %cst_8 = arith.constant dense<0.000000e+00> : vector<2x256xf32>
    %9 = tpu.matmul %7, %8, %cst_8 {dimension_numbers = #tpu.dot_dimension_numbers<[1], [0], [0], [1], [0, 0, 1, 1], [], []>} : vector<2x256xf32>, vector<256x256xf32>, vector<2x256xf32> -> vector<2x256xf32>
    %c0_9 = arith.constant 0 : index
    %c0_10 = arith.constant 0 : index
    %10 = vector.load %arg4[%c0_9, %c0_10] : memref<1x256xf32, #tpu.memory_space<vmem>>, vector<1x256xf32>
    %11 = vector.broadcast %10 : vector<1x256xf32> to vector<2x256xf32>
    %12 = arith.addf %9, %11 : vector<2x256xf32>
    %cst_11 = arith.constant 0.000000e+00 : f32
    %13 = vector.broadcast %cst_11 : f32 to vector<2x256xf32>
    %14 = arith.maximumf %12, %13 : vector<2x256xf32>
    %c0_12 = arith.constant 0 : index
    %c0_13 = arith.constant 0 : index
    %15 = vector.load %arg5[%c0_12, %c0_13] : memref<256x512xf32, #tpu.memory_space<vmem>>, vector<256x512xf32>
    %cst_14 = arith.constant dense<0.000000e+00> : vector<2x512xf32>
    %16 = tpu.matmul %14, %15, %cst_14 {dimension_numbers = #tpu.dot_dimension_numbers<[1], [0], [0], [1], [0, 0, 1, 1], [], []>} : vector<2x256xf32>, vector<256x512xf32>, vector<2x512xf32> -> vector<2x512xf32>
    %c0_15 = arith.constant 0 : index
    %c0_16 = arith.constant 0 : index
    %17 = vector.load %arg6[%c0_15, %c0_16] : memref<1x512xf32, #tpu.memory_space<vmem>>, vector<1x512xf32>
    %18 = vector.broadcast %17 : vector<1x512xf32> to vector<2x512xf32>
    %19 = arith.addf %16, %18 : vector<2x512xf32>
    %cst_17 = arith.constant 0.000000e+00 : f32
    %20 = vector.broadcast %cst_17 : f32 to vector<2x512xf32>
    %21 = arith.maximumf %19, %20 : vector<2x512xf32>
    %c0_18 = arith.constant 0 : index
    %c0_19 = arith.constant 0 : index
    %22 = vector.load %arg7[%c0_18, %c0_19] : memref<2x512xf32, #tpu.memory_space<vmem>>, vector<2x512xf32>
    tpu.vector_store %arg7[%c0_18, %c0_19], %21 {strides = array<i32>} : memref<2x512xf32, #tpu.memory_space<vmem>>, vector<2x512xf32>,
    return
  }
}

module attributes {stable_mosaic.version = 11 : i64} {
  func.func @_mm_bias_act_kernel(%arg0: memref<32x288xf32, #tpu.memory_space<vmem>>, %arg1: memref<288x128xf32, #tpu.memory_space<vmem>>, %arg2: memref<1x128xf32, #tpu.memory_space<vmem>>, %arg3: memref<32x128xf32, #tpu.memory_space<vmem>>) attributes {dimension_semantics = [], scalar_prefetch = 0 : i64, scratch_operands = 0 : i64, tpu.core_type = #tpu.core_type<tc>} {
    %c0 = arith.constant 0 : index
    %c0_0 = arith.constant 0 : index
    %0 = vector.load %arg0[%c0, %c0_0] : memref<32x288xf32, #tpu.memory_space<vmem>>, vector<32x288xf32>
    %c0_1 = arith.constant 0 : index
    %c0_2 = arith.constant 0 : index
    %1 = vector.load %arg1[%c0_1, %c0_2] : memref<288x128xf32, #tpu.memory_space<vmem>>, vector<288x128xf32>
    %cst = arith.constant dense<0.000000e+00> : vector<32x128xf32>
    %2 = tpu.matmul %0, %1, %cst {dimension_numbers = #tpu.dot_dimension_numbers<[1], [0], [0], [1], [0, 0, 1, 1], [], []>} : vector<32x288xf32>, vector<288x128xf32>, vector<32x128xf32> -> vector<32x128xf32>
    %c0_3 = arith.constant 0 : index
    %c0_4 = arith.constant 0 : index
    %3 = vector.load %arg2[%c0_3, %c0_4] : memref<1x128xf32, #tpu.memory_space<vmem>>, vector<1x128xf32>
    %4 = vector.broadcast %3 : vector<1x128xf32> to vector<32x128xf32>
    %5 = arith.addf %2, %4 : vector<32x128xf32>
    %cst_5 = arith.constant 0.000000e+00 : f32
    %6 = vector.broadcast %cst_5 : f32 to vector<32x128xf32>
    %7 = arith.maximumf %5, %6 : vector<32x128xf32>
    %c0_6 = arith.constant 0 : index
    %c0_7 = arith.constant 0 : index
    %8 = vector.load %arg3[%c0_6, %c0_7] : memref<32x128xf32, #tpu.memory_space<vmem>>, vector<32x128xf32>
    tpu.vector_store %arg3[%c0_6, %c0_7], %7 {strides = array<i32>} : memref<32x128xf32, #tpu.memory_space<vmem>>, vector<32x128xf32>,
    return
  }
}

module attributes {stable_mosaic.version = 11 : i64} {
  func.func @_mm_bias_act_kernel(%arg0: memref<128x288xf32, #tpu.memory_space<vmem>>, %arg1: memref<288x128xf32, #tpu.memory_space<vmem>>, %arg2: memref<1x128xf32, #tpu.memory_space<vmem>>, %arg3: memref<128x128xf32, #tpu.memory_space<vmem>>) attributes {dimension_semantics = [], scalar_prefetch = 0 : i64, scratch_operands = 0 : i64, tpu.core_type = #tpu.core_type<tc>} {
    %c0 = arith.constant 0 : index
    %c0_0 = arith.constant 0 : index
    %0 = vector.load %arg0[%c0, %c0_0] : memref<128x288xf32, #tpu.memory_space<vmem>>, vector<128x288xf32>
    %c0_1 = arith.constant 0 : index
    %c0_2 = arith.constant 0 : index
    %1 = vector.load %arg1[%c0_1, %c0_2] : memref<288x128xf32, #tpu.memory_space<vmem>>, vector<288x128xf32>
    %cst = arith.constant dense<0.000000e+00> : vector<128x128xf32>
    %2 = tpu.matmul %0, %1, %cst {dimension_numbers = #tpu.dot_dimension_numbers<[1], [0], [0], [1], [0, 0, 1, 1], [], []>} : vector<128x288xf32>, vector<288x128xf32>, vector<128x128xf32> -> vector<128x128xf32>
    %c0_3 = arith.constant 0 : index
    %c0_4 = arith.constant 0 : index
    %3 = vector.load %arg2[%c0_3, %c0_4] : memref<1x128xf32, #tpu.memory_space<vmem>>, vector<1x128xf32>
    %4 = vector.broadcast %3 : vector<1x128xf32> to vector<128x128xf32>
    %5 = arith.addf %2, %4 : vector<128x128xf32>
    %cst_5 = arith.constant 0.000000e+00 : f32
    %6 = vector.broadcast %cst_5 : f32 to vector<128x128xf32>
    %7 = arith.maximumf %5, %6 : vector<128x128xf32>
    %c0_6 = arith.constant 0 : index
    %c0_7 = arith.constant 0 : index
    %8 = vector.load %arg3[%c0_6, %c0_7] : memref<128x128xf32, #tpu.memory_space<vmem>>, vector<128x128xf32>
    tpu.vector_store %arg3[%c0_6, %c0_7], %7 {strides = array<i32>} : memref<128x128xf32, #tpu.memory_space<vmem>>, vector<128x128xf32>,
    return
  }
}

module attributes {stable_mosaic.version = 11 : i64} {
  func.func @_mm_bias_act_kernel(%arg0: memref<512x288xf32, #tpu.memory_space<vmem>>, %arg1: memref<288x4xf32, #tpu.memory_space<vmem>>, %arg2: memref<1x4xf32, #tpu.memory_space<vmem>>, %arg3: memref<512x4xf32, #tpu.memory_space<vmem>>) attributes {dimension_semantics = [], scalar_prefetch = 0 : i64, scratch_operands = 0 : i64, tpu.core_type = #tpu.core_type<tc>} {
    %c0 = arith.constant 0 : index
    %c0_0 = arith.constant 0 : index
    %0 = vector.load %arg0[%c0, %c0_0] : memref<512x288xf32, #tpu.memory_space<vmem>>, vector<512x288xf32>
    %c0_1 = arith.constant 0 : index
    %c0_2 = arith.constant 0 : index
    %1 = vector.load %arg1[%c0_1, %c0_2] : memref<288x4xf32, #tpu.memory_space<vmem>>, vector<288x4xf32>
    %cst = arith.constant dense<0.000000e+00> : vector<512x4xf32>
    %2 = tpu.matmul %0, %1, %cst {dimension_numbers = #tpu.dot_dimension_numbers<[1], [0], [0], [1], [0, 0, 1, 1], [], []>} : vector<512x288xf32>, vector<288x4xf32>, vector<512x4xf32> -> vector<512x4xf32>
    %c0_3 = arith.constant 0 : index
    %c0_4 = arith.constant 0 : index
    %3 = vector.load %arg2[%c0_3, %c0_4] : memref<1x4xf32, #tpu.memory_space<vmem>>, vector<1x4xf32>
    %4 = vector.broadcast %3 : vector<1x4xf32> to vector<512x4xf32>
    %5 = arith.addf %2, %4 : vector<512x4xf32>
    %6 = arith.negf %5 : vector<512x4xf32>
    %7 = math.exp %6 : vector<512x4xf32>
    %cst_5 = arith.constant 1.000000e+00 : f32
    %8 = vector.broadcast %cst_5 : f32 to vector<512x4xf32>
    %9 = arith.addf %8, %7 : vector<512x4xf32>
    %10 = arith.divf %8, %9 : vector<512x4xf32>
    %c0_6 = arith.constant 0 : index
    %c0_7 = arith.constant 0 : index
    %11 = vector.load %arg3[%c0_6, %c0_7] : memref<512x4xf32, #tpu.memory_space<vmem>>, vector<512x4xf32>
    tpu.vector_store %arg3[%c0_6, %c0_7], %10 {strides = array<i32>} : memref<512x4xf32, #tpu.memory_space<vmem>>, vector<512x4xf32>,
    return
  }
}

</mosaic_0001>

<bundles_post_ra>
// kernel: vae_forward.8
= control target key start
LH: loop header
LB: loop body
LE: loop exit
PB: predicated region body
PF: predicated region fallthrough
CT: control target
= control target key end

     0   :  { %vm87_vm0 = vcmask 130048   ;;  %vm729_vm1 = vcmask 261120   ;;  %s1640_s1 = inlined_call_operand.vmem [shape: f32[16,32], index: 1, kind: input, shape index: {}]   ;;  %s1641_s0 = inlined_call_operand.vmem [shape: f32[512,16], index: 0, kind: input, shape index: {}]   ;;  %s1642_s2 = inlined_call_operand.vmem [shape: f32[1,32], index: 2, kind: input, shape index: {}]   ;;  %s1643_s3 = inlined_call_operand.vmem [shape: f32[512,32], index: 3, kind: output, shape index: {}]  }
   0x1   :  { %v79_v0 = vld [vmem:[%s1640_s1 + $0x8] sm:$0xff]  ;;  %v78_v1 = vld [vmem:[%s1640_s1] sm:$0xff]  ;;  %v16_v6 = vld [vmem:[%s1641_s0 + $0x10] sm:$0xff] }
   0x2   :  { %929 = vmatprep.subr.mxu0 %v79_v0  ;;  %1029 = vmatprep.subr.mxu1 %v79_v0  ;;  %v14_v2 = vld [vmem:[%s1641_s0] sm:$0xff]  ;;  %v15_v4 = vld [vmem:[%s1641_s0 + $0x8] sm:$0xff]  ;;  %v48_v7 = vld [vmem:[%s1641_s0 + $0x110] sm:$0xff] }
   0x3   :  { %930 = vmatpush3.msra.mxu0 %v79_v0  ;;  %1031 = vmatpush3.msra.mxu1 %v79_v0  ;;  %v46_v3 = vld [vmem:[%s1641_s0 + $0x100] sm:$0xff]  ;;  %v47_v5 = vld [vmem:[%s1641_s0 + $0x108] sm:$0xff]  ;;  %v17_v8 = vld [vmem:[%s1641_s0 + $0x18] sm:$0xff] }
   0x4   :  { %931 = vmatprep.subr.mxu0 %v78_v1  ;;  %1030 = vmatprep.subr.mxu1 %v78_v1  ;;  %v49_v9 = vld [vmem:[%s1641_s0 + $0x118] sm:$0xff]  ;;  %v18_v10 = vld [vmem:[%s1641_s0 + $0x20] sm:$0xff]  ;;  %v19_v12 = vld [vmem:[%s1641_s0 + $0x28] sm:$0xff] }
   0x5   :  { %932 = vmatpush3.msra.mxu0 %v78_v1  ;;  %1032 = vmatpush3.msra.mxu1 %v78_v1  ;;  %v50_v11 = vld [vmem:[%s1641_s0 + $0x120] sm:$0xff]  ;;  %v51_v13 = vld [vmem:[%s1641_s0 + $0x128] sm:$0xff]  ;;  %v20_v14 = vld [vmem:[%s1641_s0 + $0x30] sm:$0xff] }
   0x6   :  { %933 = vmatprep.mubr.msk.f32.mxu0 %vm87_vm0, %v14_v2  ;;  %981 = vmatprep.mubr.msk.f32.mxu1 %vm87_vm0, %v46_v3  ;;  %v52_v15 = vld [vmem:[%s1641_s0 + $0x130] sm:$0xff]  ;;  %v21_v16 = vld [vmem:[%s1641_s0 + $0x38] sm:$0xff]  ;;  %v22_v18 = vld [vmem:[%s1641_s0 + $0x40] sm:$0xff] }
   0x7   :  { %934 = vmatmul.mubr.msk.f32.vlgmr.msra.gmra.mxu0 %vm87_vm0, %v15_v4  ;;  %982 = vmatmul.mubr.msk.f32.vlgmr.msra.gmra.mxu1 %vm87_vm0, %v47_v5  ;;  %v53_v17 = vld [vmem:[%s1641_s0 + $0x138] sm:$0xff]  ;;  %v54_v19 = vld [vmem:[%s1641_s0 + $0x140] sm:$0xff]  ;;  %v23_v20 = vld [vmem:[%s1641_s0 + $0x48] sm:$0xff] }
   0x8   :  { %936 = vmatprep.mubr.msk.f32.mxu0 %vm87_vm0, %v16_v6  ;;  %984 = vmatprep.mubr.msk.f32.mxu1 %vm87_vm0, %v48_v7  ;;  %v55_v21 = vld [vmem:[%s1641_s0 + $0x148] sm:$0xff]  ;;  %v24_v22 = vld [vmem:[%s1641_s0 + $0x50] sm:$0xff]  ;;  %v25_v24 = vld [vmem:[%s1641_s0 + $0x58] sm:$0xff] }
   0x9   :  { %v56_v23 = vld [vmem:[%s1641_s0 + $0x150] sm:$0xff]  ;;  %v57_v25 = vld [vmem:[%s1641_s0 + $0x158] sm:$0xff]  ;;  %v26_v26 = vld [vmem:[%s1641_s0 + $0x60] sm:$0xff] }
   0xa   :  { %v58_v27 = vld [vmem:[%s1641_s0 + $0x160] sm:$0xff]  ;;  %v27_v28 = vld [vmem:[%s1641_s0 + $0x68] sm:$0xff]  ;;  %v28_v30 = vld [vmem:[%s1641_s0 + $0x70] sm:$0xff] }
   0xb   :  { %937 = vmatmul.mubr.msk.f32.gmra.mxu0 %vm87_vm0, %v17_v8  ;;  %985 = vmatmul.mubr.msk.f32.gmra.mxu1 %vm87_vm0, %v49_v9  ;;  %v59_v29 = vld [vmem:[%s1641_s0 + $0x168] sm:$0xff]  ;;  %v60_v31 = vld [vmem:[%s1641_s0 + $0x170] sm:$0xff]  ;;  %v29_v32 = vld [vmem:[%s1641_s0 + $0x78] sm:$0xff] }
   0xc   :  { %939 = vmatprep.mubr.msk.f32.mxu0 %vm87_vm0, %v18_v10  ;;  %987 = vmatprep.mubr.msk.f32.mxu1 %vm87_vm0, %v50_v11  ;;  %v61_v33 = vld [vmem:[%s1641_s0 + $0x178] sm:$0xff]  ;;  %v30_v34 = vld [vmem:[%s1641_s0 + $0x80] sm:$0xff]  ;;  %v31_v36 = vld [vmem:[%s1641_s0 + $0x88] sm:$0xff] }
   0xd   :  { %v62_v35 = vld [vmem:[%s1641_s0 + $0x180] sm:$0xff]  ;;  %v63_v37 = vld [vmem:[%s1641_s0 + $0x188] sm:$0xff]  ;;  %v32_v38 = vld [vmem:[%s1641_s0 + $0x90] sm:$0xff] }
   0xe   :  { %v64_v39 = vld [vmem:[%s1641_s0 + $0x190] sm:$0xff]  ;;  %v33_v40 = vld [vmem:[%s1641_s0 + $0x98] sm:$0xff]  ;;  %v34_v42 = vld [vmem:[%s1641_s0 + $0xa0] sm:$0xff] }
   0xf   :  { %940 = vmatmul.mubr.msk.f32.gmra.mxu0 %vm87_vm0, %v19_v12  ;;  %988 = vmatmul.mubr.msk.f32.gmra.mxu1 %vm87_vm0, %v51_v13  ;;  %v65_v41 = vld [vmem:[%s1641_s0 + $0x198] sm:$0xff]  ;;  %v66_v43 = vld [vmem:[%s1641_s0 + $0x1a0] sm:$0xff]  ;;  %v35_v44 = vld [vmem:[%s1641_s0 + $0xa8] sm:$0xff] }
  0x10   :  { %942 = vmatprep.mubr.msk.f32.mxu0 %vm87_vm0, %v20_v14  ;;  %990 = vmatprep.mubr.msk.f32.mxu1 %vm87_vm0, %v52_v15  ;;  %v67_v45 = vld [vmem:[%s1641_s0 + $0x1a8] sm:$0xff]  ;;  %v36_v46 = vld [vmem:[%s1641_s0 + $0xb0] sm:$0xff]  ;;  %v37_v48 = vld [vmem:[%s1641_s0 + $0xb8] sm:$0xff] }
  0x11   :  { %v68_v47 = vld [vmem:[%s1641_s0 + $0x1b0] sm:$0xff]  ;;  %v69_v49 = vld [vmem:[%s1641_s0 + $0x1b8] sm:$0xff]  ;;  %v38_v50 = vld [vmem:[%s1641_s0 + $0xc0] sm:$0xff] }
  0x12   :  { %v70_v51 = vld [vmem:[%s1641_s0 + $0x1c0] sm:$0xff]  ;;  %v39_v52 = vld [vmem:[%s1641_s0 + $0xc8] sm:$0xff]  ;;  %v40_v54 = vld [vmem:[%s1641_s0 + $0xd0] sm:$0xff] }
  0x13   :  { %943 = vmatmul.mubr.msk.f32.gmra.mxu0 %vm87_vm0, %v21_v16  ;;  %991 = vmatmul.mubr.msk.f32.gmra.mxu1 %vm87_vm0, %v53_v17  ;;  %v71_v53 = vld [vmem:[%s1641_s0 + $0x1c8] sm:$0xff]  ;;  %v72_v55 = vld [vmem:[%s1641_s0 + $0x1d0] sm:$0xff]  ;;  %v41_v56 = vld [vmem:[%s1641_s0 + $0xd8] sm:$0xff] }
  0x14   :  { %945 = vmatprep.mubr.msk.f32.mxu0 %vm87_vm0, %v22_v18  ;;  %993 = vmatprep.mubr.msk.f32.mxu1 %vm87_vm0, %v54_v19  ;;  %v73_v57 = vld [vmem:[%s1641_s0 + $0x1d8] sm:$0xff]  ;;  %v42_v58 = vld [vmem:[%s1641_s0 + $0xe0] sm:$0xff]  ;;  %v43_v60 = vld [vmem:[%s1641_s0 + $0xe8] sm:$0xff] }
  0x15   :  { %v74_v59 = vld [vmem:[%s1641_s0 + $0x1e0] sm:$0xff]  ;;  %v75_v61 = vld [vmem:[%s1641_s0 + $0x1e8] sm:$0xff]  ;;  %v44_v62 = vld [vmem:[%s1641_s0 + $0xf0] sm:$0xff] }
  0x16   :  { %v76_v63 = vld [vmem:[%s1641_s0 + $0x1f0] sm:$0xff]  ;;  %v45_v0 = vld [vmem:[%s1641_s0 + $0xf8] sm:$0xff]  ;;  %v1318_v2 = vld [vmem:[%s1642_s2] ss:$0 sm:$0xff] }
  0x17   :  { %946 = vmatmul.mubr.msk.f32.gmra.mxu0 %vm87_vm0, %v23_v20  ;;  %994 = vmatmul.mubr.msk.f32.gmra.mxu1 %vm87_vm0, %v55_v21  ;;  %v77_v1 = vld [vmem:[%s1641_s0 + $0x1f8] sm:$0xff] }
  0x18   :  { %948 = vmatprep.mubr.msk.f32.mxu0 %vm87_vm0, %v24_v22  ;;  %996 = vmatprep.mubr.msk.f32.mxu1 %vm87_vm0, %v56_v23 }
  0x1b   :  { %949 = vmatmul.mubr.msk.f32.gmra.mxu0 %vm87_vm0, %v25_v24  ;;  %997 = vmatmul.mubr.msk.f32.gmra.mxu1 %vm87_vm0, %v57_v25 }
  0x1c   :  { %951 = vmatprep.mubr.msk.f32.mxu0 %vm87_vm0, %v26_v26  ;;  %999 = vmatprep.mubr.msk.f32.mxu1 %vm87_vm0, %v58_v27 }
  0x1f   :  { %952 = vmatmul.mubr.msk.f32.gmra.mxu0 %vm87_vm0, %v27_v28  ;;  %1000 = vmatmul.mubr.msk.f32.gmra.mxu1 %vm87_vm0, %v59_v29 }
  0x20   :  { %954 = vmatprep.mubr.msk.f32.mxu0 %vm87_vm0, %v28_v30  ;;  %1002 = vmatprep.mubr.msk.f32.mxu1 %vm87_vm0, %v60_v31 }
  0x23   :  { %955 = vmatmul.mubr.msk.f32.gmra.mxu0 %vm87_vm0, %v29_v32  ;;  %1003 = vmatmul.mubr.msk.f32.gmra.mxu1 %vm87_vm0, %v61_v33 }
  0x24   :  { %957 = vmatprep.mubr.msk.f32.mxu0 %vm87_vm0, %v30_v34  ;;  %1005 = vmatprep.mubr.msk.f32.mxu1 %vm87_vm0, %v62_v35 }
  0x27   :  { %958 = vmatmul.mubr.msk.f32.gmra.mxu0 %vm87_vm0, %v31_v36  ;;  %1006 = vmatmul.mubr.msk.f32.gmra.mxu1 %vm87_vm0, %v63_v37 }
  0x28   :  { %960 = vmatprep.mubr.msk.f32.mxu0 %vm87_vm0, %v32_v38  ;;  %1008 = vmatprep.mubr.msk.f32.mxu1 %vm87_vm0, %v64_v39 }
  0x2b   :  { %961 = vmatmul.mubr.msk.f32.gmra.mxu0 %vm87_vm0, %v33_v40  ;;  %1009 = vmatmul.mubr.msk.f32.gmra.mxu1 %vm87_vm0, %v65_v41 }
  0x2c   :  { %963 = vmatprep.mubr.msk.f32.mxu0 %vm87_vm0, %v34_v42  ;;  %1011 = vmatprep.mubr.msk.f32.mxu1 %vm87_vm0, %v66_v43 }
  0x2f   :  { %964 = vmatmul.mubr.msk.f32.gmra.mxu0 %vm87_vm0, %v35_v44  ;;  %1012 = vmatmul.mubr.msk.f32.gmra.mxu1 %vm87_vm0, %v67_v45 }
  0x30   :  { %966 = vmatprep.mubr.msk.f32.mxu0 %vm87_vm0, %v36_v46  ;;  %1014 = vmatprep.mubr.msk.f32.mxu1 %vm87_vm0, %v68_v47 }
  0x33   :  { %967 = vmatmul.mubr.msk.f32.gmra.mxu0 %vm87_vm0, %v37_v48  ;;  %1015 = vmatmul.mubr.msk.f32.gmra.mxu1 %vm87_vm0, %v69_v49 }
  0x34   :  { %969 = vmatprep.mubr.msk.f32.mxu0 %vm87_vm0, %v38_v50  ;;  %1017 = vmatprep.mubr.msk.f32.mxu1 %vm87_vm0, %v70_v51 }
  0x37   :  { %970 = vmatmul.mubr.msk.f32.gmra.mxu0 %vm87_vm0, %v39_v52  ;;  %1018 = vmatmul.mubr.msk.f32.gmra.mxu1 %vm87_vm0, %v71_v53 }
  0x38   :  { %972 = vmatprep.mubr.msk.f32.mxu0 %vm87_vm0, %v40_v54  ;;  %1020 = vmatprep.mubr.msk.f32.mxu1 %vm87_vm0, %v72_v55 }
  0x3b   :  { %973 = vmatmul.mubr.msk.f32.gmra.mxu0 %vm87_vm0, %v41_v56  ;;  %1021 = vmatmul.mubr.msk.f32.gmra.mxu1 %vm87_vm0, %v73_v57 }
  0x3c   :  { %975 = vmatprep.mubr.msk.f32.mxu0 %vm87_vm0, %v42_v58  ;;  %1023 = vmatprep.mubr.msk.f32.mxu1 %vm87_vm0, %v74_v59 }
  0x3f   :  { %976 = vmatmul.mubr.msk.f32.gmra.mxu0 %vm87_vm0, %v43_v60  ;;  %1024 = vmatmul.mubr.msk.f32.gmra.mxu1 %vm87_vm0, %v75_v61 }
  0x40   :  { %978 = vmatprep.mubr.msk.f32.mxu0 %vm87_vm0, %v44_v62  ;;  %1026 = vmatprep.mubr.msk.f32.mxu1 %vm87_vm0, %v76_v63 }
  0x43   :  { %979 = vmatmul.mubr.msk.f32.gmra.mxu0 %vm87_vm0, %v45_v0  ;;  %1027 = vmatmul.mubr.msk.f32.gmra.mxu1 %vm87_vm0, %v77_v1 }
  0xc7   :  { %v935_v3 = vpop.f32.mrf.mxu0  ;;  %v983_v4 = vpop.f32.mrf.mxu1 }
  0xc8   :  { %v352_v5 = vadd.f32 %v935_v3, %v1318_v2  ;;  %v512_v6 = vadd.f32 %v983_v4, %v1318_v2 }
  0xc9   :  { %v346_v7 = vpop.f32.mrf.mxu0  ;;  %v506_v8 = vpop.f32.mrf.mxu1 }
  0xca   :  { %v666_v9 = vmax.f32 %v352_v5, 0.0  ;;  %v698_v10 = vmax.f32 %v512_v6, 0.0  ;;  %v347_v11 = vadd.f32 %v1318_v2, %v346_v7  ;;  %v507_v12 = vadd.f32 %v1318_v2, %v506_v8 }
  0xcb   :  { %v938_v13 = vpop.f32.mrf.mxu0  ;;  %v986_v14 = vpop.f32.mrf.mxu1 }
  0xcc   :  { %731 = vst.msk [vmem:[%s1643_s3 + $0x8] sm:$0xff] %vm729_vm1, %v666_v9  ;;  %763 = vst.msk [vmem:[%s1643_s3 + $0x108] sm:$0xff] %vm729_vm1, %v698_v10  ;;  %v665_v15 = vmax.f32 %v347_v11, 0.0  ;;  %v697_v16 = vmax.f32 %v507_v12, 0.0  ;;  %v362_v17 = vadd.f32 %v938_v13, %v1318_v2  ;;  %v522_v18 = vadd.f32 %v986_v14, %v1318_v2 }
  0xcd   :  { %v356_v19 = vpop.f32.mrf.mxu0  ;;  %v516_v20 = vpop.f32.mrf.mxu1 }
  0xce   :  { %730 = vst.msk [vmem:[%s1643_s3] sm:$0xff] %vm729_vm1, %v665_v15  ;;  %762 = vst.msk [vmem:[%s1643_s3 + $0x100] sm:$0xff] %vm729_vm1, %v697_v16  ;;  %v668_v21 = vmax.f32 %v362_v17, 0.0  ;;  %v700_v22 = vmax.f32 %v522_v18, 0.0  ;;  %v357_v23 = vadd.f32 %v1318_v2, %v356_v19  ;;  %v517_v24 = vadd.f32 %v1318_v2, %v516_v20 }
  0xcf   :  { %v941_v25 = vpop.f32.mrf.mxu0  ;;  %v989_v26 = vpop.f32.mrf.mxu1 }
  0xd0   :  { %733 = vst.msk [vmem:[%s1643_s3 + $0x18] sm:$0xff] %vm729_vm1, %v668_v21  ;;  %765 = vst.msk [vmem:[%s1643_s3 + $0x118] sm:$0xff] %vm729_vm1, %v700_v22  ;;  %v667_v27 = vmax.f32 %v357_v23, 0.0  ;;  %v699_v28 = vmax.f32 %v517_v24, 0.0  ;;  %v372_v29 = vadd.f32 %v941_v25, %v1318_v2  ;;  %v532_v30 = vadd.f32 %v989_v26, %v1318_v2 }
  0xd1   :  { %v366_v31 = vpop.f32.mrf.mxu0  ;;  %v526_v32 = vpop.f32.mrf.mxu1 }
  0xd2   :  { %732 = vst.msk [vmem:[%s1643_s3 + $0x10] sm:$0xff] %vm729_vm1, %v667_v27  ;;  %764 = vst.msk [vmem:[%s1643_s3 + $0x110] sm:$0xff] %vm729_vm1, %v699_v28  ;;  %v670_v33 = vmax.f32 %v372_v29, 0.0  ;;  %v702_v34 = vmax.f32 %v532_v30, 0.0  ;;  %v367_v35 = vadd.f32 %v1318_v2, %v366_v31  ;;  %v527_v36 = vadd.f32 %v1318_v2, %v526_v32 }
  0xd3   :  { %v944_v37 = vpop.f32.mrf.mxu0  ;;  %v992_v38 = vpop.f32.mrf.mxu1 }
  0xd4   :  { %735 = vst.msk [vmem:[%s1643_s3 + $0x28] sm:$0xff] %vm729_vm1, %v670_v33  ;;  %767 = vst.msk [vmem:[%s1643_s3 + $0x128] sm:$0xff] %vm729_vm1, %v702_v34  ;;  %v669_v39 = vmax.f32 %v367_v35, 0.0  ;;  %v701_v40 = vmax.f32 %v527_v36, 0.0  ;;  %v382_v41 = vadd.f32 %v944_v37, %v1318_v2  ;;  %v542_v42 = vadd.f32 %v992_v38, %v1318_v2 }
  0xd5   :  { %v376_v43 = vpop.f32.mrf.mxu0  ;;  %v536_v44 = vpop.f32.mrf.mxu1 }
  0xd6   :  { %734 = vst.msk [vmem:[%s1643_s3 + $0x20] sm:$0xff] %vm729_vm1, %v669_v39  ;;  %766 = vst.msk [vmem:[%s1643_s3 + $0x120] sm:$0xff] %vm729_vm1, %v701_v40  ;;  %v672_v45 = vmax.f32 %v382_v41, 0.0  ;;  %v704_v46 = vmax.f32 %v542_v42, 0.0  ;;  %v377_v47 = vadd.f32 %v1318_v2, %v376_v43  ;;  %v537_v48 = vadd.f32 %v1318_v2, %v536_v44 }
  0xd7   :  { %v947_v49 = vpop.f32.mrf.mxu0  ;;  %v995_v50 = vpop.f32.mrf.mxu1 }
  0xd8   :  { %737 = vst.msk [vmem:[%s1643_s3 + $0x38] sm:$0xff] %vm729_vm1, %v672_v45  ;;  %769 = vst.msk [vmem:[%s1643_s3 + $0x138] sm:$0xff] %vm729_vm1, %v704_v46  ;;  %v671_v51 = vmax.f32 %v377_v47, 0.0  ;;  %v703_v52 = vmax.f32 %v537_v48, 0.0  ;;  %v392_v53 = vadd.f32 %v947_v49, %v1318_v2  ;;  %v552_v54 = vadd.f32 %v995_v50, %v1318_v2 }
  0xd9   :  { %v386_v55 = vpop.f32.mrf.mxu0  ;;  %v546_v56 = vpop.f32.mrf.mxu1 }
  0xda   :  { %736 = vst.msk [vmem:[%s1643_s3 + $0x30] sm:$0xff] %vm729_vm1, %v671_v51  ;;  %768 = vst.msk [vmem:[%s1643_s3 + $0x130] sm:$0xff] %vm729_vm1, %v703_v52  ;;  %v674_v57 = vmax.f32 %v392_v53, 0.0  ;;  %v706_v58 = vmax.f32 %v552_v54, 0.0  ;;  %v387_v59 = vadd.f32 %v1318_v2, %v386_v55  ;;  %v547_v60 = vadd.f32 %v1318_v2, %v546_v56 }
  0xdb   :  { %v950_v61 = vpop.f32.mrf.mxu0  ;;  %v998_v62 = vpop.f32.mrf.mxu1 }
  0xdc   :  { %739 = vst.msk [vmem:[%s1643_s3 + $0x48] sm:$0xff] %vm729_vm1, %v674_v57  ;;  %771 = vst.msk [vmem:[%s1643_s3 + $0x148] sm:$0xff] %vm729_vm1, %v706_v58  ;;  %v673_v63 = vmax.f32 %v387_v59, 0.0  ;;  %v705_v0 = vmax.f32 %v547_v60, 0.0  ;;  %v402_v1 = vadd.f32 %v950_v61, %v1318_v2  ;;  %v562_v3 = vadd.f32 %v998_v62, %v1318_v2 }
  0xdd   :  { %v396_v4 = vpop.f32.mrf.mxu0  ;;  %v556_v5 = vpop.f32.mrf.mxu1 }
  0xde   :  { %738 = vst.msk [vmem:[%s1643_s3 + $0x40] sm:$0xff] %vm729_vm1, %v673_v63  ;;  %770 = vst.msk [vmem:[%s1643_s3 + $0x140] sm:$0xff] %vm729_vm1, %v705_v0  ;;  %v676_v6 = vmax.f32 %v402_v1, 0.0  ;;  %v708_v7 = vmax.f32 %v562_v3, 0.0  ;;  %v397_v8 = vadd.f32 %v1318_v2, %v396_v4  ;;  %v557_v9 = vadd.f32 %v1318_v2, %v556_v5 }
  0xdf   :  { %v953_v10 = vpop.f32.mrf.mxu0  ;;  %v1001_v11 = vpop.f32.mrf.mxu1 }
  0xe0   :  { %741 = vst.msk [vmem:[%s1643_s3 + $0x58] sm:$0xff] %vm729_vm1, %v676_v6  ;;  %773 = vst.msk [vmem:[%s1643_s3 + $0x158] sm:$0xff] %vm729_vm1, %v708_v7  ;;  %v675_v12 = vmax.f32 %v397_v8, 0.0  ;;  %v707_v13 = vmax.f32 %v557_v9, 0.0  ;;  %v412_v14 = vadd.f32 %v953_v10, %v1318_v2  ;;  %v572_v15 = vadd.f32 %v1001_v11, %v1318_v2 }
  0xe1   :  { %v406_v16 = vpop.f32.mrf.mxu0  ;;  %v566_v17 = vpop.f32.mrf.mxu1 }
  0xe2   :  { %740 = vst.msk [vmem:[%s1643_s3 + $0x50] sm:$0xff] %vm729_vm1, %v675_v12  ;;  %772 = vst.msk [vmem:[%s1643_s3 + $0x150] sm:$0xff] %vm729_vm1, %v707_v13  ;;  %v678_v18 = vmax.f32 %v412_v14, 0.0  ;;  %v710_v19 = vmax.f32 %v572_v15, 0.0  ;;  %v407_v20 = vadd.f32 %v1318_v2, %v406_v16  ;;  %v567_v21 = vadd.f32 %v1318_v2, %v566_v17 }
  0xe3   :  { %v956_v22 = vpop.f32.mrf.mxu0  ;;  %v1004_v23 = vpop.f32.mrf.mxu1 }
  0xe4   :  { %743 = vst.msk [vmem:[%s1643_s3 + $0x68] sm:$0xff] %vm729_vm1, %v678_v18  ;;  %775 = vst.msk [vmem:[%s1643_s3 + $0x168] sm:$0xff] %vm729_vm1, %v710_v19  ;;  %v677_v24 = vmax.f32 %v407_v20, 0.0  ;;  %v709_v25 = vmax.f32 %v567_v21, 0.0  ;;  %v422_v26 = vadd.f32 %v956_v22, %v1318_v2  ;;  %v582_v27 = vadd.f32 %v1004_v23, %v1318_v2 }
  0xe5   :  { %v416_v28 = vpop.f32.mrf.mxu0  ;;  %v576_v29 = vpop.f32.mrf.mxu1 }
  0xe6   :  { %742 = vst.msk [vmem:[%s1643_s3 + $0x60] sm:$0xff] %vm729_vm1, %v677_v24  ;;  %774 = vst.msk [vmem:[%s1643_s3 + $0x160] sm:$0xff] %vm729_vm1, %v709_v25  ;;  %v680_v30 = vmax.f32 %v422_v26, 0.0  ;;  %v712_v31 = vmax.f32 %v582_v27, 0.0  ;;  %v417_v32 = vadd.f32 %v1318_v2, %v416_v28  ;;  %v577_v33 = vadd.f32 %v1318_v2, %v576_v29 }
  0xe7   :  { %v959_v34 = vpop.f32.mrf.mxu0  ;;  %v1007_v35 = vpop.f32.mrf.mxu1 }
  0xe8   :  { %745 = vst.msk [vmem:[%s1643_s3 + $0x78] sm:$0xff] %vm729_vm1, %v680_v30  ;;  %777 = vst.msk [vmem:[%s1643_s3 + $0x178] sm:$0xff] %vm729_vm1, %v712_v31  ;;  %v679_v36 = vmax.f32 %v417_v32, 0.0  ;;  %v711_v37 = vmax.f32 %v577_v33, 0.0  ;;  %v432_v38 = vadd.f32 %v959_v34, %v1318_v2  ;;  %v592_v39 = vadd.f32 %v1007_v35, %v1318_v2 }
  0xe9   :  { %v426_v40 = vpop.f32.mrf.mxu0  ;;  %v586_v41 = vpop.f32.mrf.mxu1 }
  0xea   :  { %744 = vst.msk [vmem:[%s1643_s3 + $0x70] sm:$0xff] %vm729_vm1, %v679_v36  ;;  %776 = vst.msk [vmem:[%s1643_s3 + $0x170] sm:$0xff] %vm729_vm1, %v711_v37  ;;  %v682_v42 = vmax.f32 %v432_v38, 0.0  ;;  %v714_v43 = vmax.f32 %v592_v39, 0.0  ;;  %v427_v44 = vadd.f32 %v1318_v2, %v426_v40  ;;  %v587_v45 = vadd.f32 %v1318_v2, %v586_v41 }
  0xeb   :  { %v962_v46 = vpop.f32.mrf.mxu0  ;;  %v1010_v47 = vpop.f32.mrf.mxu1 }
  0xec   :  { %747 = vst.msk [vmem:[%s1643_s3 + $0x88] sm:$0xff] %vm729_vm1, %v682_v42  ;;  %779 = vst.msk [vmem:[%s1643_s3 + $0x188] sm:$0xff] %vm729_vm1, %v714_v43  ;;  %v681_v48 = vmax.f32 %v427_v44, 0.0  ;;  %v713_v49 = vmax.f32 %v587_v45, 0.0  ;;  %v442_v50 = vadd.f32 %v962_v46, %v1318_v2  ;;  %v602_v51 = vadd.f32 %v1010_v47, %v1318_v2 }
  0xed   :  { %v436_v52 = vpop.f32.mrf.mxu0  ;;  %v596_v53 = vpop.f32.mrf.mxu1 }
  0xee   :  { %746 = vst.msk [vmem:[%s1643_s3 + $0x80] sm:$0xff] %vm729_vm1, %v681_v48  ;;  %778 = vst.msk [vmem:[%s1643_s3 + $0x180] sm:$0xff] %vm729_vm1, %v713_v49  ;;  %v684_v54 = vmax.f32 %v442_v50, 0.0  ;;  %v716_v55 = vmax.f32 %v602_v51, 0.0  ;;  %v437_v56 = vadd.f32 %v1318_v2, %v436_v52  ;;  %v597_v57 = vadd.f32 %v1318_v2, %v596_v53 }
  0xef   :  { %v965_v58 = vpop.f32.mrf.mxu0  ;;  %v1013_v59 = vpop.f32.mrf.mxu1 }
  0xf0   :  { %749 = vst.msk [vmem:[%s1643_s3 + $0x98] sm:$0xff] %vm729_vm1, %v684_v54  ;;  %781 = vst.msk [vmem:[%s1643_s3 + $0x198] sm:$0xff] %vm729_vm1, %v716_v55  ;;  %v683_v60 = vmax.f32 %v437_v56, 0.0  ;;  %v715_v61 = vmax.f32 %v597_v57, 0.0  ;;  %v452_v62 = vadd.f32 %v965_v58, %v1318_v2  ;;  %v612_v63 = vadd.f32 %v1013_v59, %v1318_v2 }
  0xf1   :  { %v446_v0 = vpop.f32.mrf.mxu0  ;;  %v606_v1 = vpop.f32.mrf.mxu1 }
  0xf2   :  { %748 = vst.msk [vmem:[%s1643_s3 + $0x90] sm:$0xff] %vm729_vm1, %v683_v60  ;;  %780 = vst.msk [vmem:[%s1643_s3 + $0x190] sm:$0xff] %vm729_vm1, %v715_v61  ;;  %v686_v3 = vmax.f32 %v452_v62, 0.0  ;;  %v718_v4 = vmax.f32 %v612_v63, 0.0  ;;  %v447_v5 = vadd.f32 %v1318_v2, %v446_v0  ;;  %v607_v6 = vadd.f32 %v1318_v2, %v606_v1 }
  0xf3   :  { %v968_v7 = vpop.f32.mrf.mxu0  ;;  %v1016_v8 = vpop.f32.mrf.mxu1 }
  0xf4   :  { %751 = vst.msk [vmem:[%s1643_s3 + $0xa8] sm:$0xff] %vm729_vm1, %v686_v3  ;;  %783 = vst.msk [vmem:[%s1643_s3 + $0x1a8] sm:$0xff] %vm729_vm1, %v718_v4  ;;  %v685_v9 = vmax.f32 %v447_v5, 0.0  ;;  %v717_v10 = vmax.f32 %v607_v6, 0.0  ;;  %v462_v11 = vadd.f32 %v968_v7, %v1318_v2  ;;  %v622_v12 = vadd.f32 %v1016_v8, %v1318_v2 }
  0xf5   :  { %v456_v13 = vpop.f32.mrf.mxu0  ;;  %v616_v14 = vpop.f32.mrf.mxu1 }
  0xf6   :  { %750 = vst.msk [vmem:[%s1643_s3 + $0xa0] sm:$0xff] %vm729_vm1, %v685_v9  ;;  %782 = vst.msk [vmem:[%s1643_s3 + $0x1a0] sm:$0xff] %vm729_vm1, %v717_v10  ;;  %v688_v15 = vmax.f32 %v462_v11, 0.0  ;;  %v720_v16 = vmax.f32 %v622_v12, 0.0  ;;  %v457_v17 = vadd.f32 %v1318_v2, %v456_v13  ;;  %v617_v18 = vadd.f32 %v1318_v2, %v616_v14 }
  0xf7   :  { %v971_v19 = vpop.f32.mrf.mxu0  ;;  %v1019_v20 = vpop.f32.mrf.mxu1 }
  0xf8   :  { %753 = vst.msk [vmem:[%s1643_s3 + $0xb8] sm:$0xff] %vm729_vm1, %v688_v15  ;;  %785 = vst.msk [vmem:[%s1643_s3 + $0x1b8] sm:$0xff] %vm729_vm1, %v720_v16  ;;  %v687_v21 = vmax.f32 %v457_v17, 0.0  ;;  %v719_v22 = vmax.f32 %v617_v18, 0.0  ;;  %v472_v23 = vadd.f32 %v971_v19, %v1318_v2  ;;  %v632_v24 = vadd.f32 %v1019_v20, %v1318_v2 }
  0xf9   :  { %v466_v25 = vpop.f32.mrf.mxu0  ;;  %v626_v26 = vpop.f32.mrf.mxu1 }
  0xfa   :  { %752 = vst.msk [vmem:[%s1643_s3 + $0xb0] sm:$0xff] %vm729_vm1, %v687_v21  ;;  %784 = vst.msk [vmem:[%s1643_s3 + $0x1b0] sm:$0xff] %vm729_vm1, %v719_v22  ;;  %v690_v27 = vmax.f32 %v472_v23, 0.0  ;;  %v722_v28 = vmax.f32 %v632_v24, 0.0  ;;  %v467_v29 = vadd.f32 %v1318_v2, %v466_v25  ;;  %v627_v30 = vadd.f32 %v1318_v2, %v626_v26 }
  0xfb   :  { %v974_v31 = vpop.f32.mrf.mxu0  ;;  %v1022_v32 = vpop.f32.mrf.mxu1 }
  0xfc   :  { %755 = vst.msk [vmem:[%s1643_s3 + $0xc8] sm:$0xff] %vm729_vm1, %v690_v27  ;;  %787 = vst.msk [vmem:[%s1643_s3 + $0x1c8] sm:$0xff] %vm729_vm1, %v722_v28  ;;  %v689_v33 = vmax.f32 %v467_v29, 0.0  ;;  %v721_v34 = vmax.f32 %v627_v30, 0.0  ;;  %v482_v35 = vadd.f32 %v974_v31, %v1318_v2  ;;  %v642_v36 = vadd.f32 %v1022_v32, %v1318_v2 }
  0xfd   :  { %v476_v37 = vpop.f32.mrf.mxu0  ;;  %v636_v38 = vpop.f32.mrf.mxu1 }
  0xfe   :  { %754 = vst.msk [vmem:[%s1643_s3 + $0xc0] sm:$0xff] %vm729_vm1, %v689_v33  ;;  %786 = vst.msk [vmem:[%s1643_s3 + $0x1c0] sm:$0xff] %vm729_vm1, %v721_v34  ;;  %v692_v39 = vmax.f32 %v482_v35, 0.0  ;;  %v724_v40 = vmax.f32 %v642_v36, 0.0  ;;  %v477_v41 = vadd.f32 %v1318_v2, %v476_v37  ;;  %v637_v42 = vadd.f32 %v1318_v2, %v636_v38 }
  0xff   :  { %v977_v43 = vpop.f32.mrf.mxu0  ;;  %v1025_v44 = vpop.f32.mrf.mxu1 }
 0x100   :  { %757 = vst.msk [vmem:[%s1643_s3 + $0xd8] sm:$0xff] %vm729_vm1, %v692_v39  ;;  %789 = vst.msk [vmem:[%s1643_s3 + $0x1d8] sm:$0xff] %vm729_vm1, %v724_v40  ;;  %v691_v45 = vmax.f32 %v477_v41, 0.0  ;;  %v723_v46 = vmax.f32 %v637_v42, 0.0  ;;  %v492_v47 = vadd.f32 %v977_v43, %v1318_v2  ;;  %v652_v48 = vadd.f32 %v1025_v44, %v1318_v2 }
 0x101   :  { %v486_v49 = vpop.f32.mrf.mxu0  ;;  %v646_v50 = vpop.f32.mrf.mxu1 }
 0x102   :  { %756 = vst.msk [vmem:[%s1643_s3 + $0xd0] sm:$0xff] %vm729_vm1, %v691_v45  ;;  %788 = vst.msk [vmem:[%s1643_s3 + $0x1d0] sm:$0xff] %vm729_vm1, %v723_v46  ;;  %v694_v51 = vmax.f32 %v492_v47, 0.0  ;;  %v726_v52 = vmax.f32 %v652_v48, 0.0  ;;  %v487_v53 = vadd.f32 %v1318_v2, %v486_v49  ;;  %v647_v54 = vadd.f32 %v1318_v2, %v646_v50 }
 0x103   :  { %v980_v55 = vpop.f32.mrf.mxu0  ;;  %v1028_v56 = vpop.f32.mrf.mxu1 }
 0x104   :  { %759 = vst.msk [vmem:[%s1643_s3 + $0xe8] sm:$0xff] %vm729_vm1, %v694_v51  ;;  %791 = vst.msk [vmem:[%s1643_s3 + $0x1e8] sm:$0xff] %vm729_vm1, %v726_v52  ;;  %v693_v57 = vmax.f32 %v487_v53, 0.0  ;;  %v725_v58 = vmax.f32 %v647_v54, 0.0  ;;  %v502_v59 = vadd.f32 %v980_v55, %v1318_v2  ;;  %v662_v60 = vadd.f32 %v1028_v56, %v1318_v2 }
 0x105   :  { %v496_v61 = vpop.f32.mrf.mxu0  ;;  %v656_v62 = vpop.f32.mrf.mxu1 }
 0x106   :  { %758 = vst.msk [vmem:[%s1643_s3 + $0xe0] sm:$0xff] %vm729_vm1, %v693_v57  ;;  %790 = vst.msk [vmem:[%s1643_s3 + $0x1e0] sm:$0xff] %vm729_vm1, %v725_v58  ;;  %v696_v63 = vmax.f32 %v502_v59, 0.0  ;;  %v728_v0 = vmax.f32 %v662_v60, 0.0  ;;  %v497_v1 = vadd.f32 %v1318_v2, %v496_v61  ;;  %v657_v3 = vadd.f32 %v1318_v2, %v656_v62 }
 0x108   :  { %761 = vst.msk [vmem:[%s1643_s3 + $0xf8] sm:$0xff] %vm729_vm1, %v696_v63  ;;  %793 = vst.msk [vmem:[%s1643_s3 + $0x1f8] sm:$0xff] %vm729_vm1, %v728_v0  ;;  %v695_v4 = vmax.f32 %v497_v1, 0.0  ;;  %v727_v5 = vmax.f32 %v657_v3, 0.0 }
 0x10a   :  { %760 = vst.msk [vmem:[%s1643_s3 + $0xf0] sm:$0xff] %vm729_vm1, %v695_v4  ;;  %792 = vst.msk [vmem:[%s1643_s3 + $0x1f0] sm:$0xff] %vm729_vm1, %v727_v5 }

// kernel: vae_forward.9
= control target key start
LH: loop header
LB: loop body
LE: loop exit
PB: predicated region body
PF: predicated region fallthrough
CT: control target
= control target key end

     0   :  { %vm455_vm0 = vcmask 261120   ;;  %s1126_s1 = inlined_call_operand.vmem [shape: f32[512,32], index: 1, kind: input, shape index: {}]   ;;  %s1127_s0 = inlined_call_operand.vmem [shape: f32[128,512], index: 0, kind: input, shape index: {}]   ;;  %s1128_s2 = inlined_call_operand.vmem [shape: f32[1,32], index: 2, kind: input, shape index: {}]   ;;  %s1129_s3 = inlined_call_operand.vmem [shape: f32[128,32], index: 3, kind: output, shape index: {}]  }
   0x1   :  { %v109_v0 = vld [vmem:[%s1126_s1 + $0xf8] sm:$0xff]  ;;  %v108_v4 = vld [vmem:[%s1126_s1 + $0xf0] sm:$0xff]  ;;  %v107_v8 = vld [vmem:[%s1126_s1 + $0xe8] sm:$0xff] }
   0x2   :  { %v141_v1 = vld [vmem:[%s1126_s1 + $0x1f8] sm:$0xff]  ;;  %477 = vmatprep.subr.mxu0 %v109_v0  ;;  %v140_v5 = vld [vmem:[%s1126_s1 + $0x1f0] sm:$0xff]  ;;  %v139_v9 = vld [vmem:[%s1126_s1 + $0x1e8] sm:$0xff] }
   0x3   :  { %v93_v2 = vld [vmem:[%s1126_s1 + $0x78] sm:$0xff]  ;;  %557 = vmatprep.subr.mxu1 %v141_v1  ;;  %v92_v6 = vld [vmem:[%s1126_s1 + $0x70] sm:$0xff]  ;;  %v91_v10 = vld [vmem:[%s1126_s1 + $0x68] sm:$0xff] }
   0x4   :  { %v125_v3 = vld [vmem:[%s1126_s1 + $0x178] sm:$0xff]  ;;  %478 = vmatpush3.msra.mxu0 %v93_v2  ;;  %v124_v7 = vld [vmem:[%s1126_s1 + $0x170] sm:$0xff]  ;;  %v123_v11 = vld [vmem:[%s1126_s1 + $0x168] sm:$0xff] }
   0x5   :  { %558 = vmatpush3.msra.mxu1 %v125_v3  ;;  %479 = vmatprep.subr.mxu0 %v108_v4  ;;  %v106_v12 = vld [vmem:[%s1126_s1 + $0xe0] sm:$0xff]  ;;  %v105_v16 = vld [vmem:[%s1126_s1 + $0xd8] sm:$0xff]  ;;  %v104_v20 = vld [vmem:[%s1126_s1 + $0xd0] sm:$0xff] }
   0x6   :  { %559 = vmatprep.subr.mxu1 %v140_v5  ;;  %480 = vmatpush3.msra.mxu0 %v92_v6  ;;  %v138_v13 = vld [vmem:[%s1126_s1 + $0x1e0] sm:$0xff]  ;;  %v137_v17 = vld [vmem:[%s1126_s1 + $0x1d8] sm:$0xff]  ;;  %v136_v21 = vld [vmem:[%s1126_s1 + $0x1d0] sm:$0xff] }
   0x7   :  { %560 = vmatpush3.msra.mxu1 %v124_v7  ;;  %481 = vmatprep.subr.mxu0 %v107_v8  ;;  %v90_v14 = vld [vmem:[%s1126_s1 + $0x60] sm:$0xff]  ;;  %v89_v18 = vld [vmem:[%s1126_s1 + $0x58] sm:$0xff]  ;;  %v88_v22 = vld [vmem:[%s1126_s1 + $0x50] sm:$0xff] }
   0x8   :  { %561 = vmatprep.subr.mxu1 %v139_v9  ;;  %v122_v15 = vld [vmem:[%s1126_s1 + $0x160] sm:$0xff]  ;;  %482 = vmatpush3.msra.mxu0 %v91_v10  ;;  %v121_v19 = vld [vmem:[%s1126_s1 + $0x158] sm:$0xff]  ;;  %v120_v23 = vld [vmem:[%s1126_s1 + $0x150] sm:$0xff] }
   0x9   :  { %562 = vmatpush3.msra.mxu1 %v123_v11  ;;  %483 = vmatprep.subr.mxu0 %v106_v12  ;;  %v103_v24 = vld [vmem:[%s1126_s1 + $0xc8] sm:$0xff]  ;;  %v102_v28 = vld [vmem:[%s1126_s1 + $0xc0] sm:$0xff]  ;;  %v101_v32 = vld [vmem:[%s1126_s1 + $0xb8] sm:$0xff] }
   0xa   :  { %563 = vmatprep.subr.mxu1 %v138_v13  ;;  %484 = vmatpush3.msra.mxu0 %v90_v14  ;;  %v135_v25 = vld [vmem:[%s1126_s1 + $0x1c8] sm:$0xff]  ;;  %v134_v29 = vld [vmem:[%s1126_s1 + $0x1c0] sm:$0xff]  ;;  %v133_v33 = vld [vmem:[%s1126_s1 + $0x1b8] sm:$0xff] }
   0xb   :  { %564 = vmatpush3.msra.mxu1 %v122_v15  ;;  %485 = vmatprep.subr.mxu0 %v105_v16  ;;  %v87_v26 = vld [vmem:[%s1126_s1 + $0x48] sm:$0xff]  ;;  %v86_v30 = vld [vmem:[%s1126_s1 + $0x40] sm:$0xff]  ;;  %v85_v34 = vld [vmem:[%s1126_s1 + $0x38] sm:$0xff] }
   0xc   :  { %565 = vmatprep.subr.mxu1 %v137_v17  ;;  %486 = vmatpush3.msra.mxu0 %v89_v18  ;;  %v119_v27 = vld [vmem:[%s1126_s1 + $0x148] sm:$0xff]  ;;  %v118_v31 = vld [vmem:[%s1126_s1 + $0x140] sm:$0xff]  ;;  %v117_v35 = vld [vmem:[%s1126_s1 + $0x138] sm:$0xff] }
   0xd   :  { %566 = vmatpush3.msra.mxu1 %v121_v19  ;;  %487 = vmatprep.subr.mxu0 %v104_v20  ;;  %v100_v36 = vld [vmem:[%s1126_s1 + $0xb0] sm:$0xff]  ;;  %v99_v40 = vld [vmem:[%s1126_s1 + $0xa8] sm:$0xff]  ;;  %v98_v44 = vld [vmem:[%s1126_s1 + $0xa0] sm:$0xff] }
   0xe   :  { %567 = vmatprep.subr.mxu1 %v136_v21  ;;  %488 = vmatpush3.msra.mxu0 %v88_v22  ;;  %v132_v37 = vld [vmem:[%s1126_s1 + $0x1b0] sm:$0xff]  ;;  %v131_v41 = vld [vmem:[%s1126_s1 + $0x1a8] sm:$0xff]  ;;  %v130_v45 = vld [vmem:[%s1126_s1 + $0x1a0] sm:$0xff] }
   0xf   :  { %568 = vmatpush3.msra.mxu1 %v120_v23  ;;  %489 = vmatprep.subr.mxu0 %v103_v24  ;;  %v84_v38 = vld [vmem:[%s1126_s1 + $0x30] sm:$0xff]  ;;  %v83_v42 = vld [vmem:[%s1126_s1 + $0x28] sm:$0xff]  ;;  %v82_v46 = vld [vmem:[%s1126_s1 + $0x20] sm:$0xff] }
  0x10   :  { %569 = vmatprep.subr.mxu1 %v135_v25  ;;  %490 = vmatpush3.msra.mxu0 %v87_v26  ;;  %v116_v39 = vld [vmem:[%s1126_s1 + $0x130] sm:$0xff]  ;;  %v115_v43 = vld [vmem:[%s1126_s1 + $0x128] sm:$0xff]  ;;  %v114_v47 = vld [vmem:[%s1126_s1 + $0x120] sm:$0xff] }
  0x11   :  { %570 = vmatpush3.msra.mxu1 %v119_v27  ;;  %491 = vmatprep.subr.mxu0 %v102_v28  ;;  %v97_v48 = vld [vmem:[%s1126_s1 + $0x98] sm:$0xff]  ;;  %v96_v52 = vld [vmem:[%s1126_s1 + $0x90] sm:$0xff]  ;;  %v95_v56 = vld [vmem:[%s1126_s1 + $0x88] sm:$0xff] }
  0x12   :  { %571 = vmatprep.subr.mxu1 %v134_v29  ;;  %492 = vmatpush3.msra.mxu0 %v86_v30  ;;  %v129_v49 = vld [vmem:[%s1126_s1 + $0x198] sm:$0xff]  ;;  %v128_v53 = vld [vmem:[%s1126_s1 + $0x190] sm:$0xff]  ;;  %v127_v57 = vld [vmem:[%s1126_s1 + $0x188] sm:$0xff] }
  0x13   :  { %572 = vmatpush3.msra.mxu1 %v118_v31  ;;  %493 = vmatprep.subr.mxu0 %v101_v32  ;;  %v81_v50 = vld [vmem:[%s1126_s1 + $0x18] sm:$0xff]  ;;  %v80_v54 = vld [vmem:[%s1126_s1 + $0x10] sm:$0xff]  ;;  %v79_v58 = vld [vmem:[%s1126_s1 + $0x8] sm:$0xff] }
  0x14   :  { %573 = vmatprep.subr.mxu1 %v133_v33  ;;  %494 = vmatpush3.msra.mxu0 %v85_v34  ;;  %v113_v51 = vld [vmem:[%s1126_s1 + $0x118] sm:$0xff]  ;;  %v112_v55 = vld [vmem:[%s1126_s1 + $0x110] sm:$0xff]  ;;  %v111_v59 = vld [vmem:[%s1126_s1 + $0x108] sm:$0xff] }
  0x15   :  { %574 = vmatpush3.msra.mxu1 %v117_v35  ;;  %495 = vmatprep.subr.mxu0 %v100_v36  ;;  %v94_v60 = vld [vmem:[%s1126_s1 + $0x80] sm:$0xff]  ;;  %v15_v63 = vld [vmem:[%s1127_s0 + $0x8] sm:$0xff]  ;;  %v17_v1 = vld [vmem:[%s1127_s0 + $0x18] sm:$0xff] }
  0x16   :  { %575 = vmatprep.subr.mxu1 %v132_v37  ;;  %496 = vmatpush3.msra.mxu0 %v84_v38  ;;  %v126_v61 = vld [vmem:[%s1126_s1 + $0x180] sm:$0xff]  ;;  %v16_v3 = vld [vmem:[%s1127_s0 + $0x10] sm:$0xff]  ;;  %v19_v4 = vld [vmem:[%s1127_s0 + $0x28] sm:$0xff] }
  0x17   :  { %576 = vmatpush3.msra.mxu1 %v116_v39  ;;  %497 = vmatprep.subr.mxu0 %v99_v40  ;;  %v78_v62 = vld [vmem:[%s1126_s1] sm:$0xff]  ;;  %v21_v5 = vld [vmem:[%s1127_s0 + $0x38] sm:$0xff]  ;;  %v20_v7 = vld [vmem:[%s1127_s0 + $0x30] sm:$0xff] }
  0x18   :  { %577 = vmatprep.subr.mxu1 %v131_v41  ;;  %498 = vmatpush3.msra.mxu0 %v83_v42  ;;  %v110_v0 = vld [vmem:[%s1126_s1 + $0x100] sm:$0xff]  ;;  %v23_v8 = vld [vmem:[%s1127_s0 + $0x48] sm:$0xff]  ;;  %v25_v9 = vld [vmem:[%s1127_s0 + $0x58] sm:$0xff] }
  0x19   :  { %578 = vmatpush3.msra.mxu1 %v115_v43  ;;  %499 = vmatprep.subr.mxu0 %v98_v44  ;;  %v14_v2 = vld [vmem:[%s1127_s0] sm:$0xff]  ;;  %v24_v11 = vld [vmem:[%s1127_s0 + $0x50] sm:$0xff]  ;;  %v27_v12 = vld [vmem:[%s1127_s0 + $0x68] sm:$0xff] }
  0x1a   :  { %579 = vmatprep.subr.mxu1 %v130_v45  ;;  %500 = vmatpush3.msra.mxu0 %v82_v46  ;;  %v18_v6 = vld [vmem:[%s1127_s0 + $0x20] sm:$0xff]  ;;  %v29_v13 = vld [vmem:[%s1127_s0 + $0x78] sm:$0xff]  ;;  %v28_v15 = vld [vmem:[%s1127_s0 + $0x70] sm:$0xff] }
  0x1b   :  { %580 = vmatpush3.msra.mxu1 %v114_v47  ;;  %501 = vmatprep.subr.mxu0 %v97_v48  ;;  %v22_v10 = vld [vmem:[%s1127_s0 + $0x40] sm:$0xff]  ;;  %v31_v16 = vld [vmem:[%s1127_s0 + $0x88] sm:$0xff]  ;;  %v33_v17 = vld [vmem:[%s1127_s0 + $0x98] sm:$0xff] }
  0x1c   :  { %581 = vmatprep.subr.mxu1 %v129_v49  ;;  %502 = vmatpush3.msra.mxu0 %v81_v50  ;;  %v26_v14 = vld [vmem:[%s1127_s0 + $0x60] sm:$0xff]  ;;  %v32_v19 = vld [vmem:[%s1127_s0 + $0x90] sm:$0xff]  ;;  %v35_v20 = vld [vmem:[%s1127_s0 + $0xa8] sm:$0xff] }
  0x1d   :  { %582 = vmatpush3.msra.mxu1 %v113_v51  ;;  %503 = vmatprep.subr.mxu0 %v96_v52  ;;  %v30_v18 = vld [vmem:[%s1127_s0 + $0x80] sm:$0xff]  ;;  %v37_v21 = vld [vmem:[%s1127_s0 + $0xb8] sm:$0xff]  ;;  %v36_v23 = vld [vmem:[%s1127_s0 + $0xb0] sm:$0xff] }
  0x1e   :  { %583 = vmatprep.subr.mxu1 %v128_v53  ;;  %504 = vmatpush3.msra.mxu0 %v80_v54  ;;  %v34_v22 = vld [vmem:[%s1127_s0 + $0xa0] sm:$0xff]  ;;  %v39_v24 = vld [vmem:[%s1127_s0 + $0xc8] sm:$0xff]  ;;  %v41_v25 = vld [vmem:[%s1127_s0 + $0xd8] sm:$0xff] }
  0x1f   :  { %584 = vmatpush3.msra.mxu1 %v112_v55  ;;  %505 = vmatprep.subr.mxu0 %v95_v56  ;;  %v38_v26 = vld [vmem:[%s1127_s0 + $0xc0] sm:$0xff]  ;;  %v40_v27 = vld [vmem:[%s1127_s0 + $0xd0] sm:$0xff]  ;;  %v43_v28 = vld [vmem:[%s1127_s0 + $0xe8] sm:$0xff] }
  0x20   :  { %585 = vmatprep.subr.mxu1 %v127_v57  ;;  %506 = vmatpush3.msra.mxu0 %v79_v58  ;;  %v45_v29 = vld [vmem:[%s1127_s0 + $0xf8] sm:$0xff]  ;;  %v42_v30 = vld [vmem:[%s1127_s0 + $0xe0] sm:$0xff]  ;;  %v44_v31 = vld [vmem:[%s1127_s0 + $0xf0] sm:$0xff] }
  0x21   :  { %586 = vmatpush3.msra.mxu1 %v111_v59  ;;  %507 = vmatprep.subr.mxu0 %v94_v60  ;;  %v47_v32 = vld [vmem:[%s1127_s0 + $0x108] sm:$0xff]  ;;  %v49_v33 = vld [vmem:[%s1127_s0 + $0x118] sm:$0xff]  ;;  %v46_v34 = vld [vmem:[%s1127_s0 + $0x100] sm:$0xff] }
  0x22   :  { %587 = vmatprep.subr.mxu1 %v126_v61  ;;  %508 = vmatpush3.msra.mxu0 %v78_v62  ;;  %v48_v35 = vld [vmem:[%s1127_s0 + $0x110] sm:$0xff]  ;;  %v51_v36 = vld [vmem:[%s1127_s0 + $0x128] sm:$0xff]  ;;  %v53_v37 = vld [vmem:[%s1127_s0 + $0x138] sm:$0xff] }
  0x23   :  { %213 = vmatprep.mubr.f32.mxu0 %v15_v63  ;;  %588 = vmatpush3.msra.mxu1 %v110_v0  ;;  %v50_v38 = vld [vmem:[%s1127_s0 + $0x120] sm:$0xff]  ;;  %v52_v39 = vld [vmem:[%s1127_s0 + $0x130] sm:$0xff]  ;;  %v55_v40 = vld [vmem:[%s1127_s0 + $0x148] sm:$0xff] }
  0x24   :  { %358 = vmatprep.mubr.f32.mxu1 %v17_v1  ;;  %214 = vmatmul.mubr.f32.vlgmr.msra.gmra.mxu0 %v14_v2  ;;  %v57_v41 = vld [vmem:[%s1127_s0 + $0x158] sm:$0xff]  ;;  %v54_v42 = vld [vmem:[%s1127_s0 + $0x140] sm:$0xff]  ;;  %v56_v43 = vld [vmem:[%s1127_s0 + $0x150] sm:$0xff] }
  0x25   :  { %359 = vmatmul.mubr.f32.vlgmr.msra.gmra.mxu1 %v16_v3  ;;  %218 = vmatprep.mubr.f32.mxu0 %v19_v4  ;;  %v59_v44 = vld [vmem:[%s1127_s0 + $0x168] sm:$0xff]  ;;  %v61_v45 = vld [vmem:[%s1127_s0 + $0x178] sm:$0xff]  ;;  %v58_v46 = vld [vmem:[%s1127_s0 + $0x160] sm:$0xff] }
  0x26   :  { %363 = vmatprep.mubr.f32.mxu1 %v21_v5  ;;  %v60_v47 = vld [vmem:[%s1127_s0 + $0x170] sm:$0xff]  ;;  %v63_v48 = vld [vmem:[%s1127_s0 + $0x188] sm:$0xff]  ;;  %v65_v49 = vld [vmem:[%s1127_s0 + $0x198] sm:$0xff] }
  0x27   :  { %v62_v50 = vld [vmem:[%s1127_s0 + $0x180] sm:$0xff]  ;;  %v64_v51 = vld [vmem:[%s1127_s0 + $0x190] sm:$0xff]  ;;  %v67_v52 = vld [vmem:[%s1127_s0 + $0x1a8] sm:$0xff] }
  0x28   :  { %219 = vmatmul.mubr.f32.gmra.mxu0 %v18_v6  ;;  %v69_v53 = vld [vmem:[%s1127_s0 + $0x1b8] sm:$0xff]  ;;  %v66_v54 = vld [vmem:[%s1127_s0 + $0x1a0] sm:$0xff]  ;;  %v68_v55 = vld [vmem:[%s1127_s0 + $0x1b0] sm:$0xff] }
  0x29   :  { %364 = vmatmul.mubr.f32.gmra.mxu1 %v20_v7  ;;  %223 = vmatprep.mubr.f32.mxu0 %v23_v8  ;;  %v71_v56 = vld [vmem:[%s1127_s0 + $0x1c8] sm:$0xff]  ;;  %v73_v57 = vld [vmem:[%s1127_s0 + $0x1d8] sm:$0xff]  ;;  %v70_v58 = vld [vmem:[%s1127_s0 + $0x1c0] sm:$0xff] }
  0x2a   :  { %368 = vmatprep.mubr.f32.mxu1 %v25_v9  ;;  %v72_v59 = vld [vmem:[%s1127_s0 + $0x1d0] sm:$0xff]  ;;  %v75_v60 = vld [vmem:[%s1127_s0 + $0x1e8] sm:$0xff]  ;;  %v77_v61 = vld [vmem:[%s1127_s0 + $0x1f8] sm:$0xff] }
  0x2b   :  { %v74_v62 = vld [vmem:[%s1127_s0 + $0x1e0] sm:$0xff]  ;;  %v76_v63 = vld [vmem:[%s1127_s0 + $0x1f0] sm:$0xff] }
  0x2c   :  { %224 = vmatmul.mubr.f32.gmra.mxu0 %v22_v10  ;;  %v1044_v2 = vld [vmem:[%s1128_s2] ss:$0 sm:$0xff] }
  0x2d   :  { %369 = vmatmul.mubr.f32.gmra.mxu1 %v24_v11  ;;  %228 = vmatprep.mubr.f32.mxu0 %v27_v12 }
  0x2e   :  { %373 = vmatprep.mubr.f32.mxu1 %v29_v13 }
  0x30   :  { %229 = vmatmul.mubr.f32.gmra.mxu0 %v26_v14 }
  0x31   :  { %374 = vmatmul.mubr.f32.gmra.mxu1 %v28_v15  ;;  %233 = vmatprep.mubr.f32.mxu0 %v31_v16 }
  0x32   :  { %378 = vmatprep.mubr.f32.mxu1 %v33_v17 }
  0x34   :  { %234 = vmatmul.mubr.f32.gmra.mxu0 %v30_v18 }
  0x35   :  { %379 = vmatmul.mubr.f32.gmra.mxu1 %v32_v19  ;;  %238 = vmatprep.mubr.f32.mxu0 %v35_v20 }
  0x36   :  { %383 = vmatprep.mubr.f32.mxu1 %v37_v21 }
  0x38   :  { %239 = vmatmul.mubr.f32.gmra.mxu0 %v34_v22 }
  0x39   :  { %384 = vmatmul.mubr.f32.gmra.mxu1 %v36_v23  ;;  %243 = vmatprep.mubr.f32.mxu0 %v39_v24 }
  0x3a   :  { %388 = vmatprep.mubr.f32.mxu1 %v41_v25 }
  0x3c   :  { %244 = vmatmul.mubr.f32.gmra.mxu0 %v38_v26 }
  0x3d   :  { %389 = vmatmul.mubr.f32.gmra.mxu1 %v40_v27  ;;  %248 = vmatprep.mubr.f32.mxu0 %v43_v28 }
  0x3e   :  { %393 = vmatprep.mubr.f32.mxu1 %v45_v29 }
  0x40   :  { %249 = vmatmul.mubr.f32.gmra.mxu0 %v42_v30 }
  0x41   :  { %394 = vmatmul.mubr.f32.gmra.mxu1 %v44_v31  ;;  %253 = vmatprep.mubr.f32.mxu0 %v47_v32 }
  0x42   :  { %398 = vmatprep.mubr.f32.mxu1 %v49_v33 }
  0x44   :  { %254 = vmatmul.mubr.f32.gmra.mxu0 %v46_v34 }
  0x45   :  { %399 = vmatmul.mubr.f32.gmra.mxu1 %v48_v35  ;;  %258 = vmatprep.mubr.f32.mxu0 %v51_v36 }
  0x46   :  { %403 = vmatprep.mubr.f32.mxu1 %v53_v37 }
  0x48   :  { %259 = vmatmul.mubr.f32.gmra.mxu0 %v50_v38 }
  0x49   :  { %404 = vmatmul.mubr.f32.gmra.mxu1 %v52_v39  ;;  %263 = vmatprep.mubr.f32.mxu0 %v55_v40 }
  0x4a   :  { %408 = vmatprep.mubr.f32.mxu1 %v57_v41 }
  0x4c   :  { %264 = vmatmul.mubr.f32.gmra.mxu0 %v54_v42 }
  0x4d   :  { %409 = vmatmul.mubr.f32.gmra.mxu1 %v56_v43  ;;  %268 = vmatprep.mubr.f32.mxu0 %v59_v44 }
  0x4e   :  { %413 = vmatprep.mubr.f32.mxu1 %v61_v45 }
  0x50   :  { %269 = vmatmul.mubr.f32.gmra.mxu0 %v58_v46 }
  0x51   :  { %414 = vmatmul.mubr.f32.gmra.mxu1 %v60_v47  ;;  %273 = vmatprep.mubr.f32.mxu0 %v63_v48 }
  0x52   :  { %418 = vmatprep.mubr.f32.mxu1 %v65_v49 }
  0x54   :  { %274 = vmatmul.mubr.f32.gmra.mxu0 %v62_v50 }
  0x55   :  { %419 = vmatmul.mubr.f32.gmra.mxu1 %v64_v51  ;;  %278 = vmatprep.mubr.f32.mxu0 %v67_v52 }
  0x56   :  { %423 = vmatprep.mubr.f32.mxu1 %v69_v53 }
  0x58   :  { %279 = vmatmul.mubr.f32.gmra.mxu0 %v66_v54 }
  0x59   :  { %424 = vmatmul.mubr.f32.gmra.mxu1 %v68_v55  ;;  %283 = vmatprep.mubr.f32.mxu0 %v71_v56 }
  0x5a   :  { %428 = vmatprep.mubr.f32.mxu1 %v73_v57 }
  0x5c   :  { %284 = vmatmul.mubr.f32.gmra.mxu0 %v70_v58 }
  0x5d   :  { %429 = vmatmul.mubr.f32.gmra.mxu1 %v72_v59  ;;  %288 = vmatprep.mubr.f32.mxu0 %v75_v60 }
  0x5e   :  { %433 = vmatprep.mubr.f32.mxu1 %v77_v61 }
  0x60   :  { %289 = vmatmul.mubr.f32.gmra.mxu0 %v74_v62 }
  0x61   :  { %434 = vmatmul.mubr.f32.gmra.mxu1 %v76_v63 }
  0xe4   :  { %v509_v0 = vpop.f32.mrf.mxu0 }
  0xe5   :  { %v589_v1 = vpop.f32.mrf.mxu1 }
  0xe6   :  { %v510_v3 = vpop.f32.mrf.mxu0 }
  0xe7   :  { %v590_v4 = vpop.f32.mrf.mxu1  ;;  %v511_v5 = vadd.f32 %v510_v3, %v509_v0 }
  0xe8   :  { %v512_v6 = vpop.f32.mrf.mxu0  ;;  %v591_v9 = vadd.f32 %v590_v4, %v589_v1 }
  0xe9   :  { %v592_v7 = vpop.f32.mrf.mxu1  ;;  %v216_v8 = vadd.f32 %v511_v5, %v1044_v2 }
  0xea   :  { %v513_v10 = vpop.f32.mrf.mxu0 }
  0xeb   :  { %v593_v11 = vpop.f32.mrf.mxu1  ;;  %v361_v12 = vadd.f32 %v591_v9, %v216_v8  ;;  %v514_v13 = vadd.f32 %v513_v10, %v512_v6 }
  0xec   :  { %v515_v14 = vpop.f32.mrf.mxu0  ;;  %v594_v18 = vadd.f32 %v593_v11, %v592_v7 }
  0xed   :  { %v595_v15 = vpop.f32.mrf.mxu1  ;;  %v439_v16 = vmax.f32 %v361_v12, 0.0  ;;  %v221_v17 = vadd.f32 %v514_v13, %v1044_v2 }
  0xee   :  { %v516_v19 = vpop.f32.mrf.mxu0 }
  0xef   :  { %v596_v20 = vpop.f32.mrf.mxu1  ;;  %456 = vst.msk [vmem:[%s1129_s3] sm:$0xff] %vm455_vm0, %v439_v16  ;;  %v366_v21 = vadd.f32 %v594_v18, %v221_v17  ;;  %v517_v22 = vadd.f32 %v516_v19, %v515_v14 }
  0xf0   :  { %v518_v23 = vpop.f32.mrf.mxu0  ;;  %v597_v27 = vadd.f32 %v596_v20, %v595_v15 }
  0xf1   :  { %v598_v24 = vpop.f32.mrf.mxu1  ;;  %v440_v25 = vmax.f32 %v366_v21, 0.0  ;;  %v226_v26 = vadd.f32 %v517_v22, %v1044_v2 }
  0xf2   :  { %v519_v28 = vpop.f32.mrf.mxu0 }
  0xf3   :  { %v599_v29 = vpop.f32.mrf.mxu1  ;;  %457 = vst.msk [vmem:[%s1129_s3 + $0x8] sm:$0xff] %vm455_vm0, %v440_v25  ;;  %v371_v30 = vadd.f32 %v597_v27, %v226_v26  ;;  %v520_v31 = vadd.f32 %v519_v28, %v518_v23 }
  0xf4   :  { %v521_v32 = vpop.f32.mrf.mxu0  ;;  %v600_v36 = vadd.f32 %v599_v29, %v598_v24 }
  0xf5   :  { %v601_v33 = vpop.f32.mrf.mxu1  ;;  %v441_v34 = vmax.f32 %v371_v30, 0.0  ;;  %v231_v35 = vadd.f32 %v520_v31, %v1044_v2 }
  0xf6   :  { %v522_v37 = vpop.f32.mrf.mxu0 }
  0xf7   :  { %v602_v38 = vpop.f32.mrf.mxu1  ;;  %458 = vst.msk [vmem:[%s1129_s3 + $0x10] sm:$0xff] %vm455_vm0, %v441_v34  ;;  %v376_v39 = vadd.f32 %v600_v36, %v231_v35  ;;  %v523_v40 = vadd.f32 %v522_v37, %v521_v32 }
  0xf8   :  { %v524_v41 = vpop.f32.mrf.mxu0  ;;  %v603_v45 = vadd.f32 %v602_v38, %v601_v33 }
  0xf9   :  { %v604_v42 = vpop.f32.mrf.mxu1  ;;  %v442_v43 = vmax.f32 %v376_v39, 0.0  ;;  %v236_v44 = vadd.f32 %v523_v40, %v1044_v2 }
  0xfa   :  { %v525_v46 = vpop.f32.mrf.mxu0 }
  0xfb   :  { %v605_v47 = vpop.f32.mrf.mxu1  ;;  %459 = vst.msk [vmem:[%s1129_s3 + $0x18] sm:$0xff] %vm455_vm0, %v442_v43  ;;  %v381_v48 = vadd.f32 %v603_v45, %v236_v44  ;;  %v526_v49 = vadd.f32 %v525_v46, %v524_v41 }
  0xfc   :  { %v527_v50 = vpop.f32.mrf.mxu0  ;;  %v606_v54 = vadd.f32 %v605_v47, %v604_v42 }
  0xfd   :  { %v607_v51 = vpop.f32.mrf.mxu1  ;;  %v443_v52 = vmax.f32 %v381_v48, 0.0  ;;  %v241_v53 = vadd.f32 %v526_v49, %v1044_v2 }
  0xfe   :  { %v528_v55 = vpop.f32.mrf.mxu0 }
  0xff   :  { %v608_v56 = vpop.f32.mrf.mxu1  ;;  %460 = vst.msk [vmem:[%s1129_s3 + $0x20] sm:$0xff] %vm455_vm0, %v443_v52  ;;  %v386_v57 = vadd.f32 %v606_v54, %v241_v53  ;;  %v529_v58 = vadd.f32 %v528_v55, %v527_v50 }
 0x100   :  { %v530_v59 = vpop.f32.mrf.mxu0  ;;  %v609_v63 = vadd.f32 %v608_v56, %v607_v51 }
 0x101   :  { %v610_v60 = vpop.f32.mrf.mxu1  ;;  %v444_v61 = vmax.f32 %v386_v57, 0.0  ;;  %v246_v62 = vadd.f32 %v529_v58, %v1044_v2 }
 0x102   :  { %v531_v0 = vpop.f32.mrf.mxu0 }
 0x103   :  { %v611_v1 = vpop.f32.mrf.mxu1  ;;  %461 = vst.msk [vmem:[%s1129_s3 + $0x28] sm:$0xff] %vm455_vm0, %v444_v61  ;;  %v391_v3 = vadd.f32 %v609_v63, %v246_v62  ;;  %v532_v4 = vadd.f32 %v531_v0, %v530_v59 }
 0x104   :  { %v533_v5 = vpop.f32.mrf.mxu0  ;;  %v612_v9 = vadd.f32 %v611_v1, %v610_v60 }
 0x105   :  { %v613_v6 = vpop.f32.mrf.mxu1  ;;  %v445_v7 = vmax.f32 %v391_v3, 0.0  ;;  %v251_v8 = vadd.f32 %v532_v4, %v1044_v2 }
 0x106   :  { %v534_v10 = vpop.f32.mrf.mxu0 }
 0x107   :  { %v614_v11 = vpop.f32.mrf.mxu1  ;;  %462 = vst.msk [vmem:[%s1129_s3 + $0x30] sm:$0xff] %vm455_vm0, %v445_v7  ;;  %v396_v12 = vadd.f32 %v612_v9, %v251_v8  ;;  %v535_v13 = vadd.f32 %v534_v10, %v533_v5 }
 0x108   :  { %v536_v14 = vpop.f32.mrf.mxu0  ;;  %v615_v18 = vadd.f32 %v614_v11, %v613_v6 }
 0x109   :  { %v616_v15 = vpop.f32.mrf.mxu1  ;;  %v446_v16 = vmax.f32 %v396_v12, 0.0  ;;  %v256_v17 = vadd.f32 %v535_v13, %v1044_v2 }
 0x10a   :  { %v537_v19 = vpop.f32.mrf.mxu0 }
 0x10b   :  { %v617_v20 = vpop.f32.mrf.mxu1  ;;  %463 = vst.msk [vmem:[%s1129_s3 + $0x38] sm:$0xff] %vm455_vm0, %v446_v16  ;;  %v401_v21 = vadd.f32 %v615_v18, %v256_v17  ;;  %v538_v22 = vadd.f32 %v537_v19, %v536_v14 }
 0x10c   :  { %v539_v23 = vpop.f32.mrf.mxu0  ;;  %v618_v27 = vadd.f32 %v617_v20, %v616_v15 }
 0x10d   :  { %v619_v24 = vpop.f32.mrf.mxu1  ;;  %v447_v25 = vmax.f32 %v401_v21, 0.0  ;;  %v261_v26 = vadd.f32 %v538_v22, %v1044_v2 }
 0x10e   :  { %v540_v28 = vpop.f32.mrf.mxu0 }
 0x10f   :  { %v620_v29 = vpop.f32.mrf.mxu1  ;;  %464 = vst.msk [vmem:[%s1129_s3 + $0x40] sm:$0xff] %vm455_vm0, %v447_v25  ;;  %v406_v30 = vadd.f32 %v618_v27, %v261_v26  ;;  %v541_v31 = vadd.f32 %v540_v28, %v539_v23 }
 0x110   :  { %v542_v32 = vpop.f32.mrf.mxu0  ;;  %v621_v36 = vadd.f32 %v620_v29, %v619_v24 }
 0x111   :  { %v622_v33 = vpop.f32.mrf.mxu1  ;;  %v448_v34 = vmax.f32 %v406_v30, 0.0  ;;  %v266_v35 = vadd.f32 %v541_v31, %v1044_v2 }
 0x112   :  { %v543_v37 = vpop.f32.mrf.mxu0 }
 0x113   :  { %v623_v38 = vpop.f32.mrf.mxu1  ;;  %465 = vst.msk [vmem:[%s1129_s3 + $0x48] sm:$0xff] %vm455_vm0, %v448_v34  ;;  %v411_v39 = vadd.f32 %v621_v36, %v266_v35  ;;  %v544_v40 = vadd.f32 %v543_v37, %v542_v32 }
 0x114   :  { %v545_v41 = vpop.f32.mrf.mxu0  ;;  %v624_v45 = vadd.f32 %v623_v38, %v622_v33 }
 0x115   :  { %v625_v42 = vpop.f32.mrf.mxu1  ;;  %v449_v43 = vmax.f32 %v411_v39, 0.0  ;;  %v271_v44 = vadd.f32 %v544_v40, %v1044_v2 }
 0x116   :  { %v546_v46 = vpop.f32.mrf.mxu0 }
 0x117   :  { %v626_v47 = vpop.f32.mrf.mxu1  ;;  %466 = vst.msk [vmem:[%s1129_s3 + $0x50] sm:$0xff] %vm455_vm0, %v449_v43  ;;  %v416_v48 = vadd.f32 %v624_v45, %v271_v44  ;;  %v547_v49 = vadd.f32 %v546_v46, %v545_v41 }
 0x118   :  { %v548_v50 = vpop.f32.mrf.mxu0  ;;  %v627_v54 = vadd.f32 %v626_v47, %v625_v42 }
 0x119   :  { %v628_v51 = vpop.f32.mrf.mxu1  ;;  %v450_v52 = vmax.f32 %v416_v48, 0.0  ;;  %v276_v53 = vadd.f32 %v547_v49, %v1044_v2 }
 0x11a   :  { %v549_v55 = vpop.f32.mrf.mxu0 }
 0x11b   :  { %v629_v56 = vpop.f32.mrf.mxu1  ;;  %467 = vst.msk [vmem:[%s1129_s3 + $0x58] sm:$0xff] %vm455_vm0, %v450_v52  ;;  %v421_v57 = vadd.f32 %v627_v54, %v276_v53  ;;  %v550_v58 = vadd.f32 %v549_v55, %v548_v50 }
 0x11c   :  { %v551_v59 = vpop.f32.mrf.mxu0  ;;  %v630_v63 = vadd.f32 %v629_v56, %v628_v51 }
 0x11d   :  { %v631_v60 = vpop.f32.mrf.mxu1  ;;  %v451_v61 = vmax.f32 %v421_v57, 0.0  ;;  %v281_v62 = vadd.f32 %v550_v58, %v1044_v2 }
 0x11e   :  { %v552_v0 = vpop.f32.mrf.mxu0 }
 0x11f   :  { %v632_v1 = vpop.f32.mrf.mxu1  ;;  %468 = vst.msk [vmem:[%s1129_s3 + $0x60] sm:$0xff] %vm455_vm0, %v451_v61  ;;  %v426_v3 = vadd.f32 %v630_v63, %v281_v62  ;;  %v553_v4 = vadd.f32 %v552_v0, %v551_v59 }
 0x120   :  { %v554_v5 = vpop.f32.mrf.mxu0  ;;  %v633_v9 = vadd.f32 %v632_v1, %v631_v60 }
 0x121   :  { %v634_v6 = vpop.f32.mrf.mxu1  ;;  %v452_v7 = vmax.f32 %v426_v3, 0.0  ;;  %v286_v8 = vadd.f32 %v553_v4, %v1044_v2 }
 0x122   :  { %v555_v10 = vpop.f32.mrf.mxu0 }
 0x123   :  { %v635_v11 = vpop.f32.mrf.mxu1  ;;  %469 = vst.msk [vmem:[%s1129_s3 + $0x68] sm:$0xff] %vm455_vm0, %v452_v7  ;;  %v431_v12 = vadd.f32 %v633_v9, %v286_v8  ;;  %v556_v13 = vadd.f32 %v555_v10, %v554_v5 }
 0x124   :  { %v636_v16 = vadd.f32 %v635_v11, %v634_v6 }
 0x125   :  { %v453_v14 = vmax.f32 %v431_v12, 0.0  ;;  %v291_v15 = vadd.f32 %v556_v13, %v1044_v2 }
 0x127   :  { %470 = vst.msk [vmem:[%s1129_s3 + $0x70] sm:$0xff] %vm455_vm0, %v453_v14  ;;  %v436_v17 = vadd.f32 %v636_v16, %v291_v15 }
 0x129   :  { %v454_v18 = vmax.f32 %v436_v17, 0.0 }
 0x12b   :  { %471 = vst.msk [vmem:[%s1129_s3 + $0x78] sm:$0xff] %vm455_vm0, %v454_v18 }

// kernel: vae_forward.10
= control target key start
LH: loop header
LB: loop body
LE: loop exit
PB: predicated region body
PF: predicated region fallthrough
CT: control target
= control target key end

     0   :  { %vm275_vm0 = vcmask 261120   ;;  %s652_s1 = inlined_call_operand.vmem [shape: f32[512,32], index: 1, kind: input, shape index: {}]   ;;  %s653_s0 = inlined_call_operand.vmem [shape: f32[32,512], index: 0, kind: input, shape index: {}]   ;;  %s654_s2 = inlined_call_operand.vmem [shape: f32[1,32], index: 2, kind: input, shape index: {}]   ;;  %s655_s3 = inlined_call_operand.vmem [shape: f32[32,32], index: 3, kind: output, shape index: {}]  }
   0x1   :  { %v61_v0 = vld [vmem:[%s652_s1 + $0xf8] sm:$0xff]  ;;  %v60_v4 = vld [vmem:[%s652_s1 + $0xf0] sm:$0xff]  ;;  %v59_v8 = vld [vmem:[%s652_s1 + $0xe8] sm:$0xff] }
   0x2   :  { %v93_v1 = vld [vmem:[%s652_s1 + $0x1f8] sm:$0xff]  ;;  %285 = vmatprep.subr.mxu0 %v61_v0  ;;  %v92_v5 = vld [vmem:[%s652_s1 + $0x1f0] sm:$0xff]  ;;  %v91_v9 = vld [vmem:[%s652_s1 + $0x1e8] sm:$0xff] }
   0x3   :  { %v45_v2 = vld [vmem:[%s652_s1 + $0x78] sm:$0xff]  ;;  %329 = vmatprep.subr.mxu1 %v93_v1  ;;  %v44_v6 = vld [vmem:[%s652_s1 + $0x70] sm:$0xff]  ;;  %v43_v10 = vld [vmem:[%s652_s1 + $0x68] sm:$0xff] }
   0x4   :  { %v77_v3 = vld [vmem:[%s652_s1 + $0x178] sm:$0xff]  ;;  %286 = vmatpush3.msra.mxu0 %v45_v2  ;;  %v76_v7 = vld [vmem:[%s652_s1 + $0x170] sm:$0xff]  ;;  %v75_v11 = vld [vmem:[%s652_s1 + $0x168] sm:$0xff] }
   0x5   :  { %330 = vmatpush3.msra.mxu1 %v77_v3  ;;  %287 = vmatprep.subr.mxu0 %v60_v4  ;;  %v58_v12 = vld [vmem:[%s652_s1 + $0xe0] sm:$0xff]  ;;  %v57_v16 = vld [vmem:[%s652_s1 + $0xd8] sm:$0xff]  ;;  %v56_v20 = vld [vmem:[%s652_s1 + $0xd0] sm:$0xff] }
   0x6   :  { %331 = vmatprep.subr.mxu1 %v92_v5  ;;  %288 = vmatpush3.msra.mxu0 %v44_v6  ;;  %v90_v13 = vld [vmem:[%s652_s1 + $0x1e0] sm:$0xff]  ;;  %v89_v17 = vld [vmem:[%s652_s1 + $0x1d8] sm:$0xff]  ;;  %v88_v21 = vld [vmem:[%s652_s1 + $0x1d0] sm:$0xff] }
   0x7   :  { %332 = vmatpush3.msra.mxu1 %v76_v7  ;;  %289 = vmatprep.subr.mxu0 %v59_v8  ;;  %v42_v14 = vld [vmem:[%s652_s1 + $0x60] sm:$0xff]  ;;  %v41_v18 = vld [vmem:[%s652_s1 + $0x58] sm:$0xff]  ;;  %v40_v22 = vld [vmem:[%s652_s1 + $0x50] sm:$0xff] }
   0x8   :  { %333 = vmatprep.subr.mxu1 %v91_v9  ;;  %v74_v15 = vld [vmem:[%s652_s1 + $0x160] sm:$0xff]  ;;  %290 = vmatpush3.msra.mxu0 %v43_v10  ;;  %v73_v19 = vld [vmem:[%s652_s1 + $0x158] sm:$0xff]  ;;  %v72_v23 = vld [vmem:[%s652_s1 + $0x150] sm:$0xff] }
   0x9   :  { %334 = vmatpush3.msra.mxu1 %v75_v11  ;;  %291 = vmatprep.subr.mxu0 %v58_v12  ;;  %v55_v24 = vld [vmem:[%s652_s1 + $0xc8] sm:$0xff]  ;;  %v54_v28 = vld [vmem:[%s652_s1 + $0xc0] sm:$0xff]  ;;  %v53_v32 = vld [vmem:[%s652_s1 + $0xb8] sm:$0xff] }
   0xa   :  { %335 = vmatprep.subr.mxu1 %v90_v13  ;;  %292 = vmatpush3.msra.mxu0 %v42_v14  ;;  %v87_v25 = vld [vmem:[%s652_s1 + $0x1c8] sm:$0xff]  ;;  %v86_v29 = vld [vmem:[%s652_s1 + $0x1c0] sm:$0xff]  ;;  %v85_v33 = vld [vmem:[%s652_s1 + $0x1b8] sm:$0xff] }
   0xb   :  { %336 = vmatpush3.msra.mxu1 %v74_v15  ;;  %293 = vmatprep.subr.mxu0 %v57_v16  ;;  %v39_v26 = vld [vmem:[%s652_s1 + $0x48] sm:$0xff]  ;;  %v38_v30 = vld [vmem:[%s652_s1 + $0x40] sm:$0xff]  ;;  %v37_v34 = vld [vmem:[%s652_s1 + $0x38] sm:$0xff] }
   0xc   :  { %337 = vmatprep.subr.mxu1 %v89_v17  ;;  %294 = vmatpush3.msra.mxu0 %v41_v18  ;;  %v71_v27 = vld [vmem:[%s652_s1 + $0x148] sm:$0xff]  ;;  %v70_v31 = vld [vmem:[%s652_s1 + $0x140] sm:$0xff]  ;;  %v69_v35 = vld [vmem:[%s652_s1 + $0x138] sm:$0xff] }
   0xd   :  { %338 = vmatpush3.msra.mxu1 %v73_v19  ;;  %295 = vmatprep.subr.mxu0 %v56_v20  ;;  %v52_v36 = vld [vmem:[%s652_s1 + $0xb0] sm:$0xff]  ;;  %v51_v40 = vld [vmem:[%s652_s1 + $0xa8] sm:$0xff]  ;;  %v50_v44 = vld [vmem:[%s652_s1 + $0xa0] sm:$0xff] }
   0xe   :  { %339 = vmatprep.subr.mxu1 %v88_v21  ;;  %296 = vmatpush3.msra.mxu0 %v40_v22  ;;  %v84_v37 = vld [vmem:[%s652_s1 + $0x1b0] sm:$0xff]  ;;  %v83_v41 = vld [vmem:[%s652_s1 + $0x1a8] sm:$0xff]  ;;  %v82_v45 = vld [vmem:[%s652_s1 + $0x1a0] sm:$0xff] }
   0xf   :  { %340 = vmatpush3.msra.mxu1 %v72_v23  ;;  %297 = vmatprep.subr.mxu0 %v55_v24  ;;  %v36_v38 = vld [vmem:[%s652_s1 + $0x30] sm:$0xff]  ;;  %v35_v42 = vld [vmem:[%s652_s1 + $0x28] sm:$0xff]  ;;  %v34_v46 = vld [vmem:[%s652_s1 + $0x20] sm:$0xff] }
  0x10   :  { %341 = vmatprep.subr.mxu1 %v87_v25  ;;  %298 = vmatpush3.msra.mxu0 %v39_v26  ;;  %v68_v39 = vld [vmem:[%s652_s1 + $0x130] sm:$0xff]  ;;  %v67_v43 = vld [vmem:[%s652_s1 + $0x128] sm:$0xff]  ;;  %v66_v47 = vld [vmem:[%s652_s1 + $0x120] sm:$0xff] }
  0x11   :  { %342 = vmatpush3.msra.mxu1 %v71_v27  ;;  %299 = vmatprep.subr.mxu0 %v54_v28  ;;  %v49_v48 = vld [vmem:[%s652_s1 + $0x98] sm:$0xff]  ;;  %v48_v52 = vld [vmem:[%s652_s1 + $0x90] sm:$0xff]  ;;  %v47_v56 = vld [vmem:[%s652_s1 + $0x88] sm:$0xff] }
  0x12   :  { %343 = vmatprep.subr.mxu1 %v86_v29  ;;  %300 = vmatpush3.msra.mxu0 %v38_v30  ;;  %v81_v49 = vld [vmem:[%s652_s1 + $0x198] sm:$0xff]  ;;  %v80_v53 = vld [vmem:[%s652_s1 + $0x190] sm:$0xff]  ;;  %v79_v57 = vld [vmem:[%s652_s1 + $0x188] sm:$0xff] }
  0x13   :  { %344 = vmatpush3.msra.mxu1 %v70_v31  ;;  %301 = vmatprep.subr.mxu0 %v53_v32  ;;  %v33_v50 = vld [vmem:[%s652_s1 + $0x18] sm:$0xff]  ;;  %v32_v54 = vld [vmem:[%s652_s1 + $0x10] sm:$0xff]  ;;  %v31_v58 = vld [vmem:[%s652_s1 + $0x8] sm:$0xff] }
  0x14   :  { %345 = vmatprep.subr.mxu1 %v85_v33  ;;  %302 = vmatpush3.msra.mxu0 %v37_v34  ;;  %v65_v51 = vld [vmem:[%s652_s1 + $0x118] sm:$0xff]  ;;  %v64_v55 = vld [vmem:[%s652_s1 + $0x110] sm:$0xff]  ;;  %v63_v59 = vld [vmem:[%s652_s1 + $0x108] sm:$0xff] }
  0x15   :  { %346 = vmatpush3.msra.mxu1 %v69_v35  ;;  %303 = vmatprep.subr.mxu0 %v52_v36  ;;  %v46_v60 = vld [vmem:[%s652_s1 + $0x80] sm:$0xff]  ;;  %v15_v63 = vld [vmem:[%s653_s0 + $0x8] sm:$0xff]  ;;  %v17_v1 = vld [vmem:[%s653_s0 + $0x18] sm:$0xff] }
  0x16   :  { %347 = vmatprep.subr.mxu1 %v84_v37  ;;  %304 = vmatpush3.msra.mxu0 %v36_v38  ;;  %v78_v61 = vld [vmem:[%s652_s1 + $0x180] sm:$0xff]  ;;  %v16_v3 = vld [vmem:[%s653_s0 + $0x10] sm:$0xff]  ;;  %v19_v4 = vld [vmem:[%s653_s0 + $0x28] sm:$0xff] }
  0x17   :  { %348 = vmatpush3.msra.mxu1 %v68_v39  ;;  %305 = vmatprep.subr.mxu0 %v51_v40  ;;  %v30_v62 = vld [vmem:[%s652_s1] sm:$0xff]  ;;  %v21_v5 = vld [vmem:[%s653_s0 + $0x38] sm:$0xff]  ;;  %v20_v7 = vld [vmem:[%s653_s0 + $0x30] sm:$0xff] }
  0x18   :  { %349 = vmatprep.subr.mxu1 %v83_v41  ;;  %306 = vmatpush3.msra.mxu0 %v35_v42  ;;  %v62_v0 = vld [vmem:[%s652_s1 + $0x100] sm:$0xff]  ;;  %v23_v8 = vld [vmem:[%s653_s0 + $0x48] sm:$0xff]  ;;  %v25_v9 = vld [vmem:[%s653_s0 + $0x58] sm:$0xff] }
  0x19   :  { %350 = vmatpush3.msra.mxu1 %v67_v43  ;;  %307 = vmatprep.subr.mxu0 %v50_v44  ;;  %v14_v2 = vld [vmem:[%s653_s0] sm:$0xff]  ;;  %v24_v11 = vld [vmem:[%s653_s0 + $0x50] sm:$0xff]  ;;  %v27_v12 = vld [vmem:[%s653_s0 + $0x68] sm:$0xff] }
  0x1a   :  { %351 = vmatprep.subr.mxu1 %v82_v45  ;;  %308 = vmatpush3.msra.mxu0 %v34_v46  ;;  %v18_v6 = vld [vmem:[%s653_s0 + $0x20] sm:$0xff]  ;;  %v29_v13 = vld [vmem:[%s653_s0 + $0x78] sm:$0xff]  ;;  %v28_v15 = vld [vmem:[%s653_s0 + $0x70] sm:$0xff] }
  0x1b   :  { %352 = vmatpush3.msra.mxu1 %v66_v47  ;;  %309 = vmatprep.subr.mxu0 %v49_v48  ;;  %v22_v10 = vld [vmem:[%s653_s0 + $0x40] sm:$0xff] }
  0x1c   :  { %353 = vmatprep.subr.mxu1 %v81_v49  ;;  %310 = vmatpush3.msra.mxu0 %v33_v50  ;;  %v26_v14 = vld [vmem:[%s653_s0 + $0x60] sm:$0xff] }
  0x1d   :  { %354 = vmatpush3.msra.mxu1 %v65_v51  ;;  %311 = vmatprep.subr.mxu0 %v48_v52  ;;  %v284_v18 = vld [vmem:[%s654_s2] ss:$0 sm:$0xff] }
  0x1e   :  { %355 = vmatprep.subr.mxu1 %v80_v53  ;;  %312 = vmatpush3.msra.mxu0 %v32_v54 }
  0x1f   :  { %356 = vmatpush3.msra.mxu1 %v64_v55  ;;  %313 = vmatprep.subr.mxu0 %v47_v56 }
  0x20   :  { %357 = vmatprep.subr.mxu1 %v79_v57  ;;  %314 = vmatpush3.msra.mxu0 %v31_v58 }
  0x21   :  { %358 = vmatpush3.msra.mxu1 %v63_v59  ;;  %315 = vmatprep.subr.mxu0 %v46_v60 }
  0x22   :  { %359 = vmatprep.subr.mxu1 %v78_v61  ;;  %316 = vmatpush3.msra.mxu0 %v30_v62 }
  0x23   :  { %165 = vmatprep.mubr.f32.mxu0 %v15_v63  ;;  %360 = vmatpush3.msra.mxu1 %v62_v0 }
  0x24   :  { %250 = vmatprep.mubr.f32.mxu1 %v17_v1  ;;  %166 = vmatmul.mubr.f32.vlgmr.msra.gmra.mxu0 %v14_v2 }
  0x25   :  { %251 = vmatmul.mubr.f32.vlgmr.msra.gmra.mxu1 %v16_v3  ;;  %170 = vmatprep.mubr.f32.mxu0 %v19_v4 }
  0x26   :  { %255 = vmatprep.mubr.f32.mxu1 %v21_v5 }
  0x28   :  { %171 = vmatmul.mubr.f32.gmra.mxu0 %v18_v6 }
  0x29   :  { %256 = vmatmul.mubr.f32.gmra.mxu1 %v20_v7  ;;  %175 = vmatprep.mubr.f32.mxu0 %v23_v8 }
  0x2a   :  { %260 = vmatprep.mubr.f32.mxu1 %v25_v9 }
  0x2c   :  { %176 = vmatmul.mubr.f32.gmra.mxu0 %v22_v10 }
  0x2d   :  { %261 = vmatmul.mubr.f32.gmra.mxu1 %v24_v11  ;;  %180 = vmatprep.mubr.f32.mxu0 %v27_v12 }
  0x2e   :  { %265 = vmatprep.mubr.f32.mxu1 %v29_v13 }
  0x30   :  { %181 = vmatmul.mubr.f32.gmra.mxu0 %v26_v14 }
  0x31   :  { %266 = vmatmul.mubr.f32.gmra.mxu1 %v28_v15 }
  0xe4   :  { %v317_v16 = vpop.f32.mrf.mxu0 }
  0xe5   :  { %v361_v17 = vpop.f32.mrf.mxu1 }
  0xe6   :  { %v318_v19 = vpop.f32.mrf.mxu0 }
  0xe7   :  { %v362_v20 = vpop.f32.mrf.mxu1  ;;  %v319_v21 = vadd.f32 %v318_v19, %v317_v16 }
  0xe8   :  { %v320_v22 = vpop.f32.mrf.mxu0  ;;  %v363_v25 = vadd.f32 %v362_v20, %v361_v17 }
  0xe9   :  { %v364_v23 = vpop.f32.mrf.mxu1  ;;  %v168_v24 = vadd.f32 %v319_v21, %v284_v18 }
  0xea   :  { %v321_v26 = vpop.f32.mrf.mxu0 }
  0xeb   :  { %v365_v27 = vpop.f32.mrf.mxu1  ;;  %v253_v28 = vadd.f32 %v363_v25, %v168_v24  ;;  %v322_v29 = vadd.f32 %v321_v26, %v320_v22 }
  0xec   :  { %v323_v30 = vpop.f32.mrf.mxu0  ;;  %v366_v34 = vadd.f32 %v365_v27, %v364_v23 }
  0xed   :  { %v367_v31 = vpop.f32.mrf.mxu1  ;;  %v271_v32 = vmax.f32 %v253_v28, 0.0  ;;  %v173_v33 = vadd.f32 %v322_v29, %v284_v18 }
  0xee   :  { %v324_v35 = vpop.f32.mrf.mxu0 }
  0xef   :  { %v368_v36 = vpop.f32.mrf.mxu1  ;;  %276 = vst.msk [vmem:[%s655_s3] sm:$0xff] %vm275_vm0, %v271_v32  ;;  %v258_v37 = vadd.f32 %v366_v34, %v173_v33  ;;  %v325_v38 = vadd.f32 %v324_v35, %v323_v30 }
  0xf0   :  { %v326_v39 = vpop.f32.mrf.mxu0  ;;  %v369_v43 = vadd.f32 %v368_v36, %v367_v31 }
  0xf1   :  { %v370_v40 = vpop.f32.mrf.mxu1  ;;  %v272_v41 = vmax.f32 %v258_v37, 0.0  ;;  %v178_v42 = vadd.f32 %v325_v38, %v284_v18 }
  0xf2   :  { %v327_v44 = vpop.f32.mrf.mxu0 }
  0xf3   :  { %v371_v45 = vpop.f32.mrf.mxu1  ;;  %277 = vst.msk [vmem:[%s655_s3 + $0x8] sm:$0xff] %vm275_vm0, %v272_v41  ;;  %v263_v46 = vadd.f32 %v369_v43, %v178_v42  ;;  %v328_v47 = vadd.f32 %v327_v44, %v326_v39 }
  0xf4   :  { %v372_v50 = vadd.f32 %v371_v45, %v370_v40 }
  0xf5   :  { %v273_v48 = vmax.f32 %v263_v46, 0.0  ;;  %v183_v49 = vadd.f32 %v328_v47, %v284_v18 }
  0xf7   :  { %278 = vst.msk [vmem:[%s655_s3 + $0x10] sm:$0xff] %vm275_vm0, %v273_v48  ;;  %v268_v51 = vadd.f32 %v372_v50, %v183_v49 }
  0xf9   :  { %v274_v52 = vmax.f32 %v268_v51, 0.0 }
  0xfb   :  { %279 = vst.msk [vmem:[%s655_s3 + $0x18] sm:$0xff] %vm275_vm0, %v274_v52 }

// kernel: vae_forward.11
= control target key start
LH: loop header
LB: loop body
LE: loop exit
PB: predicated region body
PF: predicated region fallthrough
CT: control target
= control target key end

     0   :  { %16 = vsyncpa [#allocation3], 0  ;;  %s1505_s0 = inlined_call_operand.vmem [shape: f32[2,512], index: 0, kind: input, shape index: {}]   ;;  %s1506_s1 = inlined_call_operand.vmem [shape: f32[512,256], index: 1, kind: input, shape index: {}]   ;;  %s1507_s2 = inlined_call_operand.vmem [shape: f32[1,256], index: 2, kind: input, shape index: {}]   ;;  %s1508_s3 = inlined_call_operand.vmem [shape: f32[256,256], index: 3, kind: input, shape index: {}]   ;;  %s1509_s4 = inlined_call_operand.vmem [shape: f32[1,256], index: 4, kind: input, shape index: {}]   ;;  %s1510_s5 = inlined_call_operand.vmem [shape: f32[256,20], index: 5, kind: input, shape index: {}]   ;;  %s1511_s6 = inlined_call_operand.vmem [shape: f32[1,20], index: 6, kind: input, shape index: {}]   ;;  %s1512_s7 = inlined_call_operand.vmem [shape: f32[2,10], index: 7, kind: input, shape index: {}]   ;;  %s1513_s8 = inlined_call_operand.hbm [shape: f32[2,10], index: 8, kind: output, shape index: {0}]   ;;  %s1514_s9 = inlined_call_operand.hbm [shape: f32[2,10], index: 9, kind: output, shape index: {1}]   ;;  %s1515_s10 = inlined_call_operand.vmem [shape: f32[2,10], index: 10, kind: output, shape index: {2}]  }
   0x1   :  { %v66_v0 = vld [vmem:[%s1506_s1 + $0xf8] sm:$0xff]  ;;  %v65_v2 = vld [vmem:[%s1506_s1 + $0xf0] sm:$0xff]  ;;  %v64_v4 = vld [vmem:[%s1506_s1 + $0xe8] sm:$0xff] }
   0x2   :  { %v130_v1 = vld [vmem:[%s1506_s1 + $0x2f8] sm:$0xff]  ;;  %197 = vmatprep.subr.mxu0 %v66_v0  ;;  %v129_v3 = vld [vmem:[%s1506_s1 + $0x2f0] sm:$0xff]  ;;  %v128_v5 = vld [vmem:[%s1506_s1 + $0x2e8] sm:$0xff] }
   0x3   :  { %268 = vmatprep.subr.mxu1 %v130_v1  ;;  %198 = vmatpush1.msra.mxu0 %v65_v2  ;;  %v63_v6 = vld [vmem:[%s1506_s1 + $0xe0] sm:$0xff]  ;;  %v62_v8 = vld [vmem:[%s1506_s1 + $0xd8] sm:$0xff]  ;;  %v61_v10 = vld [vmem:[%s1506_s1 + $0xd0] sm:$0xff] }
   0x4   :  { %269 = vmatpush1.msra.mxu1 %v129_v3  ;;  %v127_v7 = vld [vmem:[%s1506_s1 + $0x2e0] sm:$0xff]  ;;  %199 = vmatprep.subr.mxu0 %v64_v4  ;;  %v126_v9 = vld [vmem:[%s1506_s1 + $0x2d8] sm:$0xff]  ;;  %v125_v11 = vld [vmem:[%s1506_s1 + $0x2d0] sm:$0xff] }
   0x5   :  { %270 = vmatprep.subr.mxu1 %v128_v5  ;;  %200 = vmatpush1.msra.mxu0 %v63_v6  ;;  %v60_v12 = vld [vmem:[%s1506_s1 + $0xc8] sm:$0xff]  ;;  %v59_v14 = vld [vmem:[%s1506_s1 + $0xc0] sm:$0xff]  ;;  %v58_v16 = vld [vmem:[%s1506_s1 + $0xb8] sm:$0xff] }
   0x6   :  { %271 = vmatpush1.msra.mxu1 %v127_v7  ;;  %v124_v13 = vld [vmem:[%s1506_s1 + $0x2c8] sm:$0xff]  ;;  %201 = vmatprep.subr.mxu0 %v62_v8  ;;  %v123_v15 = vld [vmem:[%s1506_s1 + $0x2c0] sm:$0xff]  ;;  %v122_v17 = vld [vmem:[%s1506_s1 + $0x2b8] sm:$0xff] }
   0x7   :  { %272 = vmatprep.subr.mxu1 %v126_v9  ;;  %202 = vmatpush1.msra.mxu0 %v61_v10  ;;  %v57_v18 = vld [vmem:[%s1506_s1 + $0xb0] sm:$0xff]  ;;  %v56_v20 = vld [vmem:[%s1506_s1 + $0xa8] sm:$0xff]  ;;  %v55_v22 = vld [vmem:[%s1506_s1 + $0xa0] sm:$0xff] }
   0x8   :  { %273 = vmatpush1.msra.mxu1 %v125_v11  ;;  %203 = vmatprep.subr.mxu0 %v60_v12  ;;  %v121_v19 = vld [vmem:[%s1506_s1 + $0x2b0] sm:$0xff]  ;;  %v120_v21 = vld [vmem:[%s1506_s1 + $0x2a8] sm:$0xff]  ;;  %v119_v23 = vld [vmem:[%s1506_s1 + $0x2a0] sm:$0xff] }
   0x9   :  { %274 = vmatprep.subr.mxu1 %v124_v13  ;;  %204 = vmatpush1.msra.mxu0 %v59_v14  ;;  %v54_v24 = vld [vmem:[%s1506_s1 + $0x98] sm:$0xff]  ;;  %v53_v26 = vld [vmem:[%s1506_s1 + $0x90] sm:$0xff]  ;;  %v52_v28 = vld [vmem:[%s1506_s1 + $0x88] sm:$0xff] }
   0xa   :  { %275 = vmatpush1.msra.mxu1 %v123_v15  ;;  %205 = vmatprep.subr.mxu0 %v58_v16  ;;  %v118_v25 = vld [vmem:[%s1506_s1 + $0x298] sm:$0xff]  ;;  %v117_v27 = vld [vmem:[%s1506_s1 + $0x290] sm:$0xff]  ;;  %v116_v29 = vld [vmem:[%s1506_s1 + $0x288] sm:$0xff] }
   0xb   :  { %276 = vmatprep.subr.mxu1 %v122_v17  ;;  %206 = vmatpush1.msra.mxu0 %v57_v18  ;;  %v51_v30 = vld [vmem:[%s1506_s1 + $0x80] sm:$0xff]  ;;  %v50_v32 = vld [vmem:[%s1506_s1 + $0x78] sm:$0xff]  ;;  %v49_v34 = vld [vmem:[%s1506_s1 + $0x70] sm:$0xff] }
   0xc   :  { %277 = vmatpush1.msra.mxu1 %v121_v19  ;;  %207 = vmatprep.subr.mxu0 %v56_v20  ;;  %v115_v31 = vld [vmem:[%s1506_s1 + $0x280] sm:$0xff]  ;;  %v114_v33 = vld [vmem:[%s1506_s1 + $0x278] sm:$0xff]  ;;  %v113_v35 = vld [vmem:[%s1506_s1 + $0x270] sm:$0xff] }
   0xd   :  { %278 = vmatprep.subr.mxu1 %v120_v21  ;;  %208 = vmatpush1.msra.mxu0 %v55_v22  ;;  %v48_v36 = vld [vmem:[%s1506_s1 + $0x68] sm:$0xff]  ;;  %v47_v38 = vld [vmem:[%s1506_s1 + $0x60] sm:$0xff]  ;;  %v46_v40 = vld [vmem:[%s1506_s1 + $0x58] sm:$0xff] }
   0xe   :  { %279 = vmatpush1.msra.mxu1 %v119_v23  ;;  %209 = vmatprep.subr.mxu0 %v54_v24  ;;  %v112_v37 = vld [vmem:[%s1506_s1 + $0x268] sm:$0xff]  ;;  %v111_v39 = vld [vmem:[%s1506_s1 + $0x260] sm:$0xff]  ;;  %v110_v41 = vld [vmem:[%s1506_s1 + $0x258] sm:$0xff] }
   0xf   :  { %280 = vmatprep.subr.mxu1 %v118_v25  ;;  %210 = vmatpush1.msra.mxu0 %v53_v26  ;;  %v45_v42 = vld [vmem:[%s1506_s1 + $0x50] sm:$0xff]  ;;  %v44_v44 = vld [vmem:[%s1506_s1 + $0x48] sm:$0xff]  ;;  %v43_v46 = vld [vmem:[%s1506_s1 + $0x40] sm:$0xff] }
  0x10   :  { %281 = vmatpush1.msra.mxu1 %v117_v27  ;;  %211 = vmatprep.subr.mxu0 %v52_v28  ;;  %v109_v43 = vld [vmem:[%s1506_s1 + $0x250] sm:$0xff]  ;;  %v108_v45 = vld [vmem:[%s1506_s1 + $0x248] sm:$0xff]  ;;  %v107_v47 = vld [vmem:[%s1506_s1 + $0x240] sm:$0xff] }
  0x11   :  { %282 = vmatprep.subr.mxu1 %v116_v29  ;;  %212 = vmatpush1.msra.mxu0 %v51_v30  ;;  %v42_v48 = vld [vmem:[%s1506_s1 + $0x38] sm:$0xff]  ;;  %v41_v50 = vld [vmem:[%s1506_s1 + $0x30] sm:$0xff]  ;;  %v40_v52 = vld [vmem:[%s1506_s1 + $0x28] sm:$0xff]  ;;  %v165_v30 = vlaneseq }
  0x12   :  { %283 = vmatpush1.msra.mxu1 %v115_v31  ;;  %213 = vmatprep.subr.mxu0 %v50_v32  ;;  %v106_v49 = vld [vmem:[%s1506_s1 + $0x238] sm:$0xff]  ;;  %v105_v51 = vld [vmem:[%s1506_s1 + $0x230] sm:$0xff]  ;;  %v104_v53 = vld [vmem:[%s1506_s1 + $0x228] sm:$0xff]  ;;  %v741_v31 = vmov 1983009808  }
  0x13   :  { %284 = vmatprep.subr.mxu1 %v114_v33  ;;  %214 = vmatpush1.msra.mxu0 %v49_v34  ;;  %v39_v54 = vld [vmem:[%s1506_s1 + $0x20] sm:$0xff]  ;;  %v38_v56 = vld [vmem:[%s1506_s1 + $0x18] sm:$0xff]  ;;  %v37_v58 = vld [vmem:[%s1506_s1 + $0x10] sm:$0xff]  ;;  %v178_v32 = vunpack.c.l.s4 %v741_v31 }
  0x14   :  { %285 = vmatpush1.msra.mxu1 %v113_v35  ;;  %215 = vmatprep.subr.mxu0 %v48_v36  ;;  %v103_v55 = vld [vmem:[%s1506_s1 + $0x220] sm:$0xff]  ;;  %v102_v57 = vld [vmem:[%s1506_s1 + $0x218] sm:$0xff]  ;;  %v101_v59 = vld [vmem:[%s1506_s1 + $0x210] sm:$0xff] }
  0x15   :  { %286 = vmatprep.subr.mxu1 %v112_v37  ;;  %216 = vmatpush1.msra.mxu0 %v47_v38  ;;  %v36_v60 = vld [vmem:[%s1506_s1 + $0x8] sm:$0xff]  ;;  %v35_v62 = vld [vmem:[%s1506_s1] sm:$0xff]  ;;  %v98_v0 = vld [vmem:[%s1506_s1 + $0x1f8] sm:$0xff] }
  0x16   :  { %287 = vmatpush1.msra.mxu1 %v111_v39  ;;  %217 = vmatprep.subr.mxu0 %v46_v40  ;;  %v100_v61 = vld [vmem:[%s1506_s1 + $0x208] sm:$0xff]  ;;  %v99_v63 = vld [vmem:[%s1506_s1 + $0x200] sm:$0xff]  ;;  %v162_v1 = vld [vmem:[%s1506_s1 + $0x3f8] sm:$0xff] }
  0x17   :  { %288 = vmatprep.subr.mxu1 %v110_v41  ;;  %218 = vmatpush1.msra.mxu0 %v45_v42  ;;  %v97_v2 = vld [vmem:[%s1506_s1 + $0x1f0] sm:$0xff]  ;;  %v96_v4 = vld [vmem:[%s1506_s1 + $0x1e8] sm:$0xff]  ;;  %v95_v6 = vld [vmem:[%s1506_s1 + $0x1e0] sm:$0xff]  ;;  %v1107_v41 = vshrl.u32 %v165_v30, 7  ;;  %v179_v42 = vunpack.c.0.s8 %v178_v32 }
  0x18   :  { %289 = vmatpush1.msra.mxu1 %v109_v43  ;;  %219 = vmatprep.subr.mxu0 %v44_v44  ;;  %v161_v3 = vld [vmem:[%s1506_s1 + $0x3f0] sm:$0xff]  ;;  %v160_v5 = vld [vmem:[%s1506_s1 + $0x3e8] sm:$0xff]  ;;  %v159_v7 = vld [vmem:[%s1506_s1 + $0x3e0] sm:$0xff] }
  0x19   :  { %290 = vmatprep.subr.mxu1 %v108_v45  ;;  %220 = vmatpush1.msra.mxu0 %v43_v46  ;;  %v94_v8 = vld [vmem:[%s1506_s1 + $0x1d8] sm:$0xff]  ;;  %v93_v10 = vld [vmem:[%s1506_s1 + $0x1d0] sm:$0xff]  ;;  %v92_v12 = vld [vmem:[%s1506_s1 + $0x1c8] sm:$0xff] }
  0x1a   :  { %291 = vmatpush1.msra.mxu1 %v107_v47  ;;  %221 = vmatprep.subr.mxu0 %v42_v48  ;;  %v158_v9 = vld [vmem:[%s1506_s1 + $0x3d8] sm:$0xff]  ;;  %v157_v11 = vld [vmem:[%s1506_s1 + $0x3d0] sm:$0xff]  ;;  %v156_v13 = vld [vmem:[%s1506_s1 + $0x3c8] sm:$0xff] }
  0x1b   :  { %292 = vmatprep.subr.mxu1 %v106_v49  ;;  %222 = vmatpush1.msra.mxu0 %v41_v50  ;;  %v91_v14 = vld [vmem:[%s1506_s1 + $0x1c0] sm:$0xff]  ;;  %v90_v16 = vld [vmem:[%s1506_s1 + $0x1b8] sm:$0xff]  ;;  %v89_v18 = vld [vmem:[%s1506_s1 + $0x1b0] sm:$0xff] }
  0x1c   :  { %293 = vmatpush1.msra.mxu1 %v105_v51  ;;  %223 = vmatprep.subr.mxu0 %v40_v52  ;;  %v155_v15 = vld [vmem:[%s1506_s1 + $0x3c0] sm:$0xff]  ;;  %v154_v17 = vld [vmem:[%s1506_s1 + $0x3b8] sm:$0xff]  ;;  %v153_v19 = vld [vmem:[%s1506_s1 + $0x3b0] sm:$0xff]  ;;  %v182_v52 = vsub.s32 %v179_v42, %v1107_v41 }
  0x1d   :  { %294 = vmatprep.subr.mxu1 %v104_v53  ;;  %224 = vmatpush1.msra.mxu0 %v39_v54  ;;  %v88_v20 = vld [vmem:[%s1506_s1 + $0x1a8] sm:$0xff]  ;;  %v87_v22 = vld [vmem:[%s1506_s1 + $0x1a0] sm:$0xff]  ;;  %v86_v24 = vld [vmem:[%s1506_s1 + $0x198] sm:$0xff] }
  0x1e   :  { %295 = vmatpush1.msra.mxu1 %v103_v55  ;;  %225 = vmatprep.subr.mxu0 %v38_v56  ;;  %v152_v21 = vld [vmem:[%s1506_s1 + $0x3a8] sm:$0xff]  ;;  %v151_v23 = vld [vmem:[%s1506_s1 + $0x3a0] sm:$0xff]  ;;  %v150_v25 = vld [vmem:[%s1506_s1 + $0x398] sm:$0xff] }
  0x1f   :  { %296 = vmatprep.subr.mxu1 %v102_v57  ;;  %226 = vmatpush1.msra.mxu0 %v37_v58  ;;  %v85_v26 = vld [vmem:[%s1506_s1 + $0x190] sm:$0xff]  ;;  %v84_v28 = vld [vmem:[%s1506_s1 + $0x188] sm:$0xff]  ;;  %v83_v33 = vld [vmem:[%s1506_s1 + $0x180] sm:$0xff] }
  0x20   :  { %297 = vmatpush1.msra.mxu1 %v101_v59  ;;  %227 = vmatprep.subr.mxu0 %v36_v60  ;;  %v149_v27 = vld [vmem:[%s1506_s1 + $0x390] sm:$0xff]  ;;  %v148_v29 = vld [vmem:[%s1506_s1 + $0x388] sm:$0xff]  ;;  %v147_v34 = vld [vmem:[%s1506_s1 + $0x380] sm:$0xff] }
  0x21   :  { %298 = vmatprep.subr.mxu1 %v100_v61  ;;  %228 = vmatpush1.msra.mxu0 %v35_v62  ;;  %v82_v35 = vld [vmem:[%s1506_s1 + $0x178] sm:$0xff]  ;;  %v81_v37 = vld [vmem:[%s1506_s1 + $0x170] sm:$0xff]  ;;  %v80_v39 = vld [vmem:[%s1506_s1 + $0x168] sm:$0xff] }
  0x22   :  { %299 = vmatpush1.msra.mxu1 %v99_v63  ;;  %229 = vmatprep.subr.mxu0 %v98_v0  ;;  %v146_v36 = vld [vmem:[%s1506_s1 + $0x378] sm:$0xff]  ;;  %v145_v38 = vld [vmem:[%s1506_s1 + $0x370] sm:$0xff]  ;;  %v144_v40 = vld [vmem:[%s1506_s1 + $0x368] sm:$0xff] }
  0x23   :  { %300 = vmatprep.subr.mxu1 %v162_v1  ;;  %230 = vmatpush2.msra.mxu0 %v97_v2  ;;  %v79_v43 = vld [vmem:[%s1506_s1 + $0x160] sm:$0xff]  ;;  %v78_v45 = vld [vmem:[%s1506_s1 + $0x158] sm:$0xff]  ;;  %v77_v48 = vld [vmem:[%s1506_s1 + $0x150] sm:$0xff] }
  0x24   :  { %301 = vmatpush2.msra.mxu1 %v161_v3  ;;  %231 = vmatprep.subr.mxu0 %v96_v4  ;;  %v143_v44 = vld [vmem:[%s1506_s1 + $0x360] sm:$0xff]  ;;  %v142_v46 = vld [vmem:[%s1506_s1 + $0x358] sm:$0xff]  ;;  %v141_v49 = vld [vmem:[%s1506_s1 + $0x350] sm:$0xff] }
  0x25   :  { %302 = vmatprep.subr.mxu1 %v160_v5  ;;  %232 = vmatpush2.msra.mxu0 %v95_v6  ;;  %v34_v47 = vld [vmem:[%s1505_s0] sm:$0xff]  ;;  %v76_v50 = vld [vmem:[%s1506_s1 + $0x148] sm:$0xff]  ;;  %v74_v56 = vld [vmem:[%s1506_s1 + $0x138] sm:$0xff] }
  0x26   :  { %303 = vmatpush2.msra.mxu1 %v159_v7  ;;  %233 = vmatprep.subr.mxu0 %v94_v8  ;;  %v140_v51 = vld [vmem:[%s1506_s1 + $0x348] sm:$0xff]  ;;  %v75_v53 = vld [vmem:[%s1506_s1 + $0x140] sm:$0xff]  ;;  %v176_v55 = vcombine.high %v34_v47, %v34_v47  ;;  %v138_v57 = vld [vmem:[%s1506_s1 + $0x338] sm:$0xff]  ;;  %v183_v62 = vrot.slane %v34_v47, %v182_v52 }
  0x27   :  { %304 = vmatprep.subr.mxu1 %v158_v9  ;;  %234 = vmatpush2.msra.mxu0 %v93_v10  ;;  %v139_v54 = vld [vmem:[%s1506_s1 + $0x340] sm:$0xff]  ;;  %v73_v58 = vld [vmem:[%s1506_s1 + $0x130] sm:$0xff]  ;;  %v72_v60 = vld [vmem:[%s1506_s1 + $0x128] sm:$0xff] }
  0x28   :  { %305 = vmatpush2.msra.mxu1 %v157_v11  ;;  %235 = vmatprep.subr.mxu0 %v92_v12  ;;  %v137_v59 = vld [vmem:[%s1506_s1 + $0x330] sm:$0xff]  ;;  %v136_v61 = vld [vmem:[%s1506_s1 + $0x328] sm:$0xff]  ;;  %v71_v63 = vld [vmem:[%s1506_s1 + $0x120] sm:$0xff]  ;;  %v190_v1 = vrot.slane %v176_v55, %v182_v52  ;;  %v191_v8 = vcombine.high %v183_v62, %v183_v62 }
  0x29   :  { %306 = vmatprep.subr.mxu1 %v156_v13  ;;  %236 = vmatpush2.msra.mxu0 %v91_v14  ;;  %v135_v0 = vld [vmem:[%s1506_s1 + $0x320] sm:$0xff]  ;;  %v70_v2 = vld [vmem:[%s1506_s1 + $0x118] sm:$0xff]  ;;  %v69_v4 = vld [vmem:[%s1506_s1 + $0x110] sm:$0xff] }
  0x2a   :  { %307 = vmatpush2.msra.mxu1 %v155_v15  ;;  %237 = vmatprep.subr.mxu0 %v90_v16  ;;  %v134_v3 = vld [vmem:[%s1506_s1 + $0x318] sm:$0xff]  ;;  %v133_v5 = vld [vmem:[%s1506_s1 + $0x310] sm:$0xff]  ;;  %v68_v6 = vld [vmem:[%s1506_s1 + $0x108] sm:$0xff]  ;;  %v192_v10 = vcombine.high %v190_v1, %v190_v1 }
  0x2b   :  { %308 = vmatprep.subr.mxu1 %v154_v17  ;;  %238 = vmatpush2.msra.mxu0 %v89_v18  ;;  %v132_v7 = vld [vmem:[%s1506_s1 + $0x308] sm:$0xff]  ;;  %v67_v9 = vld [vmem:[%s1506_s1 + $0x100] sm:$0xff] }
  0x2c   :  { %309 = vmatpush2.msra.mxu1 %v153_v19  ;;  %239 = vmatprep.subr.mxu0 %v88_v20 }
  0x2d   :  { %310 = vmatprep.subr.mxu1 %v152_v21  ;;  %240 = vmatpush2.msra.mxu0 %v87_v22 }
  0x2e   :  { %311 = vmatpush2.msra.mxu1 %v151_v23  ;;  %241 = vmatprep.subr.mxu0 %v86_v24 }
  0x2f   :  { %312 = vmatprep.subr.mxu1 %v150_v25  ;;  %242 = vmatpush2.msra.mxu0 %v85_v26 }
  0x30   :  { %313 = vmatpush2.msra.mxu1 %v149_v27  ;;  %243 = vmatprep.subr.mxu0 %v84_v28 }
  0x31   :  { %314 = vmatprep.subr.mxu1 %v148_v29  ;;  %244 = vmatpush2.msra.mxu0 %v83_v33 }
  0x32   :  { %315 = vmatpush2.msra.mxu1 %v147_v34  ;;  %245 = vmatprep.subr.mxu0 %v82_v35 }
  0x33   :  { %316 = vmatprep.subr.mxu1 %v146_v36  ;;  %246 = vmatpush2.msra.mxu0 %v81_v37 }
  0x34   :  { %317 = vmatpush2.msra.mxu1 %v145_v38  ;;  %247 = vmatprep.subr.mxu0 %v80_v39 }
  0x35   :  { %318 = vmatprep.subr.mxu1 %v144_v40  ;;  %248 = vmatpush2.msra.mxu0 %v79_v43 }
  0x36   :  { %319 = vmatpush2.msra.mxu1 %v143_v44  ;;  %249 = vmatprep.subr.mxu0 %v78_v45 }
  0x37   :  { %320 = vmatprep.subr.mxu1 %v142_v46  ;;  %250 = vmatpush2.msra.mxu0 %v77_v48 }
  0x38   :  { %321 = vmatpush2.msra.mxu1 %v141_v49  ;;  %251 = vmatprep.subr.mxu0 %v76_v50 }
  0x39   :  { %322 = vmatprep.subr.mxu1 %v140_v51  ;;  %252 = vmatpush2.msra.mxu0 %v75_v53 }
  0x3a   :  { %323 = vmatpush2.msra.mxu1 %v139_v54  ;;  %253 = vmatprep.subr.mxu0 %v74_v56 }
  0x3b   :  { %324 = vmatprep.subr.mxu1 %v138_v57  ;;  %254 = vmatpush2.msra.mxu0 %v73_v58 }
  0x3c   :  { %325 = vmatpush2.msra.mxu1 %v137_v59  ;;  %255 = vmatprep.subr.mxu0 %v72_v60 }
  0x3d   :  { %326 = vmatprep.subr.mxu1 %v136_v61  ;;  %256 = vmatpush2.msra.mxu0 %v71_v63 }
  0x3e   :  { %327 = vmatpush2.msra.mxu1 %v135_v0  ;;  %257 = vmatprep.subr.mxu0 %v70_v2 }
  0x3f   :  { %328 = vmatprep.subr.mxu1 %v134_v3 }
  0x40   :  { %17 = vsyncpa [#allocation5], 0  ;;  %258 = vmatpush2.msra.mxu0 %v69_v4  ;;  %329 = vmatpush2.msra.mxu1 %v133_v5  ;;  %v131_v11 = vld [vmem:[%s1506_s1 + $0x300] sm:$0xff]  ;;  %v372_v12 = vld [vmem:[%s1508_s3 + $0xf8] sm:$0xff]  ;;  %s742_s23 = smov 10   ;;  %vm599_vm0 = vcmask 74752  }
  0x41   :  { %259 = vmatprep.subr.mxu0 %v68_v6  ;;  %330 = vmatprep.subr.mxu1 %v132_v7  ;;  %v371_v13 = vld [vmem:[%s1508_s3 + $0xf0] sm:$0xff]  ;;  %v370_v14 = vld [vmem:[%s1508_s3 + $0xe8] sm:$0xff]  ;;  %v369_v15 = vld [vmem:[%s1508_s3 + $0xe0] sm:$0xff] }
  0x42   :  { %260 = vmatpush2.msra.mxu0 %v67_v9  ;;  %261 = vmatprep.mubr.f32.mxu0 %v191_v8  ;;  %v368_v16 = vld [vmem:[%s1508_s3 + $0xd8] sm:$0xff]  ;;  %v367_v17 = vld [vmem:[%s1508_s3 + $0xd0] sm:$0xff]  ;;  %v366_v18 = vld [vmem:[%s1508_s3 + $0xc8] sm:$0xff] }
  0x43   :  { %331 = vmatpush2.msra.mxu1 %v131_v11  ;;  %332 = vmatprep.mubr.f32.mxu1 %v192_v10  ;;  %v365_v19 = vld [vmem:[%s1508_s3 + $0xc0] sm:$0xff]  ;;  %v364_v20 = vld [vmem:[%s1508_s3 + $0xb8] sm:$0xff]  ;;  %v363_v21 = vld [vmem:[%s1508_s3 + $0xb0] sm:$0xff] }
  0x44   :  { %262 = vmatmul.mubr.f32.vlgmr.msra.gmra.mxu0 %v183_v62  ;;  %333 = vmatmul.mubr.f32.vlgmr.msra.gmra.mxu1 %v190_v1  ;;  %v362_v22 = vld [vmem:[%s1508_s3 + $0xa8] sm:$0xff]  ;;  %v361_v23 = vld [vmem:[%s1508_s3 + $0xa0] sm:$0xff]  ;;  %v360_v24 = vld [vmem:[%s1508_s3 + $0x98] sm:$0xff] }
  0x45   :  { %417 = vmatprep.subr.mxu0 %v372_v12  ;;  %v359_v25 = vld [vmem:[%s1508_s3 + $0x90] sm:$0xff]  ;;  %v358_v26 = vld [vmem:[%s1508_s3 + $0x88] sm:$0xff]  ;;  %v357_v27 = vld [vmem:[%s1508_s3 + $0x80] sm:$0xff] }
  0x46   :  { %418 = vmatpush1.msra.mxu0 %v371_v13  ;;  %v356_v28 = vld [vmem:[%s1508_s3 + $0x78] sm:$0xff]  ;;  %v355_v29 = vld [vmem:[%s1508_s3 + $0x70] sm:$0xff]  ;;  %v354_v30 = vld [vmem:[%s1508_s3 + $0x68] sm:$0xff] }
  0x47   :  { %419 = vmatprep.subr.mxu0 %v370_v14  ;;  %v353_v31 = vld [vmem:[%s1508_s3 + $0x60] sm:$0xff]  ;;  %v352_v32 = vld [vmem:[%s1508_s3 + $0x58] sm:$0xff]  ;;  %v351_v33 = vld [vmem:[%s1508_s3 + $0x50] sm:$0xff] }
  0x48   :  { %420 = vmatpush1.msra.mxu0 %v369_v15  ;;  %v350_v34 = vld [vmem:[%s1508_s3 + $0x48] sm:$0xff]  ;;  %v349_v35 = vld [vmem:[%s1508_s3 + $0x40] sm:$0xff]  ;;  %v348_v36 = vld [vmem:[%s1508_s3 + $0x38] sm:$0xff] }
  0x49   :  { %421 = vmatprep.subr.mxu0 %v368_v16  ;;  %v347_v37 = vld [vmem:[%s1508_s3 + $0x30] sm:$0xff]  ;;  %v346_v38 = vld [vmem:[%s1508_s3 + $0x28] sm:$0xff]  ;;  %v345_v39 = vld [vmem:[%s1508_s3 + $0x20] sm:$0xff] }
  0x4a   :  { %422 = vmatpush1.msra.mxu0 %v367_v17  ;;  %v344_v40 = vld [vmem:[%s1508_s3 + $0x18] sm:$0xff]  ;;  %v343_v42 = vld [vmem:[%s1508_s3 + $0x10] sm:$0xff]  ;;  %v342_v43 = vld [vmem:[%s1508_s3 + $0x8] sm:$0xff] }
  0x4b   :  { %423 = vmatprep.subr.mxu0 %v366_v18  ;;  %v341_v44 = vld [vmem:[%s1508_s3] sm:$0xff]  ;;  %v404_v45 = vld [vmem:[%s1508_s3 + $0x1f8] sm:$0xff]  ;;  %v403_v46 = vld [vmem:[%s1508_s3 + $0x1f0] sm:$0xff] }
  0x4c   :  { %424 = vmatpush1.msra.mxu0 %v365_v19  ;;  %v402_v47 = vld [vmem:[%s1508_s3 + $0x1e8] sm:$0xff]  ;;  %v401_v48 = vld [vmem:[%s1508_s3 + $0x1e0] sm:$0xff]  ;;  %v400_v49 = vld [vmem:[%s1508_s3 + $0x1d8] sm:$0xff] }
  0x4d   :  { %425 = vmatprep.subr.mxu0 %v364_v20  ;;  %v399_v50 = vld [vmem:[%s1508_s3 + $0x1d0] sm:$0xff]  ;;  %v398_v51 = vld [vmem:[%s1508_s3 + $0x1c8] sm:$0xff]  ;;  %v397_v52 = vld [vmem:[%s1508_s3 + $0x1c0] sm:$0xff] }
  0x4e   :  { %426 = vmatpush1.msra.mxu0 %v363_v21  ;;  %v396_v53 = vld [vmem:[%s1508_s3 + $0x1b8] sm:$0xff]  ;;  %v395_v54 = vld [vmem:[%s1508_s3 + $0x1b0] sm:$0xff]  ;;  %v394_v55 = vld [vmem:[%s1508_s3 + $0x1a8] sm:$0xff] }
  0x4f   :  { %427 = vmatprep.subr.mxu0 %v362_v22  ;;  %v393_v56 = vld [vmem:[%s1508_s3 + $0x1a0] sm:$0xff]  ;;  %v392_v57 = vld [vmem:[%s1508_s3 + $0x198] sm:$0xff]  ;;  %v391_v58 = vld [vmem:[%s1508_s3 + $0x190] sm:$0xff] }
  0x50   :  { %428 = vmatpush1.msra.mxu0 %v361_v23  ;;  %v390_v59 = vld [vmem:[%s1508_s3 + $0x188] sm:$0xff]  ;;  %v389_v60 = vld [vmem:[%s1508_s3 + $0x180] sm:$0xff]  ;;  %v388_v61 = vld [vmem:[%s1508_s3 + $0x178] sm:$0xff] }
  0x51   :  { %429 = vmatprep.subr.mxu0 %v360_v24  ;;  %v387_v62 = vld [vmem:[%s1508_s3 + $0x170] sm:$0xff]  ;;  %v386_v63 = vld [vmem:[%s1508_s3 + $0x168] sm:$0xff]  ;;  %v385_v0 = vld [vmem:[%s1508_s3 + $0x160] sm:$0xff] }
  0x52   :  { %430 = vmatpush1.msra.mxu0 %v359_v25  ;;  %v384_v1 = vld [vmem:[%s1508_s3 + $0x158] sm:$0xff]  ;;  %v383_v2 = vld [vmem:[%s1508_s3 + $0x150] sm:$0xff]  ;;  %v382_v3 = vld [vmem:[%s1508_s3 + $0x148] sm:$0xff] }
  0x53   :  { %431 = vmatprep.subr.mxu0 %v358_v26  ;;  %v381_v4 = vld [vmem:[%s1508_s3 + $0x140] sm:$0xff]  ;;  %v380_v5 = vld [vmem:[%s1508_s3 + $0x138] sm:$0xff]  ;;  %v379_v6 = vld [vmem:[%s1508_s3 + $0x130] sm:$0xff] }
  0x54   :  { %432 = vmatpush1.msra.mxu0 %v357_v27  ;;  %v378_v7 = vld [vmem:[%s1508_s3 + $0x128] sm:$0xff]  ;;  %v377_v8 = vld [vmem:[%s1508_s3 + $0x120] sm:$0xff]  ;;  %v376_v9 = vld [vmem:[%s1508_s3 + $0x118] sm:$0xff] }
  0x55   :  { %433 = vmatprep.subr.mxu0 %v356_v28  ;;  %v375_v10 = vld [vmem:[%s1508_s3 + $0x110] sm:$0xff]  ;;  %v374_v11 = vld [vmem:[%s1508_s3 + $0x108] sm:$0xff]  ;;  %v373_v12 = vld [vmem:[%s1508_s3 + $0x100] sm:$0xff] }
  0x56   :  { %434 = vmatpush1.msra.mxu0 %v355_v29  ;;  %v521_v13 = vld [vmem:[%s1510_s5 + $0xf8] sm:$0xff]  ;;  %v520_v15 = vld [vmem:[%s1510_s5 + $0xf0] sm:$0xff]  ;;  %v519_v17 = vld [vmem:[%s1510_s5 + $0xe8] sm:$0xff] }
  0x57   :  { %435 = vmatprep.subr.mxu0 %v354_v30  ;;  %v505_v14 = vld [vmem:[%s1510_s5 + $0x78] sm:$0xff]  ;;  %654 = vmatprep.subr.mxu1 %v521_v13  ;;  %v504_v16 = vld [vmem:[%s1510_s5 + $0x70] sm:$0xff]  ;;  %v503_v18 = vld [vmem:[%s1510_s5 + $0x68] sm:$0xff] }
  0x58   :  { %436 = vmatpush1.msra.mxu0 %v353_v31  ;;  %655 = vmatpush3.msra.mxu1 %v505_v14  ;;  %v518_v19 = vld [vmem:[%s1510_s5 + $0xe0] sm:$0xff]  ;;  %v517_v21 = vld [vmem:[%s1510_s5 + $0xd8] sm:$0xff]  ;;  %v516_v23 = vld [vmem:[%s1510_s5 + $0xd0] sm:$0xff] }
  0x59   :  { %437 = vmatprep.subr.mxu0 %v352_v32  ;;  %656 = vmatprep.subr.mxu1 %v520_v15  ;;  %v502_v20 = vld [vmem:[%s1510_s5 + $0x60] sm:$0xff]  ;;  %v501_v22 = vld [vmem:[%s1510_s5 + $0x58] sm:$0xff]  ;;  %v500_v24 = vld [vmem:[%s1510_s5 + $0x50] sm:$0xff] }
  0x5a   :  { %438 = vmatpush1.msra.mxu0 %v351_v33  ;;  %657 = vmatpush3.msra.mxu1 %v504_v16  ;;  %v515_v25 = vld [vmem:[%s1510_s5 + $0xc8] sm:$0xff]  ;;  %v514_v27 = vld [vmem:[%s1510_s5 + $0xc0] sm:$0xff]  ;;  %v513_v29 = vld [vmem:[%s1510_s5 + $0xb8] sm:$0xff] }
  0x5b   :  { %439 = vmatprep.subr.mxu0 %v350_v34  ;;  %658 = vmatprep.subr.mxu1 %v519_v17  ;;  %v499_v26 = vld [vmem:[%s1510_s5 + $0x48] sm:$0xff]  ;;  %v498_v28 = vld [vmem:[%s1510_s5 + $0x40] sm:$0xff]  ;;  %v497_v30 = vld [vmem:[%s1510_s5 + $0x38] sm:$0xff] }
  0x5c   :  { %440 = vmatpush1.msra.mxu0 %v349_v35  ;;  %659 = vmatpush3.msra.mxu1 %v503_v18  ;;  %v512_v31 = vld [vmem:[%s1510_s5 + $0xb0] sm:$0xff]  ;;  %v511_v33 = vld [vmem:[%s1510_s5 + $0xa8] sm:$0xff]  ;;  %v510_v35 = vld [vmem:[%s1510_s5 + $0xa0] sm:$0xff] }
  0x5d   :  { %441 = vmatprep.subr.mxu0 %v348_v36  ;;  %660 = vmatprep.subr.mxu1 %v518_v19  ;;  %v496_v32 = vld [vmem:[%s1510_s5 + $0x30] sm:$0xff]  ;;  %v495_v34 = vld [vmem:[%s1510_s5 + $0x28] sm:$0xff]  ;;  %v494_v36 = vld [vmem:[%s1510_s5 + $0x20] sm:$0xff] }
  0x5e   :  { %442 = vmatpush1.msra.mxu0 %v347_v37  ;;  %661 = vmatpush3.msra.mxu1 %v502_v20  ;;  %v167_v37 = vsub.s32 0, %v1107_v41 }
  0x5f   :  { %443 = vmatprep.subr.mxu0 %v346_v38  ;;  %662 = vmatprep.subr.mxu1 %v517_v21  ;;  %v163_v38 = vld [vmem:[%s1507_s2] sm:$0x3] }
  0x60   :  { %444 = vmatpush1.msra.mxu0 %v345_v39  ;;  %663 = vmatpush3.msra.mxu1 %v501_v22  ;;  %v171_v39 = vsub.s32 1, %v1107_v41  ;;  %v493_v41 = vld [vmem:[%s1510_s5 + $0x18] sm:$0xff] }
  0x61   :  { %445 = vmatprep.subr.mxu0 %v344_v40  ;;  %664 = vmatprep.subr.mxu1 %v516_v23  ;;  %v168_v40 = vrot.slane %v163_v38, %v167_v37 }
  0x62   :  { %446 = vmatpush1.msra.mxu0 %v343_v42  ;;  %665 = vmatpush3.msra.mxu1 %v500_v24  ;;  %v172_v42 = vrot.slane %v163_v38, %v171_v39 }
  0x63   :  { %447 = vmatprep.subr.mxu0 %v342_v43  ;;  %666 = vmatprep.subr.mxu1 %v515_v25 }
  0x64   :  { %448 = vmatpush1.msra.mxu0 %v341_v44  ;;  %667 = vmatpush3.msra.mxu1 %v499_v26 }
  0x65   :  { %449 = vmatprep.subr.mxu0 %v404_v45  ;;  %668 = vmatprep.subr.mxu1 %v514_v27 }
  0x66   :  { %450 = vmatpush2.msra.mxu0 %v403_v46  ;;  %669 = vmatpush3.msra.mxu1 %v498_v28 }
  0x67   :  { %451 = vmatprep.subr.mxu0 %v402_v47  ;;  %670 = vmatprep.subr.mxu1 %v513_v29 }
  0x68   :  { %452 = vmatpush2.msra.mxu0 %v401_v48  ;;  %671 = vmatpush3.msra.mxu1 %v497_v30 }
  0x69   :  { %453 = vmatprep.subr.mxu0 %v400_v49  ;;  %672 = vmatprep.subr.mxu1 %v512_v31 }
  0x6a   :  { %454 = vmatpush2.msra.mxu0 %v399_v50  ;;  %673 = vmatpush3.msra.mxu1 %v496_v32 }
  0x6b   :  { %455 = vmatprep.subr.mxu0 %v398_v51  ;;  %674 = vmatprep.subr.mxu1 %v511_v33 }
  0x6c   :  { %456 = vmatpush2.msra.mxu0 %v397_v52  ;;  %675 = vmatpush3.msra.mxu1 %v495_v34 }
  0x6d   :  { %457 = vmatprep.subr.mxu0 %v396_v53  ;;  %676 = vmatprep.subr.mxu1 %v510_v35  ;;  %v509_v53 = vld [vmem:[%s1510_s5 + $0x98] sm:$0xff] }
  0x6e   :  { %458 = vmatpush2.msra.mxu0 %v395_v54  ;;  %677 = vmatpush3.msra.mxu1 %v494_v36  ;;  %v508_v54 = vld [vmem:[%s1510_s5 + $0x90] sm:$0xff] }
  0x6f   :  { %459 = vmatprep.subr.mxu0 %v394_v55  ;;  %678 = vmatprep.subr.mxu1 %v509_v53  ;;  %v492_v55 = vld [vmem:[%s1510_s5 + $0x10] sm:$0xff] }
  0x70   :  { %460 = vmatpush2.msra.mxu0 %v393_v56  ;;  %679 = vmatpush3.msra.mxu1 %v493_v41  ;;  %v507_v56 = vld [vmem:[%s1510_s5 + $0x88] sm:$0xff] }
  0x71   :  { %461 = vmatprep.subr.mxu0 %v392_v57  ;;  %680 = vmatprep.subr.mxu1 %v508_v54  ;;  %v491_v57 = vld [vmem:[%s1510_s5 + $0x8] sm:$0xff] }
  0x72   :  { %462 = vmatpush2.msra.mxu0 %v391_v58  ;;  %681 = vmatpush3.msra.mxu1 %v492_v55  ;;  %v506_v58 = vld [vmem:[%s1510_s5 + $0x80] sm:$0xff] }
  0x73   :  { %463 = vmatprep.subr.mxu0 %v390_v59  ;;  %682 = vmatprep.subr.mxu1 %v507_v56  ;;  %v490_v59 = vld [vmem:[%s1510_s5] sm:$0xff] }
  0x74   :  { %464 = vmatpush2.msra.mxu0 %v389_v60  ;;  %683 = vmatpush3.msra.mxu1 %v491_v57  ;;  %v609_v60 = vld [vmem:[%s1512_s7] sm:$0x3]  ;;  %s744_s7 = smov [#allocation2]  }
  0x75   :  { %465 = vmatprep.subr.mxu0 %v388_v61  ;;  %684 = vmatprep.subr.mxu1 %v506_v58  ;;  %v405_v61 = vld [vmem:[%s1509_s4] sm:$0x3]  ;;  %s743_s4 = smov 118   ;;  %s627_s27 = sshll.u32 %s744_s7, 4  ;;  %s628_s27 = int_to_ptr.vmem [resolvable:$true] %s627_s27 }
  0x76   :  { %466 = vmatpush2.msra.mxu0 %v387_v62  ;;  %685 = vmatpush3.msra.mxu1 %v490_v59  ;;  %v410_v62 = vrot.slane %v405_v61, %v167_v37  ;;  %s697_s28 = scalar_lea.vmem %s628_s27, 32  ;;  %p702_p1 = scmp.lt.s32.totalorder %s628_s27, %s628_s27 }
  0x77   :  { %467 = vmatprep.subr.mxu0 %v386_v63  ;;  %611 = vrot.lane.b32.xlu0 %v609_v60, %s742_s23  ;;  %v414_v63 = vrot.slane %v405_v61, %v171_v39  ;;  %p698_p0 = scmp.ne.s32.totalorder %s628_s27, %s697_s28  ;;  %p703_p2 = scmp.lt.s32.totalorder %s697_s28, %s697_s28 }
  0x78   :  { %468 = vmatpush2.msra.mxu0 %v385_v0 }
  0x79   :  { %469 = vmatprep.subr.mxu0 %v384_v1  ;;  %p704_p3 = por %p703_p2, %p702_p1 }
  0x7a   :  { %470 = vmatpush2.msra.mxu0 %v383_v2 }
  0x7b   :  { %471 = vmatprep.subr.mxu0 %v382_v3  ;;  %p705_p4 = pnand %p704_p3, %p698_p0 }
  0x7c   :  { %472 = vmatpush2.msra.mxu0 %v381_v4 }
  0x7d   :  { %473 = vmatprep.subr.mxu0 %v380_v5 }
  0x7e   :  { %474 = vmatpush2.msra.mxu0 %v379_v6 }
  0x7f   :  { %475 = vmatprep.subr.mxu0 %v378_v7  ;;  %v653_v7 = vld [vmem:[%s1511_s6] ss:$0 sm:$0xff] }
  0x80   :  { %476 = vmatpush2.msra.mxu0 %v377_v8 }
  0x81   :  { %477 = vmatprep.subr.mxu0 %v376_v9 }
  0x82   :  { %478 = vmatpush2.msra.mxu0 %v375_v10 }
  0x83   :  { %479 = vmatprep.subr.mxu0 %v374_v11 }
  0x84   :  { %480 = vmatpush2.msra.mxu0 %v373_v12 }
 0x104   :  { %v263_v43 = vpop.f32.mrf.mxu0  ;;  %v334_v44 = vpop.f32.mrf.mxu1 }
 0x105   :  { %v264_v45 = vadd.f32 %v263_v43, %v168_v40 }
 0x106   :  { %v265_v46 = vpop.f32.mrf.mxu0  ;;  %v336_v49 = vpop.f32.mrf.mxu1 }
 0x107   :  { %v266_v47 = vadd.f32 %v265_v46, %v172_v42  ;;  %v335_v48 = vadd.f32 %v334_v44, %v264_v45 }
 0x109   :  { %v337_v50 = vadd.f32 %v336_v49, %v266_v47  ;;  %v339_v52 = vmax.f32 %v335_v48, 0.0 }
 0x10b   :  { %v340_v51 = vmax.f32 %v337_v50, 0.0 }
 0x10d   :  { %481 = vmatprep.mubr.f32.mxu0 %v340_v51 }
 0x10e   :  { %482 = vmatmul.mubr.f32.vlgmr.msra.gmra.mxu0 %v339_v52 }
 0x1ce   :  { %v483_v0 = vpop.f32.mrf.mxu0 }
 0x1cf   :  { %v484_v1 = vadd.f32 %v483_v0, %v410_v62 }
 0x1d0   :  { %v485_v2 = vpop.f32.mrf.mxu0 }
 0x1d1   :  { %v486_v3 = vadd.f32 %v485_v2, %v414_v63  ;;  %v488_v5 = vmax.f32 %v484_v1, 0.0 }
 0x1d3   :  { %v489_v4 = vmax.f32 %v486_v3, 0.0 }
 0x1d5   :  { %593 = vmatprep.mubr.f32.mxu1 %v489_v4 }
 0x1d6   :  { %594 = vmatmul.mubr.f32.vlgmr.msra.gmra.mxu1 %v488_v5 }
 0x296   :  { %v686_v6 = vpop.f32.mrf.mxu1 }
 0x298   :  { %v687_v8 = vpop.f32.mrf.mxu1 }
 0x299   :  { %v688_v9 = vadd.f32 %v687_v8, %v686_v6 }
 0x29b   :  { %v596_v10 = vadd.f32 %v688_v9, %v653_v7 }
 0x29d   :  { %v606_v11 = vmul.f32 0.5, %v596_v10  ;;  %602 = vrot.lane.b32.xlu1 %v596_v10, %s743_s4  ;;  %600 = vst.msk [vmem:[#allocation2] sm:$0x3] %vm599_vm0, %v596_v10 }
 0x29f   :  { %v607_v12 = vmul.f32 1.442695, %v606_v11 }
 0x2a1   :  { %695 = vpow2.f32 %v607_v12 }
 0x2a2   :  { %708 = shalt.err (!%p705_p4)
}
 0x2a3   :  { %630 = dma.vmem_to_hbm [thread:$0]  %s628_s27, 32, %s1513_s8, [#allocation3]   ;;  %v612_v13 = vpop.permute.xlu0 %611 }
 0x2a4   :  { %s745_s30 = smov [#allocation4]  }
 0x2a5   :  { %s637_s2 = sshll.u32 %s745_s30, 4  ;;  %s638_s2 = int_to_ptr.vmem [resolvable:$true] %s637_s2 }
 0x2a6   :  { %s717_s11 = scalar_lea.vmem %s638_s2, 32  ;;  %p722_p6 = scmp.lt.s32.totalorder %s638_s2, %s638_s2 }
 0x2a7   :  { %p718_p5 = scmp.ne.s32.totalorder %s638_s2, %s717_s11  ;;  %p723_p7 = scmp.lt.s32.totalorder %s717_s11, %s717_s11 }
 0x2a9   :  { %p724_p8 = por %p723_p7, %p722_p6 }
 0x2ab   :  { %p725_p9 = pnand %p724_p8, %p718_p5 }
 0x2ae   :  { %v696_v14 = vpop.eup %695 }
 0x2af   :  { %v614_v15 = vmul.f32 %v696_v14, %v612_v13 }
 0x2b1   :  { %616 = vrot.lane.b32.xlu0 %v614_v15, %s743_s4 }
 0x30f   :  { %v603_v16 = vpop.permute.xlu1 %602 }
 0x310   :  { %605 = vst.msk [vmem:[#allocation4] sm:$0x3] %vm599_vm0, %v603_v16 }
 0x311   :  { %728 = shalt.err (!%p725_p9)
}
 0x312   :  { %640 = dma.vmem_to_hbm [thread:$0]  %s638_s2, 32, %s1514_s9, [#allocation5]  }
 0x323   :  { %v617_v17 = vpop.permute.xlu0 %616 }
 0x324   :  { %v619_v18 = vadd.f32 %v617_v17, %v596_v10 }
 0x326   :  { %620 = vst.msk [vmem:[%s1515_s10] sm:$0x3] %vm599_vm0, %v619_v18 }
 0x327   :  { %737 = dma.done.wait [#allocation3], 32  }
 0x328   :  { %738 = vsyncadd [#allocation3], 4294967264 }
 0x329   :  { %739 = dma.done.wait [#allocation5], 32  }
 0x32a   :  { %740 = vsyncadd [#allocation5], 4294967264 }
 0x32b   :  { %651 = vsyncpa [#allocation3], 1 }
 0x32c   :  { %652 = vsyncpa [#allocation5], 1 }

// kernel: vae_forward.12
= control target key start
LH: loop header
LB: loop body
LE: loop exit
PB: predicated region body
PF: predicated region fallthrough
CT: control target
= control target key end

     0   :  { %vm47_vm0 = vcmask 1041408   ;;  %v604_v3 = vmov 0.0   ;;  %vm43_vm1 = vcmask 80896   ;;  %s1266_s1 = inlined_call_operand.vmem [shape: f32[10,256], index: 1, kind: input, shape index: {}]   ;;  %s1267_s0 = inlined_call_operand.vmem [shape: f32[2,10], index: 0, kind: input, shape index: {}]   ;;  %s1268_s3 = inlined_call_operand.vmem [shape: f32[256,256], index: 3, kind: input, shape index: {}]   ;;  %s1269_s5 = inlined_call_operand.vmem [shape: f32[256,512], index: 5, kind: input, shape index: {}]   ;;  %s1270_s2 = inlined_call_operand.vmem [shape: f32[1,256], index: 2, kind: input, shape index: {}]   ;;  %s1271_s4 = inlined_call_operand.vmem [shape: f32[1,256], index: 4, kind: input, shape index: {}]   ;;  %s1272_s6 = inlined_call_operand.vmem [shape: f32[1,512], index: 6, kind: input, shape index: {}]   ;;  %s1273_s7 = inlined_call_operand.vmem [shape: f32[2,512], index: 7, kind: output, shape index: {}]  }
   0x1   :  { %v30_v0 = vld [vmem:[%s1266_s1 + $0x18] sm:$0x3]  ;;  %v29_v1 = vld [vmem:[%s1266_s1 + $0x10] sm:$0x3]  ;;  %v28_v2 = vld [vmem:[%s1266_s1 + $0x8] sm:$0xff]  ;;  %118 = vmatprep.mubr.f32.mxu0 %v604_v3 }
   0x2   :  { %599 = vmatprep.subr.msk.mxu0 %vm47_vm0, %v30_v0  ;;  %v27_v4 = vld [vmem:[%s1266_s1] sm:$0xff]  ;;  %v158_v6 = vld [vmem:[%s1268_s3 + $0xf8] sm:$0xff]  ;;  %v157_v7 = vld [vmem:[%s1268_s3 + $0xf0] sm:$0xff] }
   0x3   :  { %v26_v5 = vld [vmem:[%s1267_s0] sm:$0x3]  ;;  %600 = vmatpush1.msk.msra.mxu0 %vm47_vm0, %v29_v1  ;;  %203 = vmatprep.subr.mxu1 %v158_v6  ;;  %v156_v8 = vld [vmem:[%s1268_s3 + $0xe8] sm:$0xff]  ;;  %v154_v10 = vld [vmem:[%s1268_s3 + $0xd8] sm:$0xff] }
   0x4   :  { %v155_v9 = vld [vmem:[%s1268_s3 + $0xe0] sm:$0xff]  ;;  %84 = vmatprep.subr.mxu0 %v28_v2  ;;  %204 = vmatpush1.msra.mxu1 %v157_v7  ;;  %v153_v11 = vld [vmem:[%s1268_s3 + $0xd0] sm:$0xff]  ;;  %v152_v12 = vld [vmem:[%s1268_s3 + $0xc8] sm:$0xff] }
   0x5   :  { %85 = vmatpush1.msra.mxu0 %v27_v4  ;;  %205 = vmatprep.subr.mxu1 %v156_v8  ;;  %v151_v13 = vld [vmem:[%s1268_s3 + $0xc0] sm:$0xff]  ;;  %v150_v14 = vld [vmem:[%s1268_s3 + $0xb8] sm:$0xff]  ;;  %v149_v15 = vld [vmem:[%s1268_s3 + $0xb0] sm:$0xff] }
   0x6   :  { %601 = vmatmul.mubr.msk.f32.vlgmr.msra.gmra.mxu0 %vm43_vm1, %v26_v5  ;;  %206 = vmatpush1.msra.mxu1 %v155_v9  ;;  %v148_v16 = vld [vmem:[%s1268_s3 + $0xa8] sm:$0xff]  ;;  %v147_v17 = vld [vmem:[%s1268_s3 + $0xa0] sm:$0xff]  ;;  %v146_v18 = vld [vmem:[%s1268_s3 + $0x98] sm:$0xff] }
   0x7   :  { %207 = vmatprep.subr.mxu1 %v154_v10  ;;  %v145_v19 = vld [vmem:[%s1268_s3 + $0x90] sm:$0xff]  ;;  %v144_v20 = vld [vmem:[%s1268_s3 + $0x88] sm:$0xff]  ;;  %v143_v21 = vld [vmem:[%s1268_s3 + $0x80] sm:$0xff] }
   0x8   :  { %208 = vmatpush1.msra.mxu1 %v153_v11  ;;  %v142_v22 = vld [vmem:[%s1268_s3 + $0x78] sm:$0xff]  ;;  %v141_v23 = vld [vmem:[%s1268_s3 + $0x70] sm:$0xff]  ;;  %v140_v24 = vld [vmem:[%s1268_s3 + $0x68] sm:$0xff] }
   0x9   :  { %209 = vmatprep.subr.mxu1 %v152_v12  ;;  %v139_v25 = vld [vmem:[%s1268_s3 + $0x60] sm:$0xff]  ;;  %v138_v26 = vld [vmem:[%s1268_s3 + $0x58] sm:$0xff]  ;;  %v137_v27 = vld [vmem:[%s1268_s3 + $0x50] sm:$0xff] }
   0xa   :  { %210 = vmatpush1.msra.mxu1 %v151_v13  ;;  %v136_v28 = vld [vmem:[%s1268_s3 + $0x48] sm:$0xff]  ;;  %v135_v29 = vld [vmem:[%s1268_s3 + $0x40] sm:$0xff]  ;;  %v134_v30 = vld [vmem:[%s1268_s3 + $0x38] sm:$0xff] }
   0xb   :  { %211 = vmatprep.subr.mxu1 %v150_v14  ;;  %v133_v31 = vld [vmem:[%s1268_s3 + $0x30] sm:$0xff]  ;;  %v132_v32 = vld [vmem:[%s1268_s3 + $0x28] sm:$0xff]  ;;  %v131_v33 = vld [vmem:[%s1268_s3 + $0x20] sm:$0xff] }
   0xc   :  { %212 = vmatpush1.msra.mxu1 %v149_v15  ;;  %v130_v34 = vld [vmem:[%s1268_s3 + $0x18] sm:$0xff]  ;;  %v129_v35 = vld [vmem:[%s1268_s3 + $0x10] sm:$0xff]  ;;  %v128_v36 = vld [vmem:[%s1268_s3 + $0x8] sm:$0xff] }
   0xd   :  { %213 = vmatprep.subr.mxu1 %v148_v16  ;;  %v127_v37 = vld [vmem:[%s1268_s3] sm:$0xff]  ;;  %v190_v38 = vld [vmem:[%s1268_s3 + $0x1f8] sm:$0xff]  ;;  %v189_v39 = vld [vmem:[%s1268_s3 + $0x1f0] sm:$0xff] }
   0xe   :  { %214 = vmatpush1.msra.mxu1 %v147_v17  ;;  %v188_v40 = vld [vmem:[%s1268_s3 + $0x1e8] sm:$0xff]  ;;  %v187_v41 = vld [vmem:[%s1268_s3 + $0x1e0] sm:$0xff]  ;;  %v186_v42 = vld [vmem:[%s1268_s3 + $0x1d8] sm:$0xff] }
   0xf   :  { %215 = vmatprep.subr.mxu1 %v146_v18  ;;  %v185_v43 = vld [vmem:[%s1268_s3 + $0x1d0] sm:$0xff]  ;;  %v184_v44 = vld [vmem:[%s1268_s3 + $0x1c8] sm:$0xff]  ;;  %v183_v45 = vld [vmem:[%s1268_s3 + $0x1c0] sm:$0xff] }
  0x10   :  { %216 = vmatpush1.msra.mxu1 %v145_v19  ;;  %v182_v46 = vld [vmem:[%s1268_s3 + $0x1b8] sm:$0xff]  ;;  %v181_v47 = vld [vmem:[%s1268_s3 + $0x1b0] sm:$0xff]  ;;  %v180_v48 = vld [vmem:[%s1268_s3 + $0x1a8] sm:$0xff] }
  0x11   :  { %217 = vmatprep.subr.mxu1 %v144_v20  ;;  %v179_v49 = vld [vmem:[%s1268_s3 + $0x1a0] sm:$0xff]  ;;  %v178_v50 = vld [vmem:[%s1268_s3 + $0x198] sm:$0xff]  ;;  %v177_v51 = vld [vmem:[%s1268_s3 + $0x190] sm:$0xff] }
  0x12   :  { %218 = vmatpush1.msra.mxu1 %v143_v21  ;;  %v176_v52 = vld [vmem:[%s1268_s3 + $0x188] sm:$0xff]  ;;  %v175_v53 = vld [vmem:[%s1268_s3 + $0x180] sm:$0xff]  ;;  %v174_v54 = vld [vmem:[%s1268_s3 + $0x178] sm:$0xff] }
  0x13   :  { %219 = vmatprep.subr.mxu1 %v142_v22  ;;  %v173_v55 = vld [vmem:[%s1268_s3 + $0x170] sm:$0xff]  ;;  %v172_v56 = vld [vmem:[%s1268_s3 + $0x168] sm:$0xff]  ;;  %v171_v57 = vld [vmem:[%s1268_s3 + $0x160] sm:$0xff] }
  0x14   :  { %220 = vmatpush1.msra.mxu1 %v141_v23  ;;  %v170_v58 = vld [vmem:[%s1268_s3 + $0x158] sm:$0xff]  ;;  %v169_v59 = vld [vmem:[%s1268_s3 + $0x150] sm:$0xff]  ;;  %v168_v60 = vld [vmem:[%s1268_s3 + $0x148] sm:$0xff] }
  0x15   :  { %221 = vmatprep.subr.mxu1 %v140_v24  ;;  %v167_v61 = vld [vmem:[%s1268_s3 + $0x140] sm:$0xff]  ;;  %v166_v62 = vld [vmem:[%s1268_s3 + $0x138] sm:$0xff]  ;;  %v165_v63 = vld [vmem:[%s1268_s3 + $0x130] sm:$0xff] }
  0x16   :  { %222 = vmatpush1.msra.mxu1 %v139_v25  ;;  %v164_v0 = vld [vmem:[%s1268_s3 + $0x128] sm:$0xff]  ;;  %v163_v1 = vld [vmem:[%s1268_s3 + $0x120] sm:$0xff]  ;;  %v162_v2 = vld [vmem:[%s1268_s3 + $0x118] sm:$0xff] }
  0x17   :  { %223 = vmatprep.subr.mxu1 %v138_v26  ;;  %v161_v3 = vld [vmem:[%s1268_s3 + $0x110] sm:$0xff]  ;;  %v160_v4 = vld [vmem:[%s1268_s3 + $0x108] sm:$0xff]  ;;  %v159_v5 = vld [vmem:[%s1268_s3 + $0x100] sm:$0xff] }
  0x18   :  { %224 = vmatpush1.msra.mxu1 %v137_v27  ;;  %v337_v6 = vld [vmem:[%s1269_s5 + $0x1e8] sm:$0xff]  ;;  %v339_v7 = vld [vmem:[%s1269_s5 + $0x1f8] sm:$0xff]  ;;  %v336_v8 = vld [vmem:[%s1269_s5 + $0x1e0] sm:$0xff] }
  0x19   :  { %225 = vmatprep.subr.mxu1 %v136_v28  ;;  %426 = vmatprep.subr.mxu0 %v337_v6  ;;  %v333_v9 = vld [vmem:[%s1269_s5 + $0x1c8] sm:$0xff]  ;;  %v332_v10 = vld [vmem:[%s1269_s5 + $0x1c0] sm:$0xff] }
  0x1a   :  { %226 = vmatpush1.msra.mxu1 %v135_v29  ;;  %427 = vmatpush1.msra.mxu0 %v336_v8  ;;  %v329_v11 = vld [vmem:[%s1269_s5 + $0x1a8] sm:$0xff]  ;;  %v328_v12 = vld [vmem:[%s1269_s5 + $0x1a0] sm:$0xff] }
  0x1b   :  { %227 = vmatprep.subr.mxu1 %v134_v30  ;;  %428 = vmatprep.subr.mxu0 %v333_v9  ;;  %v325_v13 = vld [vmem:[%s1269_s5 + $0x188] sm:$0xff]  ;;  %v324_v14 = vld [vmem:[%s1269_s5 + $0x180] sm:$0xff] }
  0x1c   :  { %228 = vmatpush1.msra.mxu1 %v133_v31  ;;  %429 = vmatpush1.msra.mxu0 %v332_v10  ;;  %v321_v15 = vld [vmem:[%s1269_s5 + $0x168] sm:$0xff]  ;;  %v320_v16 = vld [vmem:[%s1269_s5 + $0x160] sm:$0xff] }
  0x1d   :  { %229 = vmatprep.subr.mxu1 %v132_v32  ;;  %430 = vmatprep.subr.mxu0 %v329_v11  ;;  %v317_v17 = vld [vmem:[%s1269_s5 + $0x148] sm:$0xff]  ;;  %v316_v18 = vld [vmem:[%s1269_s5 + $0x140] sm:$0xff] }
  0x1e   :  { %230 = vmatpush1.msra.mxu1 %v131_v33  ;;  %431 = vmatpush1.msra.mxu0 %v328_v12  ;;  %v313_v19 = vld [vmem:[%s1269_s5 + $0x128] sm:$0xff]  ;;  %v312_v20 = vld [vmem:[%s1269_s5 + $0x120] sm:$0xff]  ;;  %v338_v12 = vld [vmem:[%s1269_s5 + $0x1f0] sm:$0xff] }
  0x1f   :  { %231 = vmatprep.subr.mxu1 %v130_v34  ;;  %432 = vmatprep.subr.mxu0 %v325_v13  ;;  %v309_v21 = vld [vmem:[%s1269_s5 + $0x108] sm:$0xff]  ;;  %v308_v22 = vld [vmem:[%s1269_s5 + $0x100] sm:$0xff]  ;;  %v335_v13 = vld [vmem:[%s1269_s5 + $0x1d8] sm:$0xff] }
  0x20   :  { %232 = vmatpush1.msra.mxu1 %v129_v35  ;;  %433 = vmatpush1.msra.mxu0 %v324_v14  ;;  %v305_v23 = vld [vmem:[%s1269_s5 + $0xe8] sm:$0xff]  ;;  %v304_v24 = vld [vmem:[%s1269_s5 + $0xe0] sm:$0xff]  ;;  %v334_v14 = vld [vmem:[%s1269_s5 + $0x1d0] sm:$0xff] }
  0x21   :  { %233 = vmatprep.subr.mxu1 %v128_v36  ;;  %434 = vmatprep.subr.mxu0 %v321_v15  ;;  %v301_v25 = vld [vmem:[%s1269_s5 + $0xc8] sm:$0xff]  ;;  %v300_v26 = vld [vmem:[%s1269_s5 + $0xc0] sm:$0xff]  ;;  %v331_v15 = vld [vmem:[%s1269_s5 + $0x1b8] sm:$0xff] }
  0x22   :  { %234 = vmatpush1.msra.mxu1 %v127_v37  ;;  %435 = vmatpush1.msra.mxu0 %v320_v16  ;;  %v297_v27 = vld [vmem:[%s1269_s5 + $0xa8] sm:$0xff]  ;;  %v296_v28 = vld [vmem:[%s1269_s5 + $0xa0] sm:$0xff]  ;;  %v330_v16 = vld [vmem:[%s1269_s5 + $0x1b0] sm:$0xff] }
  0x23   :  { %235 = vmatprep.subr.mxu1 %v190_v38  ;;  %436 = vmatprep.subr.mxu0 %v317_v17  ;;  %v293_v29 = vld [vmem:[%s1269_s5 + $0x88] sm:$0xff]  ;;  %v292_v30 = vld [vmem:[%s1269_s5 + $0x80] sm:$0xff]  ;;  %v327_v17 = vld [vmem:[%s1269_s5 + $0x198] sm:$0xff] }
  0x24   :  { %236 = vmatpush2.msra.mxu1 %v189_v39  ;;  %437 = vmatpush1.msra.mxu0 %v316_v18  ;;  %v289_v31 = vld [vmem:[%s1269_s5 + $0x68] sm:$0xff]  ;;  %v288_v32 = vld [vmem:[%s1269_s5 + $0x60] sm:$0xff]  ;;  %v326_v18 = vld [vmem:[%s1269_s5 + $0x190] sm:$0xff] }
  0x25   :  { %237 = vmatprep.subr.mxu1 %v188_v40  ;;  %438 = vmatprep.subr.mxu0 %v313_v19  ;;  %v285_v33 = vld [vmem:[%s1269_s5 + $0x48] sm:$0xff]  ;;  %v284_v34 = vld [vmem:[%s1269_s5 + $0x40] sm:$0xff]  ;;  %v323_v19 = vld [vmem:[%s1269_s5 + $0x178] sm:$0xff] }
  0x26   :  { %238 = vmatpush2.msra.mxu1 %v187_v41  ;;  %439 = vmatpush1.msra.mxu0 %v312_v20  ;;  %v281_v35 = vld [vmem:[%s1269_s5 + $0x28] sm:$0xff]  ;;  %v280_v36 = vld [vmem:[%s1269_s5 + $0x20] sm:$0xff]  ;;  %v322_v20 = vld [vmem:[%s1269_s5 + $0x170] sm:$0xff] }
  0x27   :  { %239 = vmatprep.subr.mxu1 %v186_v42  ;;  %440 = vmatprep.subr.mxu0 %v309_v21  ;;  %v277_v37 = vld [vmem:[%s1269_s5 + $0x8] sm:$0xff]  ;;  %v276_v38 = vld [vmem:[%s1269_s5] sm:$0xff]  ;;  %v319_v21 = vld [vmem:[%s1269_s5 + $0x158] sm:$0xff] }
  0x28   :  { %240 = vmatpush2.msra.mxu1 %v185_v43  ;;  %441 = vmatpush1.msra.mxu0 %v308_v22  ;;  %v401_v39 = vld [vmem:[%s1269_s5 + $0x3e8] sm:$0xff]  ;;  %v400_v40 = vld [vmem:[%s1269_s5 + $0x3e0] sm:$0xff]  ;;  %v318_v22 = vld [vmem:[%s1269_s5 + $0x150] sm:$0xff] }
  0x29   :  { %241 = vmatprep.subr.mxu1 %v184_v44  ;;  %442 = vmatprep.subr.mxu0 %v305_v23  ;;  %v397_v41 = vld [vmem:[%s1269_s5 + $0x3c8] sm:$0xff]  ;;  %v396_v42 = vld [vmem:[%s1269_s5 + $0x3c0] sm:$0xff]  ;;  %v315_v23 = vld [vmem:[%s1269_s5 + $0x138] sm:$0xff] }
  0x2a   :  { %242 = vmatpush2.msra.mxu1 %v183_v45  ;;  %443 = vmatpush1.msra.mxu0 %v304_v24  ;;  %v393_v43 = vld [vmem:[%s1269_s5 + $0x3a8] sm:$0xff]  ;;  %v392_v44 = vld [vmem:[%s1269_s5 + $0x3a0] sm:$0xff]  ;;  %v314_v24 = vld [vmem:[%s1269_s5 + $0x130] sm:$0xff] }
  0x2b   :  { %243 = vmatprep.subr.mxu1 %v182_v46  ;;  %444 = vmatprep.subr.mxu0 %v301_v25  ;;  %v389_v45 = vld [vmem:[%s1269_s5 + $0x388] sm:$0xff]  ;;  %v388_v46 = vld [vmem:[%s1269_s5 + $0x380] sm:$0xff]  ;;  %v311_v25 = vld [vmem:[%s1269_s5 + $0x118] sm:$0xff] }
  0x2c   :  { %244 = vmatpush2.msra.mxu1 %v181_v47  ;;  %445 = vmatpush1.msra.mxu0 %v300_v26  ;;  %v385_v47 = vld [vmem:[%s1269_s5 + $0x368] sm:$0xff]  ;;  %v310_v26 = vld [vmem:[%s1269_s5 + $0x110] sm:$0xff] }
  0x2d   :  { %245 = vmatprep.subr.mxu1 %v180_v48  ;;  %446 = vmatprep.subr.mxu0 %v297_v27  ;;  %v384_v48 = vld [vmem:[%s1269_s5 + $0x360] sm:$0xff]  ;;  %v307_v27 = vld [vmem:[%s1269_s5 + $0xf8] sm:$0xff] }
  0x2e   :  { %246 = vmatpush2.msra.mxu1 %v179_v49  ;;  %447 = vmatpush1.msra.mxu0 %v296_v28  ;;  %v381_v49 = vld [vmem:[%s1269_s5 + $0x348] sm:$0xff]  ;;  %v306_v28 = vld [vmem:[%s1269_s5 + $0xf0] sm:$0xff] }
  0x2f   :  { %247 = vmatprep.subr.mxu1 %v178_v50  ;;  %448 = vmatprep.subr.mxu0 %v293_v29  ;;  %v380_v50 = vld [vmem:[%s1269_s5 + $0x340] sm:$0xff]  ;;  %v303_v29 = vld [vmem:[%s1269_s5 + $0xd8] sm:$0xff] }
  0x30   :  { %248 = vmatpush2.msra.mxu1 %v177_v51  ;;  %449 = vmatpush1.msra.mxu0 %v292_v30  ;;  %v377_v51 = vld [vmem:[%s1269_s5 + $0x328] sm:$0xff]  ;;  %v302_v30 = vld [vmem:[%s1269_s5 + $0xd0] sm:$0xff] }
  0x31   :  { %249 = vmatprep.subr.mxu1 %v176_v52  ;;  %450 = vmatprep.subr.mxu0 %v289_v31  ;;  %v376_v52 = vld [vmem:[%s1269_s5 + $0x320] sm:$0xff]  ;;  %v299_v31 = vld [vmem:[%s1269_s5 + $0xb8] sm:$0xff] }
  0x32   :  { %250 = vmatpush2.msra.mxu1 %v175_v53  ;;  %451 = vmatpush1.msra.mxu0 %v288_v32  ;;  %v373_v53 = vld [vmem:[%s1269_s5 + $0x308] sm:$0xff]  ;;  %v298_v32 = vld [vmem:[%s1269_s5 + $0xb0] sm:$0xff] }
  0x33   :  { %251 = vmatprep.subr.mxu1 %v174_v54  ;;  %452 = vmatprep.subr.mxu0 %v285_v33  ;;  %v372_v54 = vld [vmem:[%s1269_s5 + $0x300] sm:$0xff]  ;;  %v295_v33 = vld [vmem:[%s1269_s5 + $0x98] sm:$0xff] }
  0x34   :  { %252 = vmatpush2.msra.mxu1 %v173_v55  ;;  %453 = vmatpush1.msra.mxu0 %v284_v34  ;;  %v369_v55 = vld [vmem:[%s1269_s5 + $0x2e8] sm:$0xff]  ;;  %v294_v34 = vld [vmem:[%s1269_s5 + $0x90] sm:$0xff] }
  0x35   :  { %253 = vmatprep.subr.mxu1 %v172_v56  ;;  %454 = vmatprep.subr.mxu0 %v281_v35  ;;  %v368_v56 = vld [vmem:[%s1269_s5 + $0x2e0] sm:$0xff]  ;;  %v291_v35 = vld [vmem:[%s1269_s5 + $0x78] sm:$0xff] }
  0x36   :  { %254 = vmatpush2.msra.mxu1 %v171_v57  ;;  %455 = vmatpush1.msra.mxu0 %v280_v36  ;;  %v365_v57 = vld [vmem:[%s1269_s5 + $0x2c8] sm:$0xff]  ;;  %v290_v36 = vld [vmem:[%s1269_s5 + $0x70] sm:$0xff] }
  0x37   :  { %255 = vmatprep.subr.mxu1 %v170_v58  ;;  %456 = vmatprep.subr.mxu0 %v277_v37  ;;  %v364_v58 = vld [vmem:[%s1269_s5 + $0x2c0] sm:$0xff]  ;;  %v287_v37 = vld [vmem:[%s1269_s5 + $0x58] sm:$0xff] }
  0x38   :  { %256 = vmatpush2.msra.mxu1 %v169_v59  ;;  %457 = vmatpush1.msra.mxu0 %v276_v38  ;;  %v361_v59 = vld [vmem:[%s1269_s5 + $0x2a8] sm:$0xff]  ;;  %v286_v38 = vld [vmem:[%s1269_s5 + $0x50] sm:$0xff] }
  0x39   :  { %257 = vmatprep.subr.mxu1 %v168_v60  ;;  %458 = vmatprep.subr.mxu0 %v401_v39  ;;  %v360_v60 = vld [vmem:[%s1269_s5 + $0x2a0] sm:$0xff]  ;;  %v283_v39 = vld [vmem:[%s1269_s5 + $0x38] sm:$0xff] }
  0x3a   :  { %258 = vmatpush2.msra.mxu1 %v167_v61  ;;  %459 = vmatpush2.msra.mxu0 %v400_v40  ;;  %v357_v61 = vld [vmem:[%s1269_s5 + $0x288] sm:$0xff]  ;;  %v282_v40 = vld [vmem:[%s1269_s5 + $0x30] sm:$0xff] }
  0x3b   :  { %259 = vmatprep.subr.mxu1 %v166_v62  ;;  %460 = vmatprep.subr.mxu0 %v397_v41  ;;  %v356_v62 = vld [vmem:[%s1269_s5 + $0x280] sm:$0xff]  ;;  %v279_v41 = vld [vmem:[%s1269_s5 + $0x18] sm:$0xff] }
  0x3c   :  { %260 = vmatpush2.msra.mxu1 %v165_v63  ;;  %461 = vmatpush2.msra.mxu0 %v396_v42  ;;  %v33_v63 = vlaneseq  ;;  %v278_v42 = vld [vmem:[%s1269_s5 + $0x10] sm:$0xff] }
  0x3d   :  { %261 = vmatprep.subr.mxu1 %v164_v0  ;;  %462 = vmatprep.subr.mxu0 %v393_v43  ;;  %v403_v43 = vld [vmem:[%s1269_s5 + $0x3f8] sm:$0xff] }
  0x3e   :  { %262 = vmatpush2.msra.mxu1 %v163_v1  ;;  %463 = vmatpush2.msra.mxu0 %v392_v44  ;;  %v1024_v0 = vshrl.u32 %v33_v63, 7  ;;  %v402_v44 = vld [vmem:[%s1269_s5 + $0x3f0] sm:$0xff]  ;;  %v363_v63 = vld [vmem:[%s1269_s5 + $0x2b8] sm:$0xff] }
  0x3f   :  { %263 = vmatprep.subr.mxu1 %v162_v2  ;;  %464 = vmatprep.subr.mxu0 %v389_v45  ;;  %v31_v2 = vld [vmem:[%s1270_s2] sm:$0x3]  ;;  %v399_v45 = vld [vmem:[%s1269_s5 + $0x3d8] sm:$0xff] }
  0x40   :  { %264 = vmatpush2.msra.mxu1 %v161_v3  ;;  %465 = vmatpush2.msra.mxu0 %v388_v46  ;;  %v1027_v1 = vsub.s32 0, %v1024_v0  ;;  %v1033_v3 = vsub.s32 1, %v1024_v0  ;;  %v398_v46 = vld [vmem:[%s1269_s5 + $0x3d0] sm:$0xff] }
  0x41   :  { %265 = vmatprep.subr.mxu1 %v160_v4  ;;  %466 = vmatprep.subr.mxu0 %v385_v47  ;;  %v395_v47 = vld [vmem:[%s1269_s5 + $0x3b8] sm:$0xff] }
  0x42   :  { %266 = vmatpush2.msra.mxu1 %v159_v5  ;;  %467 = vmatpush2.msra.mxu0 %v384_v48  ;;  %v36_v4 = vrot.slane %v31_v2, %v1027_v1  ;;  %v40_v5 = vrot.slane %v31_v2, %v1033_v3  ;;  %v394_v48 = vld [vmem:[%s1269_s5 + $0x3b0] sm:$0xff] }
  0x43   :  { %497 = vmatprep.subr.mxu1 %v339_v7  ;;  %468 = vmatprep.subr.mxu0 %v381_v49  ;;  %v391_v49 = vld [vmem:[%s1269_s5 + $0x398] sm:$0xff]  ;;  %v362_v2 = vld [vmem:[%s1269_s5 + $0x2b0] sm:$0xff] }
  0x44   :  { %469 = vmatpush2.msra.mxu0 %v380_v50  ;;  %v390_v50 = vld [vmem:[%s1269_s5 + $0x390] sm:$0xff] }
  0x45   :  { %470 = vmatprep.subr.mxu0 %v377_v51  ;;  %v387_v51 = vld [vmem:[%s1269_s5 + $0x378] sm:$0xff] }
  0x46   :  { %471 = vmatpush2.msra.mxu0 %v376_v52  ;;  %v386_v52 = vld [vmem:[%s1269_s5 + $0x370] sm:$0xff] }
  0x47   :  { %472 = vmatprep.subr.mxu0 %v373_v53  ;;  %v383_v53 = vld [vmem:[%s1269_s5 + $0x358] sm:$0xff] }
  0x48   :  { %473 = vmatpush2.msra.mxu0 %v372_v54  ;;  %v382_v54 = vld [vmem:[%s1269_s5 + $0x350] sm:$0xff] }
  0x49   :  { %474 = vmatprep.subr.mxu0 %v369_v55  ;;  %v379_v55 = vld [vmem:[%s1269_s5 + $0x338] sm:$0xff] }
  0x4a   :  { %475 = vmatpush2.msra.mxu0 %v368_v56  ;;  %v378_v56 = vld [vmem:[%s1269_s5 + $0x330] sm:$0xff] }
  0x4b   :  { %476 = vmatprep.subr.mxu0 %v365_v57  ;;  %v375_v57 = vld [vmem:[%s1269_s5 + $0x318] sm:$0xff] }
  0x4c   :  { %477 = vmatpush2.msra.mxu0 %v364_v58  ;;  %v374_v58 = vld [vmem:[%s1269_s5 + $0x310] sm:$0xff] }
  0x4d   :  { %478 = vmatprep.subr.mxu0 %v361_v59  ;;  %v371_v59 = vld [vmem:[%s1269_s5 + $0x2f8] sm:$0xff] }
  0x4e   :  { %479 = vmatpush2.msra.mxu0 %v360_v60  ;;  %v370_v60 = vld [vmem:[%s1269_s5 + $0x2f0] sm:$0xff] }
  0x4f   :  { %480 = vmatprep.subr.mxu0 %v357_v61  ;;  %v367_v61 = vld [vmem:[%s1269_s5 + $0x2d8] sm:$0xff] }
  0x50   :  { %481 = vmatpush2.msra.mxu0 %v356_v62  ;;  %v366_v62 = vld [vmem:[%s1269_s5 + $0x2d0] sm:$0xff] }
  0xc6   :  { %v120_v6 = vpop.f32.mrf.mxu0 }
  0xc7   :  { %v121_v7 = vadd.f32 %v120_v6, %v36_v4  ;;  %v359_v4 = vld [vmem:[%s1269_s5 + $0x298] sm:$0xff]  ;;  %v353_v6 = vld [vmem:[%s1269_s5 + $0x268] sm:$0xff] }
  0xc8   :  { %v122_v8 = vpop.f32.mrf.mxu0  ;;  %482 = vmatprep.subr.mxu0 %v353_v6 }
  0xc9   :  { %v123_v9 = vadd.f32 %v122_v8, %v40_v5  ;;  %v125_v11 = vmax.f32 %v121_v7, 0.0  ;;  %v358_v5 = vld [vmem:[%s1269_s5 + $0x290] sm:$0xff]  ;;  %v355_v7 = vld [vmem:[%s1269_s5 + $0x278] sm:$0xff]  ;;  %v352_v8 = vld [vmem:[%s1269_s5 + $0x260] sm:$0xff] }
  0xca   :  { %483 = vmatpush2.msra.mxu0 %v352_v8 }
  0xcb   :  { %v126_v10 = vmax.f32 %v123_v9, 0.0  ;;  %v354_v9 = vld [vmem:[%s1269_s5 + $0x270] sm:$0xff] }
  0xcd   :  { %267 = vmatprep.mubr.f32.mxu1 %v126_v10  ;;  %v349_v10 = vld [vmem:[%s1269_s5 + $0x248] sm:$0xff] }
  0xce   :  { %268 = vmatmul.mubr.f32.vlgmr.msra.gmra.mxu1 %v125_v11  ;;  %v351_v11 = vld [vmem:[%s1269_s5 + $0x258] sm:$0xff]  ;;  %484 = vmatprep.subr.mxu0 %v349_v10 }
  0xcf   :  { %498 = vmatpush1.msra.mxu1 %v338_v12  ;;  %v348_v12 = vld [vmem:[%s1269_s5 + $0x240] sm:$0xff] }
  0xd0   :  { %499 = vmatprep.subr.mxu1 %v335_v13  ;;  %v350_v13 = vld [vmem:[%s1269_s5 + $0x250] sm:$0xff]  ;;  %485 = vmatpush2.msra.mxu0 %v348_v12 }
  0xd1   :  { %500 = vmatpush1.msra.mxu1 %v334_v14  ;;  %v345_v14 = vld [vmem:[%s1269_s5 + $0x228] sm:$0xff] }
  0xd2   :  { %501 = vmatprep.subr.mxu1 %v331_v15  ;;  %v347_v15 = vld [vmem:[%s1269_s5 + $0x238] sm:$0xff]  ;;  %486 = vmatprep.subr.mxu0 %v345_v14 }
  0xd3   :  { %502 = vmatpush1.msra.mxu1 %v330_v16  ;;  %v344_v16 = vld [vmem:[%s1269_s5 + $0x220] sm:$0xff] }
  0xd4   :  { %503 = vmatprep.subr.mxu1 %v327_v17  ;;  %v346_v17 = vld [vmem:[%s1269_s5 + $0x230] sm:$0xff]  ;;  %487 = vmatpush2.msra.mxu0 %v344_v16 }
  0xd5   :  { %504 = vmatpush1.msra.mxu1 %v326_v18  ;;  %v341_v18 = vld [vmem:[%s1269_s5 + $0x208] sm:$0xff] }
  0xd6   :  { %505 = vmatprep.subr.mxu1 %v323_v19  ;;  %v343_v19 = vld [vmem:[%s1269_s5 + $0x218] sm:$0xff]  ;;  %488 = vmatprep.subr.mxu0 %v341_v18 }
  0xd7   :  { %506 = vmatpush1.msra.mxu1 %v322_v20  ;;  %v340_v20 = vld [vmem:[%s1269_s5 + $0x200] sm:$0xff] }
  0xd8   :  { %507 = vmatprep.subr.mxu1 %v319_v21  ;;  %v342_v21 = vld [vmem:[%s1269_s5 + $0x210] sm:$0xff]  ;;  %489 = vmatpush2.msra.mxu0 %v340_v20 }
  0xd9   :  { %508 = vmatpush1.msra.mxu1 %v318_v22  ;;  %v191_v22 = vld [vmem:[%s1271_s4] sm:$0x3] }
  0xda   :  { %509 = vmatprep.subr.mxu1 %v315_v23  ;;  %v196_v23 = vrot.slane %v191_v22, %v1027_v1 }
  0xdb   :  { %510 = vmatpush1.msra.mxu1 %v314_v24  ;;  %v200_v24 = vrot.slane %v191_v22, %v1033_v3 }
  0xdc   :  { %511 = vmatprep.subr.mxu1 %v311_v25 }
  0xdd   :  { %512 = vmatpush1.msra.mxu1 %v310_v26 }
  0xde   :  { %513 = vmatprep.subr.mxu1 %v307_v27 }
  0xdf   :  { %514 = vmatpush1.msra.mxu1 %v306_v28 }
  0xe0   :  { %515 = vmatprep.subr.mxu1 %v303_v29 }
  0xe1   :  { %516 = vmatpush1.msra.mxu1 %v302_v30 }
  0xe2   :  { %517 = vmatprep.subr.mxu1 %v299_v31  ;;  %v416_v31 = vsub.s32 2, %v1024_v0 }
  0xe3   :  { %518 = vmatpush1.msra.mxu1 %v298_v32  ;;  %v404_v32 = vld [vmem:[%s1272_s6] sm:$0xf] }
  0xe4   :  { %519 = vmatprep.subr.mxu1 %v295_v33  ;;  %v420_v33 = vsub.s32 3, %v1024_v0 }
  0xe5   :  { %520 = vmatpush1.msra.mxu1 %v294_v34  ;;  %v605_v34 = vmov 1983009808  }
  0xe6   :  { %521 = vmatprep.subr.mxu1 %v291_v35  ;;  %v579_v35 = vunpack.c.l.s4 %v605_v34 }
  0xe7   :  { %522 = vmatpush1.msra.mxu1 %v290_v36  ;;  %v409_v36 = vrot.slane %v404_v32, %v1027_v1 }
  0xe8   :  { %523 = vmatprep.subr.mxu1 %v287_v37  ;;  %v417_v37 = vrot.slane %v404_v32, %v416_v31 }
  0xe9   :  { %524 = vmatpush1.msra.mxu1 %v286_v38  ;;  %v413_v38 = vrot.slane %v404_v32, %v1033_v3 }
  0xea   :  { %525 = vmatprep.subr.mxu1 %v283_v39  ;;  %v421_v39 = vrot.slane %v404_v32, %v420_v33 }
  0xeb   :  { %526 = vmatpush1.msra.mxu1 %v282_v40 }
  0xec   :  { %527 = vmatprep.subr.mxu1 %v279_v41 }
  0xed   :  { %528 = vmatpush1.msra.mxu1 %v278_v42  ;;  %v580_v42 = vunpack.c.0.s8 %v579_v35 }
  0xee   :  { %529 = vmatprep.subr.mxu1 %v403_v43 }
  0xef   :  { %530 = vmatpush2.msra.mxu1 %v402_v44 }
  0xf0   :  { %531 = vmatprep.subr.mxu1 %v399_v45 }
  0xf1   :  { %532 = vmatpush2.msra.mxu1 %v398_v46 }
  0xf2   :  { %533 = vmatprep.subr.mxu1 %v395_v47 }
  0xf3   :  { %534 = vmatpush2.msra.mxu1 %v394_v48 }
  0xf4   :  { %535 = vmatprep.subr.mxu1 %v391_v49  ;;  %v583_v49 = vsub.s32 %v580_v42, %v1024_v0 }
  0xf5   :  { %536 = vmatpush2.msra.mxu1 %v390_v50 }
  0xf6   :  { %537 = vmatprep.subr.mxu1 %v387_v51 }
  0xf7   :  { %538 = vmatpush2.msra.mxu1 %v386_v52 }
  0xf8   :  { %539 = vmatprep.subr.mxu1 %v383_v53 }
  0xf9   :  { %540 = vmatpush2.msra.mxu1 %v382_v54 }
  0xfa   :  { %541 = vmatprep.subr.mxu1 %v379_v55 }
  0xfb   :  { %542 = vmatpush2.msra.mxu1 %v378_v56 }
  0xfc   :  { %543 = vmatprep.subr.mxu1 %v375_v57 }
  0xfd   :  { %544 = vmatpush2.msra.mxu1 %v374_v58 }
  0xfe   :  { %545 = vmatprep.subr.mxu1 %v371_v59 }
  0xff   :  { %546 = vmatpush2.msra.mxu1 %v370_v60 }
 0x100   :  { %547 = vmatprep.subr.mxu1 %v367_v61 }
 0x101   :  { %548 = vmatpush2.msra.mxu1 %v366_v62 }
 0x102   :  { %549 = vmatprep.subr.mxu1 %v363_v63 }
 0x103   :  { %550 = vmatpush2.msra.mxu1 %v362_v2 }
 0x104   :  { %551 = vmatprep.subr.mxu1 %v359_v4 }
 0x105   :  { %552 = vmatpush2.msra.mxu1 %v358_v5 }
 0x106   :  { %553 = vmatprep.subr.mxu1 %v355_v7 }
 0x107   :  { %554 = vmatpush2.msra.mxu1 %v354_v9 }
 0x108   :  { %555 = vmatprep.subr.mxu1 %v351_v11 }
 0x109   :  { %556 = vmatpush2.msra.mxu1 %v350_v13 }
 0x10a   :  { %557 = vmatprep.subr.mxu1 %v347_v15 }
 0x10b   :  { %558 = vmatpush2.msra.mxu1 %v346_v17 }
 0x10c   :  { %559 = vmatprep.subr.mxu1 %v343_v19 }
 0x10d   :  { %560 = vmatpush2.msra.mxu1 %v342_v21 }
 0x18e   :  { %v269_v25 = vpop.f32.mrf.mxu1 }
 0x18f   :  { %v270_v26 = vadd.f32 %v269_v25, %v196_v23 }
 0x190   :  { %v271_v27 = vpop.f32.mrf.mxu1 }
 0x191   :  { %v272_v28 = vadd.f32 %v271_v27, %v200_v24  ;;  %v274_v30 = vmax.f32 %v270_v26, 0.0 }
 0x193   :  { %v275_v29 = vmax.f32 %v272_v28, 0.0 }
 0x195   :  { %490 = vmatprep.mubr.f32.mxu0 %v275_v29  ;;  %561 = vmatprep.mubr.f32.mxu1 %v275_v29 }
 0x196   :  { %491 = vmatmul.mubr.f32.vlgmr.msra.gmra.mxu0 %v274_v30  ;;  %562 = vmatmul.mubr.f32.vlgmr.msra.gmra.mxu1 %v274_v30 }
 0x256   :  { %v492_v40 = vpop.f32.mrf.mxu0  ;;  %v563_v41 = vpop.f32.mrf.mxu1 }
 0x257   :  { %v493_v43 = vadd.f32 %v492_v40, %v409_v36  ;;  %v564_v44 = vadd.f32 %v563_v41, %v417_v37 }
 0x258   :  { %v494_v45 = vpop.f32.mrf.mxu0  ;;  %v565_v46 = vpop.f32.mrf.mxu1 }
 0x259   :  { %v495_v47 = vadd.f32 %v494_v45, %v413_v38  ;;  %v566_v48 = vadd.f32 %v565_v46, %v421_v39  ;;  %v568_v50 = vmax.f32 %v493_v43, 0.0  ;;  %v570_v51 = vmax.f32 %v564_v44, 0.0 }
 0x25b   :  { %v569_v52 = vmax.f32 %v495_v47, 0.0  ;;  %v571_v53 = vmax.f32 %v566_v48, 0.0 }
 0x25d   :  { %v576_v1 = vcombine.low %v568_v50, %v569_v52  ;;  %v577_v54 = vcombine.low %v570_v51, %v571_v53 }
 0x25f   :  { %v584_v55 = vrot.slane %v576_v1, %v583_v49  ;;  %v591_v3 = vrot.slane %v577_v54, %v583_v49 }
 0x261   :  { %v592_v56 = vcombine.low %v584_v55, %v591_v3 }
 0x263   :  { %594 = vst [vmem:[%s1273_s7] sm:$0xff] %v592_v56 }

// kernel: vae_forward.13
= control target key start
LH: loop header
LB: loop body
LE: loop exit
PB: predicated region body
PF: predicated region fallthrough
CT: control target
= control target key end

     0   :  { %vm69_vm0 = vcmask 261120   ;;  %s518_s1 = inlined_call_operand.vmem [shape: f32[288,128], index: 1, kind: input, shape index: {}]   ;;  %s519_s0 = inlined_call_operand.vmem [shape: f32[32,288], index: 0, kind: input, shape index: {}]   ;;  %s520_s2 = inlined_call_operand.vmem [shape: f32[1,128], index: 2, kind: input, shape index: {}]   ;;  %s521_s3 = inlined_call_operand.vmem [shape: f32[32,128], index: 3, kind: output, shape index: {}]  }
   0x1   :  { %v57_v0 = vld [vmem:[%s518_s1 + $0xf8] sm:$0xff]  ;;  %v56_v2 = vld [vmem:[%s518_s1 + $0xf0] sm:$0xff]  ;;  %v55_v4 = vld [vmem:[%s518_s1 + $0xe8] sm:$0xff] }
   0x2   :  { %v41_v1 = vld [vmem:[%s518_s1 + $0x78] sm:$0xff]  ;;  %269 = vmatprep.subr.mxu0 %v57_v0  ;;  %v40_v3 = vld [vmem:[%s518_s1 + $0x70] sm:$0xff]  ;;  %v39_v5 = vld [vmem:[%s518_s1 + $0x68] sm:$0xff] }
   0x3   :  { %270 = vmatpush3.msra.mxu0 %v41_v1  ;;  %v54_v6 = vld [vmem:[%s518_s1 + $0xe0] sm:$0xff]  ;;  %v53_v8 = vld [vmem:[%s518_s1 + $0xd8] sm:$0xff]  ;;  %v52_v10 = vld [vmem:[%s518_s1 + $0xd0] sm:$0xff] }
   0x4   :  { %271 = vmatprep.subr.mxu0 %v56_v2  ;;  %v38_v7 = vld [vmem:[%s518_s1 + $0x60] sm:$0xff]  ;;  %v37_v9 = vld [vmem:[%s518_s1 + $0x58] sm:$0xff]  ;;  %v36_v11 = vld [vmem:[%s518_s1 + $0x50] sm:$0xff] }
   0x5   :  { %272 = vmatpush3.msra.mxu0 %v40_v3  ;;  %v61_v12 = vld [vmem:[%s518_s1 + $0x118] sm:$0xff]  ;;  %v51_v13 = vld [vmem:[%s518_s1 + $0xc8] sm:$0xff]  ;;  %v60_v14 = vld [vmem:[%s518_s1 + $0x110] sm:$0xff] }
   0x6   :  { %273 = vmatprep.subr.mxu0 %v55_v4  ;;  %321 = vmatprep.subr.mxu1 %v61_v12  ;;  %v35_v15 = vld [vmem:[%s518_s1 + $0x48] sm:$0xff]  ;;  %v50_v17 = vld [vmem:[%s518_s1 + $0xc0] sm:$0xff]  ;;  %v49_v20 = vld [vmem:[%s518_s1 + $0xb8] sm:$0xff] }
   0x7   :  { %274 = vmatpush3.msra.mxu0 %v39_v5  ;;  %322 = vmatpush3.msra.mxu1 %v61_v12  ;;  %v15_v16 = vld [vmem:[%s519_s0 + $0x8] sm:$0xff]  ;;  %v34_v19 = vld [vmem:[%s518_s1 + $0x40] sm:$0xff]  ;;  %v33_v22 = vld [vmem:[%s518_s1 + $0x38] sm:$0xff] }
   0x8   :  { %275 = vmatprep.subr.mxu0 %v54_v6  ;;  %323 = vmatprep.subr.mxu1 %v60_v14  ;;  %v59_v18 = vld [vmem:[%s518_s1 + $0x108] sm:$0xff]  ;;  %v58_v21 = vld [vmem:[%s518_s1 + $0x100] sm:$0xff]  ;;  %v48_v23 = vld [vmem:[%s518_s1 + $0xb0] sm:$0xff] }
   0x9   :  { %276 = vmatpush3.msra.mxu0 %v38_v7  ;;  %146 = vmatprep.mubr.f32.mxu0 %v15_v16  ;;  %v16_v24 = vld [vmem:[%s519_s0 + $0x10] sm:$0xff]  ;;  %v19_v26 = vld [vmem:[%s519_s0 + $0x28] sm:$0xff]  ;;  %v22_v28 = vld [vmem:[%s519_s0 + $0x40] sm:$0xff] }
   0xa   :  { %277 = vmatprep.subr.mxu0 %v53_v8  ;;  %324 = vmatpush3.msra.mxu1 %v60_v14  ;;  %v32_v25 = vld [vmem:[%s518_s1 + $0x30] sm:$0xff]  ;;  %v47_v27 = vld [vmem:[%s518_s1 + $0xa8] sm:$0xff]  ;;  %v46_v30 = vld [vmem:[%s518_s1 + $0xa0] sm:$0xff] }
   0xb   :  { %278 = vmatpush3.msra.mxu0 %v37_v9  ;;  %325 = vmatprep.subr.mxu1 %v59_v18  ;;  %v31_v29 = vld [vmem:[%s518_s1 + $0x28] sm:$0xff]  ;;  %v30_v31 = vld [vmem:[%s518_s1 + $0x20] sm:$0xff]  ;;  %v25_v32 = vld [vmem:[%s519_s0 + $0x58] sm:$0xff] }
   0xc   :  { %279 = vmatprep.subr.mxu0 %v52_v10  ;;  %326 = vmatpush3.msra.mxu1 %v59_v18  ;;  %v45_v33 = vld [vmem:[%s518_s1 + $0x98] sm:$0xff]  ;;  %v44_v35 = vld [vmem:[%s518_s1 + $0x90] sm:$0xff]  ;;  %v43_v37 = vld [vmem:[%s518_s1 + $0x88] sm:$0xff] }
   0xd   :  { %280 = vmatpush3.msra.mxu0 %v36_v11  ;;  %327 = vmatprep.subr.mxu1 %v58_v21  ;;  %v29_v34 = vld [vmem:[%s518_s1 + $0x18] sm:$0xff]  ;;  %v28_v36 = vld [vmem:[%s518_s1 + $0x10] sm:$0xff]  ;;  %v27_v38 = vld [vmem:[%s518_s1 + $0x8] sm:$0xff] }
   0xe   :  { %281 = vmatprep.subr.mxu0 %v51_v13  ;;  %328 = vmatpush3.msra.mxu1 %v58_v21  ;;  %v42_v39 = vld [vmem:[%s518_s1 + $0x80] sm:$0xff]  ;;  %v17_v43 = vld [vmem:[%s519_s0 + $0x18] sm:$0xff]  ;;  %v20_v45 = vld [vmem:[%s519_s0 + $0x30] sm:$0xff] }
   0xf   :  { %282 = vmatpush3.msra.mxu0 %v35_v15  ;;  %329 = vmatprep.mubr.msk.f32.mxu1 %vm69_vm0, %v16_v24  ;;  %v26_v40 = vld [vmem:[%s518_s1] sm:$0xff]  ;;  %v21_v44 = vld [vmem:[%s519_s0 + $0x38] sm:$0xff]  ;;  %v24_v46 = vld [vmem:[%s519_s0 + $0x50] sm:$0xff] }
  0x10   :  { %283 = vmatprep.subr.mxu0 %v50_v17  ;;  %330 = vmatmul.mubr.msk.f32.vlgmr.msra.gmra.mxu1 %vm69_vm0, %v19_v26  ;;  %v14_v41 = vld [vmem:[%s519_s0] sm:$0xff]  ;;  %v23_v47 = vld [vmem:[%s519_s0 + $0x48] sm:$0xff] }
  0x11   :  { %284 = vmatpush3.msra.mxu0 %v34_v19  ;;  %332 = vmatprep.mubr.msk.f32.mxu1 %vm69_vm0, %v22_v28  ;;  %v18_v42 = vld [vmem:[%s519_s0 + $0x20] sm:$0xff] }
  0x12   :  { %285 = vmatprep.subr.mxu0 %v49_v20  ;;  %v264_v51 = vld [vmem:[%s520_s2] ss:$0 sm:$0xff] }
  0x13   :  { %286 = vmatpush3.msra.mxu0 %v33_v22 }
  0x14   :  { %287 = vmatprep.subr.mxu0 %v48_v23  ;;  %333 = vmatmul.mubr.msk.f32.gmra.mxu1 %vm69_vm0, %v25_v32 }
  0x15   :  { %288 = vmatpush3.msra.mxu0 %v32_v25 }
  0x16   :  { %289 = vmatprep.subr.mxu0 %v47_v27 }
  0x17   :  { %290 = vmatpush3.msra.mxu0 %v31_v29 }
  0x18   :  { %291 = vmatprep.subr.mxu0 %v46_v30 }
  0x19   :  { %292 = vmatpush3.msra.mxu0 %v30_v31 }
  0x1a   :  { %293 = vmatprep.subr.mxu0 %v45_v33 }
  0x1b   :  { %294 = vmatpush3.msra.mxu0 %v29_v34 }
  0x1c   :  { %295 = vmatprep.subr.mxu0 %v44_v35 }
  0x1d   :  { %296 = vmatpush3.msra.mxu0 %v28_v36 }
  0x1e   :  { %297 = vmatprep.subr.mxu0 %v43_v37 }
  0x1f   :  { %298 = vmatpush3.msra.mxu0 %v27_v38 }
  0x20   :  { %299 = vmatprep.subr.mxu0 %v42_v39 }
  0x21   :  { %300 = vmatpush3.msra.mxu0 %v26_v40 }
  0x22   :  { %147 = vmatmul.mubr.f32.vlgmr.msra.gmra.mxu0 %v14_v41 }
  0x23   :  { %151 = vmatprep.mubr.f32.mxu0 %v18_v42 }
  0x26   :  { %152 = vmatmul.mubr.f32.gmra.mxu0 %v17_v43 }
  0x27   :  { %156 = vmatprep.mubr.f32.mxu0 %v21_v44 }
  0x2a   :  { %157 = vmatmul.mubr.f32.gmra.mxu0 %v20_v45 }
  0x2b   :  { %161 = vmatprep.mubr.f32.mxu0 %v24_v46 }
  0x2e   :  { %162 = vmatmul.mubr.f32.gmra.mxu0 %v23_v47 }
  0xd0   :  { %v331_v49 = vpop.f32.mrf.mxu1 }
  0xd2   :  { %v233_v54 = vpop.f32.mrf.mxu1 }
  0xd4   :  { %v334_v60 = vpop.f32.mrf.mxu1 }
  0xd6   :  { %v243_v3 = vpop.f32.mrf.mxu1 }
  0xe2   :  { %v301_v48 = vpop.f32.mrf.mxu0 }
  0xe4   :  { %v302_v50 = vpop.f32.mrf.mxu0 }
  0xe5   :  { %v303_v52 = vadd.f32 %v302_v50, %v301_v48 }
  0xe6   :  { %v304_v53 = vpop.f32.mrf.mxu0 }
  0xe7   :  { %v149_v55 = vadd.f32 %v303_v52, %v264_v51 }
  0xe8   :  { %v305_v56 = vpop.f32.mrf.mxu0 }
  0xe9   :  { %v306_v57 = vadd.f32 %v305_v56, %v304_v53  ;;  %v234_v58 = vadd.f32 %v233_v54, %v149_v55 }
  0xea   :  { %v307_v59 = vpop.f32.mrf.mxu0 }
  0xeb   :  { %v154_v61 = vadd.f32 %v306_v57, %v264_v51  ;;  %v252_v62 = vmax.f32 %v234_v58, 0.0 }
  0xec   :  { %v308_v63 = vpop.f32.mrf.mxu0 }
  0xed   :  { %v239_v0 = vadd.f32 %v331_v49, %v154_v61  ;;  %256 = vst [vmem:[%s521_s3] sm:$0xff] %v252_v62  ;;  %v309_v1 = vadd.f32 %v308_v63, %v307_v59 }
  0xee   :  { %v310_v2 = vpop.f32.mrf.mxu0 }
  0xef   :  { %v253_v4 = vmax.f32 %v239_v0, 0.0  ;;  %v159_v5 = vadd.f32 %v309_v1, %v264_v51 }
  0xf0   :  { %v311_v6 = vpop.f32.mrf.mxu0 }
  0xf1   :  { %257 = vst [vmem:[%s521_s3 + $0x8] sm:$0xff] %v253_v4  ;;  %v312_v7 = vadd.f32 %v311_v6, %v310_v2  ;;  %v244_v8 = vadd.f32 %v243_v3, %v159_v5 }
  0xf3   :  { %v164_v9 = vadd.f32 %v312_v7, %v264_v51  ;;  %v254_v10 = vmax.f32 %v244_v8, 0.0 }
  0xf5   :  { %v249_v11 = vadd.f32 %v334_v60, %v164_v9  ;;  %258 = vst [vmem:[%s521_s3 + $0x10] sm:$0xff] %v254_v10 }
  0xf7   :  { %v255_v12 = vmax.f32 %v249_v11, 0.0 }
  0xf9   :  { %259 = vst [vmem:[%s521_s3 + $0x18] sm:$0xff] %v255_v12 }

// kernel: vae_forward.14
= control target key start
LH: loop header
LB: loop body
LE: loop exit
PB: predicated region body
PF: predicated region fallthrough
CT: control target
= control target key end

     0   :  { %vm105_vm0 = vcmask 261120   ;;  %s1042_s1 = inlined_call_operand.vmem [shape: f32[288,128], index: 1, kind: input, shape index: {}]   ;;  %s1043_s0 = inlined_call_operand.vmem [shape: f32[128,288], index: 0, kind: input, shape index: {}]   ;;  %s1044_s2 = inlined_call_operand.vmem [shape: f32[1,128], index: 2, kind: input, shape index: {}]   ;;  %s1045_s3 = inlined_call_operand.vmem [shape: f32[128,128], index: 3, kind: output, shape index: {}]  }
   0x1   :  { %v93_v0 = vld [vmem:[%s1042_s1 + $0xf8] sm:$0xff]  ;;  %v92_v2 = vld [vmem:[%s1042_s1 + $0xf0] sm:$0xff]  ;;  %v91_v4 = vld [vmem:[%s1042_s1 + $0xe8] sm:$0xff] }
   0x2   :  { %v77_v1 = vld [vmem:[%s1042_s1 + $0x78] sm:$0xff]  ;;  %497 = vmatprep.subr.mxu0 %v93_v0  ;;  %629 = vmatprep.subr.mxu1 %v93_v0  ;;  %v76_v3 = vld [vmem:[%s1042_s1 + $0x70] sm:$0xff]  ;;  %v75_v5 = vld [vmem:[%s1042_s1 + $0x68] sm:$0xff] }
   0x3   :  { %498 = vmatpush3.msra.mxu0 %v77_v1  ;;  %645 = vmatpush3.msra.mxu1 %v77_v1  ;;  %v90_v6 = vld [vmem:[%s1042_s1 + $0xe0] sm:$0xff]  ;;  %v89_v8 = vld [vmem:[%s1042_s1 + $0xd8] sm:$0xff]  ;;  %v88_v10 = vld [vmem:[%s1042_s1 + $0xd0] sm:$0xff] }
   0x4   :  { %499 = vmatprep.subr.mxu0 %v92_v2  ;;  %630 = vmatprep.subr.mxu1 %v92_v2  ;;  %v74_v7 = vld [vmem:[%s1042_s1 + $0x60] sm:$0xff]  ;;  %v73_v9 = vld [vmem:[%s1042_s1 + $0x58] sm:$0xff]  ;;  %v72_v11 = vld [vmem:[%s1042_s1 + $0x50] sm:$0xff] }
   0x5   :  { %500 = vmatpush3.msra.mxu0 %v76_v3  ;;  %646 = vmatpush3.msra.mxu1 %v76_v3  ;;  %v87_v12 = vld [vmem:[%s1042_s1 + $0xc8] sm:$0xff]  ;;  %v86_v14 = vld [vmem:[%s1042_s1 + $0xc0] sm:$0xff]  ;;  %v85_v16 = vld [vmem:[%s1042_s1 + $0xb8] sm:$0xff] }
   0x6   :  { %501 = vmatprep.subr.mxu0 %v91_v4  ;;  %631 = vmatprep.subr.mxu1 %v91_v4  ;;  %v71_v13 = vld [vmem:[%s1042_s1 + $0x48] sm:$0xff]  ;;  %v70_v15 = vld [vmem:[%s1042_s1 + $0x40] sm:$0xff]  ;;  %v69_v17 = vld [vmem:[%s1042_s1 + $0x38] sm:$0xff] }
   0x7   :  { %502 = vmatpush3.msra.mxu0 %v75_v5  ;;  %647 = vmatpush3.msra.mxu1 %v75_v5  ;;  %v84_v18 = vld [vmem:[%s1042_s1 + $0xb0] sm:$0xff]  ;;  %v83_v20 = vld [vmem:[%s1042_s1 + $0xa8] sm:$0xff]  ;;  %v82_v22 = vld [vmem:[%s1042_s1 + $0xa0] sm:$0xff] }
   0x8   :  { %503 = vmatprep.subr.mxu0 %v90_v6  ;;  %632 = vmatprep.subr.mxu1 %v90_v6  ;;  %v68_v19 = vld [vmem:[%s1042_s1 + $0x30] sm:$0xff]  ;;  %v67_v21 = vld [vmem:[%s1042_s1 + $0x28] sm:$0xff]  ;;  %v66_v23 = vld [vmem:[%s1042_s1 + $0x20] sm:$0xff] }
   0x9   :  { %504 = vmatpush3.msra.mxu0 %v74_v7  ;;  %648 = vmatpush3.msra.mxu1 %v74_v7  ;;  %v81_v24 = vld [vmem:[%s1042_s1 + $0x98] sm:$0xff]  ;;  %v80_v26 = vld [vmem:[%s1042_s1 + $0x90] sm:$0xff]  ;;  %v79_v28 = vld [vmem:[%s1042_s1 + $0x88] sm:$0xff] }
   0xa   :  { %505 = vmatprep.subr.mxu0 %v89_v8  ;;  %633 = vmatprep.subr.mxu1 %v89_v8  ;;  %v65_v25 = vld [vmem:[%s1042_s1 + $0x18] sm:$0xff]  ;;  %v64_v27 = vld [vmem:[%s1042_s1 + $0x10] sm:$0xff]  ;;  %v63_v29 = vld [vmem:[%s1042_s1 + $0x8] sm:$0xff] }
   0xb   :  { %506 = vmatpush3.msra.mxu0 %v73_v9  ;;  %649 = vmatpush3.msra.mxu1 %v73_v9  ;;  %v78_v30 = vld [vmem:[%s1042_s1 + $0x80] sm:$0xff]  ;;  %v15_v32 = vld [vmem:[%s1043_s0 + $0x8] sm:$0xff]  ;;  %v97_v38 = vld [vmem:[%s1042_s1 + $0x118] sm:$0xff] }
   0xc   :  { %507 = vmatprep.subr.mxu0 %v88_v10  ;;  %634 = vmatprep.subr.mxu1 %v88_v10  ;;  %v62_v31 = vld [vmem:[%s1042_s1] sm:$0xff]  ;;  %v51_v33 = vld [vmem:[%s1043_s0 + $0x128] sm:$0xff]  ;;  %v17_v39 = vld [vmem:[%s1043_s0 + $0x18] sm:$0xff] }
   0xd   :  { %508 = vmatpush3.msra.mxu0 %v72_v11  ;;  %650 = vmatpush3.msra.mxu1 %v72_v11  ;;  %v14_v34 = vld [vmem:[%s1043_s0] sm:$0xff]  ;;  %v53_v40 = vld [vmem:[%s1043_s0 + $0x138] sm:$0xff]  ;;  %v96_v43 = vld [vmem:[%s1042_s1 + $0x110] sm:$0xff] }
   0xe   :  { %509 = vmatprep.subr.mxu0 %v87_v12  ;;  %635 = vmatprep.subr.mxu1 %v87_v12  ;;  %v50_v35 = vld [vmem:[%s1043_s0 + $0x120] sm:$0xff]  ;;  %v21_v41 = vld [vmem:[%s1043_s0 + $0x38] sm:$0xff]  ;;  %v20_v44 = vld [vmem:[%s1043_s0 + $0x30] sm:$0xff] }
   0xf   :  { %510 = vmatpush3.msra.mxu0 %v71_v13  ;;  %651 = vmatpush3.msra.mxu1 %v71_v13  ;;  %v18_v36 = vld [vmem:[%s1043_s0 + $0x20] sm:$0xff]  ;;  %v57_v42 = vld [vmem:[%s1043_s0 + $0x158] sm:$0xff]  ;;  %v56_v45 = vld [vmem:[%s1043_s0 + $0x150] sm:$0xff] }
  0x10   :  { %511 = vmatprep.subr.mxu0 %v86_v14  ;;  %636 = vmatprep.subr.mxu1 %v86_v14  ;;  %v54_v37 = vld [vmem:[%s1043_s0 + $0x140] sm:$0xff]  ;;  %v24_v46 = vld [vmem:[%s1043_s0 + $0x50] sm:$0xff]  ;;  %v95_v48 = vld [vmem:[%s1042_s1 + $0x108] sm:$0xff] }
  0x11   :  { %512 = vmatpush3.msra.mxu0 %v70_v15  ;;  %652 = vmatpush3.msra.mxu1 %v70_v15  ;;  %v60_v47 = vld [vmem:[%s1043_s0 + $0x170] sm:$0xff]  ;;  %v23_v49 = vld [vmem:[%s1043_s0 + $0x48] sm:$0xff]  ;;  %v94_v51 = vld [vmem:[%s1042_s1 + $0x100] sm:$0xff] }
  0x12   :  { %513 = vmatprep.subr.mxu0 %v85_v16  ;;  %637 = vmatprep.subr.mxu1 %v85_v16  ;;  %v59_v50 = vld [vmem:[%s1043_s0 + $0x168] sm:$0xff]  ;;  %v16_v53 = vld [vmem:[%s1043_s0 + $0x10] sm:$0xff]  ;;  %v26_v54 = vld [vmem:[%s1043_s0 + $0x60] sm:$0xff] }
  0x13   :  { %514 = vmatpush3.msra.mxu0 %v69_v17  ;;  %653 = vmatpush3.msra.mxu1 %v69_v17  ;;  %v27_v52 = vld [vmem:[%s1043_s0 + $0x68] sm:$0xff]  ;;  %v30_v56 = vld [vmem:[%s1043_s0 + $0x80] sm:$0xff]  ;;  %v29_v58 = vld [vmem:[%s1043_s0 + $0x78] sm:$0xff] }
  0x14   :  { %515 = vmatprep.subr.mxu0 %v84_v18  ;;  %638 = vmatprep.subr.mxu1 %v84_v18  ;;  %v19_v55 = vld [vmem:[%s1043_s0 + $0x28] sm:$0xff]  ;;  %v22_v57 = vld [vmem:[%s1043_s0 + $0x40] sm:$0xff]  ;;  %v25_v59 = vld [vmem:[%s1043_s0 + $0x58] sm:$0xff] }
  0x15   :  { %516 = vmatpush3.msra.mxu0 %v68_v19  ;;  %654 = vmatpush3.msra.mxu1 %v68_v19  ;;  %v33_v60 = vld [vmem:[%s1043_s0 + $0x98] sm:$0xff]  ;;  %v28_v61 = vld [vmem:[%s1043_s0 + $0x70] sm:$0xff]  ;;  %v31_v63 = vld [vmem:[%s1043_s0 + $0x88] sm:$0xff] }
  0x16   :  { %517 = vmatprep.subr.mxu0 %v83_v20  ;;  %639 = vmatprep.subr.mxu1 %v83_v20  ;;  %v32_v62 = vld [vmem:[%s1043_s0 + $0x90] sm:$0xff]  ;;  %v34_v1 = vld [vmem:[%s1043_s0 + $0xa0] sm:$0xff]  ;;  %v35_v2 = vld [vmem:[%s1043_s0 + $0xa8] sm:$0xff] }
  0x17   :  { %518 = vmatpush3.msra.mxu0 %v67_v21  ;;  %655 = vmatpush3.msra.mxu1 %v67_v21  ;;  %v36_v0 = vld [vmem:[%s1043_s0 + $0xb0] sm:$0xff]  ;;  %v37_v3 = vld [vmem:[%s1043_s0 + $0xb8] sm:$0xff]  ;;  %v39_v4 = vld [vmem:[%s1043_s0 + $0xc8] sm:$0xff] }
  0x18   :  { %519 = vmatprep.subr.mxu0 %v82_v22  ;;  %640 = vmatprep.subr.mxu1 %v82_v22  ;;  %v40_v5 = vld [vmem:[%s1043_s0 + $0xd0] sm:$0xff]  ;;  %v38_v6 = vld [vmem:[%s1043_s0 + $0xc0] sm:$0xff]  ;;  %v43_v7 = vld [vmem:[%s1043_s0 + $0xe8] sm:$0xff] }
  0x19   :  { %520 = vmatpush3.msra.mxu0 %v66_v23  ;;  %656 = vmatpush3.msra.mxu1 %v66_v23  ;;  %v42_v8 = vld [vmem:[%s1043_s0 + $0xe0] sm:$0xff]  ;;  %v41_v10 = vld [vmem:[%s1043_s0 + $0xd8] sm:$0xff]  ;;  %v52_v13 = vld [vmem:[%s1043_s0 + $0x130] sm:$0xff] }
  0x1a   :  { %521 = vmatprep.subr.mxu0 %v81_v24  ;;  %641 = vmatprep.subr.mxu1 %v81_v24  ;;  %v46_v9 = vld [vmem:[%s1043_s0 + $0x100] sm:$0xff]  ;;  %v49_v11 = vld [vmem:[%s1043_s0 + $0x118] sm:$0xff]  ;;  %v44_v14 = vld [vmem:[%s1043_s0 + $0xf0] sm:$0xff] }
  0x1b   :  { %522 = vmatpush3.msra.mxu0 %v65_v25  ;;  %657 = vmatpush3.msra.mxu1 %v65_v25  ;;  %v45_v12 = vld [vmem:[%s1043_s0 + $0xf8] sm:$0xff]  ;;  %v55_v15 = vld [vmem:[%s1043_s0 + $0x148] sm:$0xff]  ;;  %v48_v16 = vld [vmem:[%s1043_s0 + $0x110] sm:$0xff] }
  0x1c   :  { %523 = vmatprep.subr.mxu0 %v80_v26  ;;  %642 = vmatprep.subr.mxu1 %v80_v26  ;;  %v58_v17 = vld [vmem:[%s1043_s0 + $0x160] sm:$0xff]  ;;  %v47_v18 = vld [vmem:[%s1043_s0 + $0x108] sm:$0xff]  ;;  %v61_v19 = vld [vmem:[%s1043_s0 + $0x178] sm:$0xff] }
  0x1d   :  { %524 = vmatpush3.msra.mxu0 %v64_v27  ;;  %658 = vmatpush3.msra.mxu1 %v64_v27 }
  0x1e   :  { %525 = vmatprep.subr.mxu0 %v79_v28  ;;  %643 = vmatprep.subr.mxu1 %v79_v28 }
  0x1f   :  { %526 = vmatpush3.msra.mxu0 %v63_v29  ;;  %659 = vmatpush3.msra.mxu1 %v63_v29 }
  0x20   :  { %527 = vmatprep.subr.mxu0 %v78_v30  ;;  %644 = vmatprep.subr.mxu1 %v78_v30 }
  0x21   :  { %528 = vmatpush3.msra.mxu0 %v62_v31  ;;  %660 = vmatpush3.msra.mxu1 %v62_v31 }
  0x22   :  { %218 = vmatprep.mubr.f32.mxu0 %v15_v32  ;;  %278 = vmatprep.mubr.f32.mxu1 %v51_v33 }
  0x23   :  { %219 = vmatmul.mubr.f32.vlgmr.msra.gmra.mxu0 %v14_v34  ;;  %279 = vmatmul.mubr.f32.vlgmr.msra.gmra.mxu1 %v50_v35 }
  0x24   :  { %223 = vmatprep.mubr.f32.mxu0 %v18_v36  ;;  %283 = vmatprep.mubr.f32.mxu1 %v54_v37 }
  0x25   :  { %597 = vmatprep.subr.mxu1 %v97_v38 }
  0x26   :  { %598 = vmatpush3.msra.mxu1 %v97_v38  ;;  %v968_v38 = vld [vmem:[%s1044_s2] ss:$0 sm:$0xff] }
  0x27   :  { %224 = vmatmul.mubr.f32.gmra.mxu0 %v17_v39  ;;  %284 = vmatmul.mubr.f32.gmra.mxu1 %v53_v40 }
  0x28   :  { %228 = vmatprep.mubr.f32.mxu0 %v21_v41  ;;  %288 = vmatprep.mubr.f32.mxu1 %v57_v42 }
  0x29   :  { %599 = vmatprep.subr.mxu1 %v96_v43 }
  0x2a   :  { %600 = vmatpush3.msra.mxu1 %v96_v43 }
  0x2b   :  { %229 = vmatmul.mubr.f32.gmra.mxu0 %v20_v44  ;;  %289 = vmatmul.mubr.f32.gmra.mxu1 %v56_v45 }
  0x2c   :  { %233 = vmatprep.mubr.f32.mxu0 %v24_v46  ;;  %293 = vmatprep.mubr.f32.mxu1 %v60_v47 }
  0x2d   :  { %601 = vmatprep.subr.mxu1 %v95_v48 }
  0x2e   :  { %602 = vmatpush3.msra.mxu1 %v95_v48 }
  0x2f   :  { %234 = vmatmul.mubr.f32.gmra.mxu0 %v23_v49  ;;  %294 = vmatmul.mubr.f32.gmra.mxu1 %v59_v50 }
  0x30   :  { %603 = vmatprep.subr.mxu1 %v94_v51  ;;  %238 = vmatprep.mubr.f32.mxu0 %v27_v52 }
  0x31   :  { %604 = vmatpush3.msra.mxu1 %v94_v51  ;;  %605 = vmatprep.mubr.msk.f32.mxu1 %vm105_vm0, %v16_v53 }
  0x33   :  { %239 = vmatmul.mubr.f32.gmra.mxu0 %v26_v54  ;;  %606 = vmatmul.mubr.msk.f32.vlgmr.msra.gmra.mxu1 %vm105_vm0, %v19_v55 }
  0x34   :  { %243 = vmatprep.mubr.f32.mxu0 %v30_v56  ;;  %608 = vmatprep.mubr.msk.f32.mxu1 %vm105_vm0, %v22_v57 }
  0x37   :  { %244 = vmatmul.mubr.f32.gmra.mxu0 %v29_v58  ;;  %609 = vmatmul.mubr.msk.f32.gmra.mxu1 %vm105_vm0, %v25_v59 }
  0x38   :  { %248 = vmatprep.mubr.f32.mxu0 %v33_v60  ;;  %611 = vmatprep.mubr.msk.f32.mxu1 %vm105_vm0, %v28_v61 }
  0x3b   :  { %249 = vmatmul.mubr.f32.gmra.mxu0 %v32_v62  ;;  %612 = vmatmul.mubr.msk.f32.gmra.mxu1 %vm105_vm0, %v31_v63 }
  0x3c   :  { %253 = vmatprep.mubr.f32.mxu0 %v36_v0  ;;  %614 = vmatprep.mubr.msk.f32.mxu1 %vm105_vm0, %v34_v1 }
  0x3f   :  { %254 = vmatmul.mubr.f32.gmra.mxu0 %v35_v2  ;;  %615 = vmatmul.mubr.msk.f32.gmra.mxu1 %vm105_vm0, %v37_v3 }
  0x40   :  { %258 = vmatprep.mubr.f32.mxu0 %v39_v4  ;;  %617 = vmatprep.mubr.msk.f32.mxu1 %vm105_vm0, %v40_v5 }
  0x43   :  { %259 = vmatmul.mubr.f32.gmra.mxu0 %v38_v6  ;;  %618 = vmatmul.mubr.msk.f32.gmra.mxu1 %vm105_vm0, %v43_v7 }
  0x44   :  { %263 = vmatprep.mubr.f32.mxu0 %v42_v8  ;;  %620 = vmatprep.mubr.msk.f32.mxu1 %vm105_vm0, %v46_v9 }
  0x47   :  { %264 = vmatmul.mubr.f32.gmra.mxu0 %v41_v10  ;;  %621 = vmatmul.mubr.msk.f32.gmra.mxu1 %vm105_vm0, %v49_v11 }
  0x48   :  { %268 = vmatprep.mubr.f32.mxu0 %v45_v12  ;;  %623 = vmatprep.mubr.msk.f32.mxu1 %vm105_vm0, %v52_v13 }
  0x4b   :  { %269 = vmatmul.mubr.f32.gmra.mxu0 %v44_v14  ;;  %624 = vmatmul.mubr.msk.f32.gmra.mxu1 %vm105_vm0, %v55_v15 }
  0x4c   :  { %273 = vmatprep.mubr.f32.mxu0 %v48_v16  ;;  %626 = vmatprep.mubr.msk.f32.mxu1 %vm105_vm0, %v58_v17 }
  0x4f   :  { %274 = vmatmul.mubr.f32.gmra.mxu0 %v47_v18  ;;  %627 = vmatmul.mubr.msk.f32.gmra.mxu1 %vm105_vm0, %v61_v19 }
  0xe3   :  { %v529_v20 = vpop.f32.mrf.mxu0  ;;  %v949_v21 = vpop.f32.mrf.mxu1 }
  0xe5   :  { %v530_v22 = vpop.f32.mrf.mxu0  ;;  %v951_v23 = vpop.f32.mrf.mxu1 }
  0xe6   :  { %v531_v35 = vadd.f32 %v530_v22, %v529_v20 }
  0xe7   :  { %v532_v24 = vpop.f32.mrf.mxu0  ;;  %v953_v25 = vpop.f32.mrf.mxu1 }
  0xe8   :  { %v221_v45 = vadd.f32 %v531_v35, %v968_v38  ;;  %v567_v35 = vadd.f32 %v951_v23, %v949_v21 }
  0xe9   :  { %v533_v26 = vpop.f32.mrf.mxu0  ;;  %v955_v27 = vpop.f32.mrf.mxu1 }
  0xea   :  { %v534_v32 = vadd.f32 %v533_v26, %v532_v24  ;;  %v570_v26 = vadd.f32 %v955_v27, %v953_v25 }
  0xeb   :  { %v535_v28 = vpop.f32.mrf.mxu0  ;;  %v957_v29 = vpop.f32.mrf.mxu1 }
  0xec   :  { %v226_v40 = vadd.f32 %v534_v32, %v968_v38 }
  0xed   :  { %v536_v30 = vpop.f32.mrf.mxu0  ;;  %v959_v31 = vpop.f32.mrf.mxu1 }
  0xee   :  { %v537_v43 = vadd.f32 %v536_v30, %v535_v28 }
  0xef   :  { %v538_v33 = vpop.f32.mrf.mxu0  ;;  %v961_v34 = vpop.f32.mrf.mxu1 }
  0xf0   :  { %v231_v56 = vadd.f32 %v537_v43, %v968_v38  ;;  %v286_v43 = vadd.f32 %v570_v26, %v968_v38 }
  0xf1   :  { %v539_v36 = vpop.f32.mrf.mxu0  ;;  %v963_v37 = vpop.f32.mrf.mxu1 }
  0xf2   :  { %v540_v39 = vadd.f32 %v539_v36, %v538_v33 }
  0xf3   :  { %v541_v41 = vpop.f32.mrf.mxu0  ;;  %v607_v42 = vpop.f32.mrf.mxu1 }
  0xf4   :  { %v371_v44 = vadd.f32 %v607_v42, %v226_v40  ;;  %v236_v50 = vadd.f32 %v540_v39, %v968_v38  ;;  %v576_v40 = vadd.f32 %v963_v37, %v961_v34  ;;  %v281_v34 = vadd.f32 %v567_v35, %v968_v38 }
  0xf5   :  { %v542_v46 = vpop.f32.mrf.mxu0  ;;  %v365_v47 = vpop.f32.mrf.mxu1 }
  0xf6   :  { %v445_v48 = vmax.f32 %v371_v44, 0.0  ;;  %v366_v49 = vadd.f32 %v365_v47, %v221_v45  ;;  %v543_v53 = vadd.f32 %v542_v46, %v541_v41  ;;  %v573_v44 = vadd.f32 %v959_v31, %v957_v29 }
  0xf7   :  { %v544_v51 = vpop.f32.mrf.mxu0  ;;  %v610_v52 = vpop.f32.mrf.mxu1 }
  0xf8   :  { %461 = vst [vmem:[%s1045_s3 + $0x8] sm:$0xff] %v445_v48  ;;  %v444_v54 = vmax.f32 %v366_v49, 0.0  ;;  %v381_v55 = vadd.f32 %v610_v52, %v236_v50  ;;  %v241_v2 = vadd.f32 %v543_v53, %v968_v38  ;;  %v296_v49 = vadd.f32 %v576_v40, %v968_v38 }
  0xf9   :  { %v545_v57 = vpop.f32.mrf.mxu0  ;;  %v375_v58 = vpop.f32.mrf.mxu1 }
  0xfa   :  { %460 = vst [vmem:[%s1045_s3] sm:$0xff] %v444_v54  ;;  %v447_v59 = vmax.f32 %v381_v55, 0.0  ;;  %v546_v60 = vadd.f32 %v545_v57, %v544_v51  ;;  %v376_v61 = vadd.f32 %v375_v58, %v231_v56  ;;  %v291_v54 = vadd.f32 %v573_v44, %v968_v38 }
  0xfb   :  { %v547_v62 = vpop.f32.mrf.mxu0  ;;  %v613_v63 = vpop.f32.mrf.mxu1 }
  0xfc   :  { %463 = vst [vmem:[%s1045_s3 + $0x18] sm:$0xff] %v447_v59  ;;  %v446_v0 = vmax.f32 %v376_v61, 0.0  ;;  %v246_v1 = vadd.f32 %v546_v60, %v968_v38 }
  0xfd   :  { %v548_v3 = vpop.f32.mrf.mxu0  ;;  %v385_v4 = vpop.f32.mrf.mxu1 }
  0xfe   :  { %462 = vst [vmem:[%s1045_s3 + $0x10] sm:$0xff] %v446_v0  ;;  %v391_v5 = vadd.f32 %v613_v63, %v246_v1  ;;  %v549_v6 = vadd.f32 %v548_v3, %v547_v62  ;;  %v386_v7 = vadd.f32 %v385_v4, %v241_v2 }
  0xff   :  { %v550_v8 = vpop.f32.mrf.mxu0  ;;  %v616_v9 = vpop.f32.mrf.mxu1 }
 0x100   :  { %v449_v10 = vmax.f32 %v391_v5, 0.0  ;;  %v448_v11 = vmax.f32 %v386_v7, 0.0  ;;  %v251_v12 = vadd.f32 %v549_v6, %v968_v38 }
 0x101   :  { %v551_v13 = vpop.f32.mrf.mxu0  ;;  %v395_v14 = vpop.f32.mrf.mxu1 }
 0x102   :  { %465 = vst [vmem:[%s1045_s3 + $0x28] sm:$0xff] %v449_v10  ;;  %464 = vst [vmem:[%s1045_s3 + $0x20] sm:$0xff] %v448_v11  ;;  %v552_v15 = vadd.f32 %v551_v13, %v550_v8  ;;  %v396_v16 = vadd.f32 %v395_v14, %v251_v12 }
 0x103   :  { %v553_v17 = vpop.f32.mrf.mxu0  ;;  %v619_v18 = vpop.f32.mrf.mxu1 }
 0x104   :  { %v256_v19 = vadd.f32 %v552_v15, %v968_v38  ;;  %v450_v20 = vmax.f32 %v396_v16, 0.0 }
 0x105   :  { %v554_v22 = vpop.f32.mrf.mxu0  ;;  %v405_v24 = vpop.f32.mrf.mxu1 }
 0x106   :  { %v401_v28 = vadd.f32 %v616_v9, %v256_v19  ;;  %466 = vst [vmem:[%s1045_s3 + $0x30] sm:$0xff] %v450_v20  ;;  %v555_v30 = vadd.f32 %v554_v22, %v553_v17 }
 0x107   :  { %v556_v32 = vpop.f32.mrf.mxu0  ;;  %v622_v33 = vpop.f32.mrf.mxu1 }
 0x108   :  { %v451_v36 = vmax.f32 %v401_v28, 0.0  ;;  %v261_v39 = vadd.f32 %v555_v30, %v968_v38 }
 0x109   :  { %v557_v41 = vpop.f32.mrf.mxu0  ;;  %v415_v42 = vpop.f32.mrf.mxu1 }
 0x10a   :  { %467 = vst [vmem:[%s1045_s3 + $0x38] sm:$0xff] %v451_v36  ;;  %v406_v25 = vadd.f32 %v405_v24, %v261_v39  ;;  %v558_v27 = vadd.f32 %v557_v41, %v556_v32 }
 0x10b   :  { %v559_v21 = vpop.f32.mrf.mxu0  ;;  %v625_v23 = vpop.f32.mrf.mxu1 }
 0x10c   :  { %v452_v45 = vmax.f32 %v406_v25, 0.0  ;;  %v266_v46 = vadd.f32 %v558_v27, %v968_v38  ;;  %v431_v47 = vadd.f32 %v625_v23, %v286_v43 }
 0x10d   :  { %v560_v37 = vpop.f32.mrf.mxu0  ;;  %v425_v48 = vpop.f32.mrf.mxu1 }
 0x10e   :  { %468 = vst [vmem:[%s1045_s3 + $0x40] sm:$0xff] %v452_v45  ;;  %v411_v50 = vadd.f32 %v619_v18, %v266_v46  ;;  %v457_v51 = vmax.f32 %v431_v47, 0.0  ;;  %v561_v52 = vadd.f32 %v560_v37, %v559_v21  ;;  %v426_v29 = vadd.f32 %v425_v48, %v281_v34 }
 0x10f   :  { %v562_v31 = vpop.f32.mrf.mxu0  ;;  %v628_v53 = vpop.f32.mrf.mxu1 }
 0x110   :  { %v453_v55 = vmax.f32 %v411_v50, 0.0  ;;  %473 = vst [vmem:[%s1045_s3 + $0x68] sm:$0xff] %v457_v51  ;;  %v271_v56 = vadd.f32 %v561_v52, %v968_v38  ;;  %v456_v57 = vmax.f32 %v426_v29, 0.0  ;;  %v441_v58 = vadd.f32 %v628_v53, %v296_v49 }
 0x111   :  { %v563_v59 = vpop.f32.mrf.mxu0  ;;  %v435_v60 = vpop.f32.mrf.mxu1 }
 0x112   :  { %469 = vst [vmem:[%s1045_s3 + $0x48] sm:$0xff] %v453_v55  ;;  %v416_v61 = vadd.f32 %v415_v42, %v271_v56  ;;  %472 = vst [vmem:[%s1045_s3 + $0x60] sm:$0xff] %v456_v57  ;;  %v459_v62 = vmax.f32 %v441_v58, 0.0  ;;  %v564_v63 = vadd.f32 %v563_v59, %v562_v31  ;;  %v436_v0 = vadd.f32 %v435_v60, %v291_v54 }
 0x114   :  { %v454_v1 = vmax.f32 %v416_v61, 0.0  ;;  %475 = vst [vmem:[%s1045_s3 + $0x78] sm:$0xff] %v459_v62  ;;  %v276_v2 = vadd.f32 %v564_v63, %v968_v38  ;;  %v458_v3 = vmax.f32 %v436_v0, 0.0 }
 0x116   :  { %470 = vst [vmem:[%s1045_s3 + $0x50] sm:$0xff] %v454_v1  ;;  %v421_v4 = vadd.f32 %v622_v33, %v276_v2  ;;  %474 = vst [vmem:[%s1045_s3 + $0x70] sm:$0xff] %v458_v3 }
 0x118   :  { %v455_v5 = vmax.f32 %v421_v4, 0.0 }
 0x11a   :  { %471 = vst [vmem:[%s1045_s3 + $0x58] sm:$0xff] %v455_v5 }

// kernel: vae_forward.15
= control target key start
LH: loop header
LB: loop body
LE: loop exit
PB: predicated region body
PF: predicated region fallthrough
CT: control target
= control target key end

     0   :  { %v2288_v0 = vmov 0.0   ;;  %vm249_vm0 = vcmask 261120   ;;  %vm1596_vm1 = vcmask 31744   ;;  %s3601_s1 = inlined_call_operand.vmem [shape: f32[288,4], index: 1, kind: input, shape index: {}]   ;;  %s3602_s0 = inlined_call_operand.vmem [shape: f32[512,288], index: 0, kind: input, shape index: {}]   ;;  %s3603_s2 = inlined_call_operand.vmem [shape: f32[1,4], index: 2, kind: input, shape index: {}]   ;;  %s3604_s3 = inlined_call_operand.vmem [shape: f32[512,4], index: 3, kind: output, shape index: {}]  }
   0x1   :  { %442 = vmatprep.subr.mxu0 %v2288_v0  ;;  %1966 = vmatprep.subr.mxu1 %v2288_v0  ;;  %v221_v1 = vld [vmem:[%s3601_s1 + $0x78] sm:$0xff]  ;;  %v220_v2 = vld [vmem:[%s3601_s1 + $0x70] sm:$0xff]  ;;  %v219_v3 = vld [vmem:[%s3601_s1 + $0x68] sm:$0xff] }
   0x2   :  { %443 = vmatpush1.msra.mxu0 %v221_v1  ;;  %1998 = vmatpush1.msra.mxu1 %v221_v1  ;;  %v218_v4 = vld [vmem:[%s3601_s1 + $0x60] sm:$0xff]  ;;  %v217_v5 = vld [vmem:[%s3601_s1 + $0x58] sm:$0xff]  ;;  %v216_v6 = vld [vmem:[%s3601_s1 + $0x50] sm:$0xff] }
   0x3   :  { %444 = vmatprep.subr.mxu0 %v2288_v0  ;;  %1967 = vmatprep.subr.mxu1 %v2288_v0  ;;  %v215_v7 = vld [vmem:[%s3601_s1 + $0x48] sm:$0xff]  ;;  %v214_v8 = vld [vmem:[%s3601_s1 + $0x40] sm:$0xff]  ;;  %v213_v9 = vld [vmem:[%s3601_s1 + $0x38] sm:$0xff] }
   0x4   :  { %445 = vmatpush1.msra.mxu0 %v220_v2  ;;  %1999 = vmatpush1.msra.mxu1 %v220_v2  ;;  %v212_v10 = vld [vmem:[%s3601_s1 + $0x30] sm:$0xff]  ;;  %v211_v11 = vld [vmem:[%s3601_s1 + $0x28] sm:$0xff]  ;;  %v210_v12 = vld [vmem:[%s3601_s1 + $0x20] sm:$0xff] }
   0x5   :  { %446 = vmatprep.subr.mxu0 %v2288_v0  ;;  %1968 = vmatprep.subr.mxu1 %v2288_v0  ;;  %v209_v13 = vld [vmem:[%s3601_s1 + $0x18] sm:$0xff]  ;;  %v208_v14 = vld [vmem:[%s3601_s1 + $0x10] sm:$0xff]  ;;  %v207_v15 = vld [vmem:[%s3601_s1 + $0x8] sm:$0xff] }
   0x6   :  { %447 = vmatpush1.msra.mxu0 %v219_v3  ;;  %2000 = vmatpush1.msra.mxu1 %v219_v3  ;;  %v206_v16 = vld [vmem:[%s3601_s1] sm:$0xff]  ;;  %v237_v17 = vld [vmem:[%s3601_s1 + $0xf8] sm:$0xff]  ;;  %v236_v18 = vld [vmem:[%s3601_s1 + $0xf0] sm:$0xff] }
   0x7   :  { %448 = vmatprep.subr.mxu0 %v2288_v0  ;;  %1969 = vmatprep.subr.mxu1 %v2288_v0  ;;  %v235_v19 = vld [vmem:[%s3601_s1 + $0xe8] sm:$0xff]  ;;  %v234_v20 = vld [vmem:[%s3601_s1 + $0xe0] sm:$0xff]  ;;  %v233_v21 = vld [vmem:[%s3601_s1 + $0xd8] sm:$0xff] }
   0x8   :  { %449 = vmatpush1.msra.mxu0 %v218_v4  ;;  %2001 = vmatpush1.msra.mxu1 %v218_v4  ;;  %v232_v22 = vld [vmem:[%s3601_s1 + $0xd0] sm:$0xff]  ;;  %v231_v23 = vld [vmem:[%s3601_s1 + $0xc8] sm:$0xff]  ;;  %v230_v24 = vld [vmem:[%s3601_s1 + $0xc0] sm:$0xff] }
   0x9   :  { %450 = vmatprep.subr.mxu0 %v2288_v0  ;;  %1970 = vmatprep.subr.mxu1 %v2288_v0  ;;  %v229_v25 = vld [vmem:[%s3601_s1 + $0xb8] sm:$0xff]  ;;  %v228_v26 = vld [vmem:[%s3601_s1 + $0xb0] sm:$0xff]  ;;  %v227_v27 = vld [vmem:[%s3601_s1 + $0xa8] sm:$0xff] }
   0xa   :  { %451 = vmatpush1.msra.mxu0 %v217_v5  ;;  %2002 = vmatpush1.msra.mxu1 %v217_v5  ;;  %v226_v28 = vld [vmem:[%s3601_s1 + $0xa0] sm:$0xff]  ;;  %v225_v29 = vld [vmem:[%s3601_s1 + $0x98] sm:$0xff]  ;;  %v224_v30 = vld [vmem:[%s3601_s1 + $0x90] sm:$0xff] }
   0xb   :  { %452 = vmatprep.subr.mxu0 %v2288_v0  ;;  %1971 = vmatprep.subr.mxu1 %v2288_v0  ;;  %v223_v31 = vld [vmem:[%s3601_s1 + $0x88] sm:$0xff]  ;;  %v222_v32 = vld [vmem:[%s3601_s1 + $0x80] sm:$0xff]  ;;  %v241_v37 = vld [vmem:[%s3601_s1 + $0x118] sm:$0xff] }
   0xc   :  { %453 = vmatpush1.msra.mxu0 %v216_v6  ;;  %2003 = vmatpush1.msra.mxu1 %v216_v6  ;;  %v15_v33 = vld [vmem:[%s3602_s0 + $0x8] sm:$0xff]  ;;  %v14_v35 = vld [vmem:[%s3602_s0] sm:$0xff]  ;;  %v240_v40 = vld [vmem:[%s3601_s1 + $0x110] sm:$0xff] }
   0xd   :  { %454 = vmatprep.subr.mxu0 %v2288_v0  ;;  %1972 = vmatprep.subr.mxu1 %v2288_v0  ;;  %v159_v34 = vld [vmem:[%s3602_s0 + $0x488] sm:$0xff]  ;;  %v158_v36 = vld [vmem:[%s3602_s0 + $0x480] sm:$0xff]  ;;  %v17_v41 = vld [vmem:[%s3602_s0 + $0x18] sm:$0xff] }
   0xe   :  { %455 = vmatpush1.msra.mxu0 %v215_v7  ;;  %2004 = vmatpush1.msra.mxu1 %v215_v7  ;;  %v18_v38 = vld [vmem:[%s3602_s0 + $0x20] sm:$0xff]  ;;  %v161_v42 = vld [vmem:[%s3602_s0 + $0x498] sm:$0xff]  ;;  %v239_v45 = vld [vmem:[%s3601_s1 + $0x108] sm:$0xff] }
   0xf   :  { %456 = vmatprep.subr.mxu0 %v2288_v0  ;;  %1973 = vmatprep.subr.mxu1 %v2288_v0  ;;  %v162_v39 = vld [vmem:[%s3602_s0 + $0x4a0] sm:$0xff]  ;;  %v21_v43 = vld [vmem:[%s3602_s0 + $0x38] sm:$0xff]  ;;  %v20_v46 = vld [vmem:[%s3602_s0 + $0x30] sm:$0xff] }
  0x10   :  { %457 = vmatpush1.msra.mxu0 %v214_v8  ;;  %2005 = vmatpush1.msra.mxu1 %v214_v8  ;;  %v165_v44 = vld [vmem:[%s3602_s0 + $0x4b8] sm:$0xff]  ;;  %v164_v47 = vld [vmem:[%s3602_s0 + $0x4b0] sm:$0xff]  ;;  %v238_v50 = vld [vmem:[%s3601_s1 + $0x100] sm:$0xff] }
  0x11   :  { %458 = vmatprep.subr.mxu0 %v2288_v0  ;;  %1974 = vmatprep.subr.mxu1 %v2288_v0  ;;  %v24_v48 = vld [vmem:[%s3602_s0 + $0x50] sm:$0xff]  ;;  %v23_v51 = vld [vmem:[%s3602_s0 + $0x48] sm:$0xff]  ;;  %v26_v55 = vld [vmem:[%s3602_s0 + $0x60] sm:$0xff] }
  0x12   :  { %459 = vmatpush1.msra.mxu0 %v213_v9  ;;  %2006 = vmatpush1.msra.mxu1 %v213_v9  ;;  %v168_v49 = vld [vmem:[%s3602_s0 + $0x4d0] sm:$0xff]  ;;  %v167_v52 = vld [vmem:[%s3602_s0 + $0x4c8] sm:$0xff]  ;;  %v170_v56 = vld [vmem:[%s3602_s0 + $0x4e0] sm:$0xff] }
  0x13   :  { %460 = vmatprep.subr.mxu0 %v2288_v0  ;;  %1975 = vmatprep.subr.mxu1 %v2288_v0  ;;  %v27_v53 = vld [vmem:[%s3602_s0 + $0x68] sm:$0xff]  ;;  %v30_v57 = vld [vmem:[%s3602_s0 + $0x80] sm:$0xff]  ;;  %v29_v59 = vld [vmem:[%s3602_s0 + $0x78] sm:$0xff] }
  0x14   :  { %461 = vmatpush1.msra.mxu0 %v212_v10  ;;  %2007 = vmatpush1.msra.mxu1 %v212_v10  ;;  %v171_v54 = vld [vmem:[%s3602_s0 + $0x4e8] sm:$0xff]  ;;  %v174_v58 = vld [vmem:[%s3602_s0 + $0x500] sm:$0xff]  ;;  %v173_v60 = vld [vmem:[%s3602_s0 + $0x4f8] sm:$0xff] }
  0x15   :  { %462 = vmatprep.subr.mxu0 %v2288_v0  ;;  %1976 = vmatprep.subr.mxu1 %v2288_v0  ;;  %v33_v61 = vld [vmem:[%s3602_s0 + $0x98] sm:$0xff]  ;;  %v32_v63 = vld [vmem:[%s3602_s0 + $0x90] sm:$0xff]  ;;  %v35_v3 = vld [vmem:[%s3602_s0 + $0xa8] sm:$0xff] }
  0x16   :  { %463 = vmatpush1.msra.mxu0 %v211_v11  ;;  %2008 = vmatpush1.msra.mxu1 %v211_v11  ;;  %v177_v62 = vld [vmem:[%s3602_s0 + $0x518] sm:$0xff]  ;;  %v36_v1 = vld [vmem:[%s3602_s0 + $0xb0] sm:$0xff]  ;;  %v179_v4 = vld [vmem:[%s3602_s0 + $0x528] sm:$0xff] }
  0x17   :  { %464 = vmatprep.subr.mxu0 %v2288_v0  ;;  %1977 = vmatprep.subr.mxu1 %v2288_v0  ;;  %v180_v2 = vld [vmem:[%s3602_s0 + $0x530] sm:$0xff]  ;;  %v39_v5 = vld [vmem:[%s3602_s0 + $0xc8] sm:$0xff]  ;;  %v38_v7 = vld [vmem:[%s3602_s0 + $0xc0] sm:$0xff] }
  0x18   :  { %465 = vmatpush1.msra.mxu0 %v210_v12  ;;  %2009 = vmatpush1.msra.mxu1 %v210_v12  ;;  %v183_v6 = vld [vmem:[%s3602_s0 + $0x548] sm:$0xff]  ;;  %v182_v8 = vld [vmem:[%s3602_s0 + $0x540] sm:$0xff]  ;;  %v41_v11 = vld [vmem:[%s3602_s0 + $0xd8] sm:$0xff] }
  0x19   :  { %466 = vmatprep.subr.mxu0 %v2288_v0  ;;  %1978 = vmatprep.subr.mxu1 %v2288_v0  ;;  %v42_v9 = vld [vmem:[%s3602_s0 + $0xe0] sm:$0xff]  ;;  %v185_v12 = vld [vmem:[%s3602_s0 + $0x558] sm:$0xff] }
  0x1a   :  { %467 = vmatpush1.msra.mxu0 %v209_v13  ;;  %2010 = vmatpush1.msra.mxu1 %v209_v13  ;;  %v186_v10 = vld [vmem:[%s3602_s0 + $0x560] sm:$0xff]  ;;  %v45_v13 = vld [vmem:[%s3602_s0 + $0xf8] sm:$0xff] }
  0x1b   :  { %468 = vmatprep.subr.mxu0 %v2288_v0  ;;  %1979 = vmatprep.subr.mxu1 %v2288_v0 }
  0x1c   :  { %469 = vmatpush1.msra.mxu0 %v208_v14  ;;  %2011 = vmatpush1.msra.mxu1 %v208_v14  ;;  %v189_v14 = vld [vmem:[%s3602_s0 + $0x578] sm:$0xff] }
  0x1d   :  { %470 = vmatprep.subr.mxu0 %v2288_v0  ;;  %1980 = vmatprep.subr.mxu1 %v2288_v0 }
  0x1e   :  { %471 = vmatpush1.msra.mxu0 %v207_v15  ;;  %2012 = vmatpush1.msra.mxu1 %v207_v15  ;;  %v44_v15 = vld [vmem:[%s3602_s0 + $0xf0] sm:$0xff] }
  0x1f   :  { %472 = vmatprep.subr.mxu0 %v2288_v0  ;;  %1981 = vmatprep.subr.mxu1 %v2288_v0 }
  0x20   :  { %473 = vmatpush1.msra.mxu0 %v206_v16  ;;  %2013 = vmatpush1.msra.mxu1 %v206_v16  ;;  %v188_v16 = vld [vmem:[%s3602_s0 + $0x570] sm:$0xff] }
  0x21   :  { %474 = vmatprep.subr.mxu0 %v2288_v0  ;;  %1982 = vmatprep.subr.mxu1 %v2288_v0 }
  0x22   :  { %475 = vmatpush2.msra.mxu0 %v237_v17  ;;  %2014 = vmatpush2.msra.mxu1 %v237_v17  ;;  %v48_v17 = vld [vmem:[%s3602_s0 + $0x110] sm:$0xff] }
  0x23   :  { %476 = vmatprep.subr.mxu0 %v2288_v0  ;;  %1983 = vmatprep.subr.mxu1 %v2288_v0 }
  0x24   :  { %477 = vmatpush2.msra.mxu0 %v236_v18  ;;  %2015 = vmatpush2.msra.mxu1 %v236_v18  ;;  %v192_v18 = vld [vmem:[%s3602_s0 + $0x590] sm:$0xff] }
  0x25   :  { %478 = vmatprep.subr.mxu0 %v2288_v0  ;;  %1984 = vmatprep.subr.mxu1 %v2288_v0 }
  0x26   :  { %479 = vmatpush2.msra.mxu0 %v235_v19  ;;  %2016 = vmatpush2.msra.mxu1 %v235_v19  ;;  %v47_v19 = vld [vmem:[%s3602_s0 + $0x108] sm:$0xff] }
  0x27   :  { %480 = vmatprep.subr.mxu0 %v2288_v0  ;;  %1985 = vmatprep.subr.mxu1 %v2288_v0 }
  0x28   :  { %481 = vmatpush2.msra.mxu0 %v234_v20  ;;  %2017 = vmatpush2.msra.mxu1 %v234_v20  ;;  %v191_v20 = vld [vmem:[%s3602_s0 + $0x588] sm:$0xff] }
  0x29   :  { %482 = vmatprep.subr.mxu0 %v2288_v0  ;;  %1986 = vmatprep.subr.mxu1 %v2288_v0 }
  0x2a   :  { %483 = vmatpush2.msra.mxu0 %v233_v21  ;;  %2018 = vmatpush2.msra.mxu1 %v233_v21  ;;  %v51_v21 = vld [vmem:[%s3602_s0 + $0x128] sm:$0xff] }
  0x2b   :  { %484 = vmatprep.subr.mxu0 %v2288_v0  ;;  %1987 = vmatprep.subr.mxu1 %v2288_v0 }
  0x2c   :  { %485 = vmatpush2.msra.mxu0 %v232_v22  ;;  %2019 = vmatpush2.msra.mxu1 %v232_v22  ;;  %v195_v22 = vld [vmem:[%s3602_s0 + $0x5a8] sm:$0xff] }
  0x2d   :  { %486 = vmatprep.subr.mxu0 %v2288_v0  ;;  %1988 = vmatprep.subr.mxu1 %v2288_v0 }
  0x2e   :  { %487 = vmatpush2.msra.mxu0 %v231_v23  ;;  %2020 = vmatpush2.msra.mxu1 %v231_v23  ;;  %v50_v23 = vld [vmem:[%s3602_s0 + $0x120] sm:$0xff] }
  0x2f   :  { %488 = vmatprep.subr.mxu0 %v2288_v0  ;;  %1989 = vmatprep.subr.mxu1 %v2288_v0 }
  0x30   :  { %489 = vmatpush2.msra.mxu0 %v230_v24  ;;  %2021 = vmatpush2.msra.mxu1 %v230_v24  ;;  %v194_v24 = vld [vmem:[%s3602_s0 + $0x5a0] sm:$0xff] }
  0x31   :  { %490 = vmatprep.subr.mxu0 %v2288_v0  ;;  %1990 = vmatprep.subr.mxu1 %v2288_v0 }
  0x32   :  { %491 = vmatpush2.msra.mxu0 %v229_v25  ;;  %2022 = vmatpush2.msra.mxu1 %v229_v25  ;;  %v54_v25 = vld [vmem:[%s3602_s0 + $0x140] sm:$0xff] }
  0x33   :  { %492 = vmatprep.subr.mxu0 %v2288_v0  ;;  %1991 = vmatprep.subr.mxu1 %v2288_v0 }
  0x34   :  { %493 = vmatpush2.msra.mxu0 %v228_v26  ;;  %2023 = vmatpush2.msra.mxu1 %v228_v26  ;;  %v198_v26 = vld [vmem:[%s3602_s0 + $0x5c0] sm:$0xff] }
  0x35   :  { %494 = vmatprep.subr.mxu0 %v2288_v0  ;;  %1992 = vmatprep.subr.mxu1 %v2288_v0 }
  0x36   :  { %495 = vmatpush2.msra.mxu0 %v227_v27  ;;  %2024 = vmatpush2.msra.mxu1 %v227_v27  ;;  %v53_v27 = vld [vmem:[%s3602_s0 + $0x138] sm:$0xff] }
  0x37   :  { %496 = vmatprep.subr.mxu0 %v2288_v0  ;;  %1993 = vmatprep.subr.mxu1 %v2288_v0 }
  0x38   :  { %497 = vmatpush2.msra.mxu0 %v226_v28  ;;  %2025 = vmatpush2.msra.mxu1 %v226_v28  ;;  %v197_v28 = vld [vmem:[%s3602_s0 + $0x5b8] sm:$0xff] }
  0x39   :  { %498 = vmatprep.subr.mxu0 %v2288_v0  ;;  %1994 = vmatprep.subr.mxu1 %v2288_v0 }
  0x3a   :  { %499 = vmatpush2.msra.mxu0 %v225_v29  ;;  %2026 = vmatpush2.msra.mxu1 %v225_v29  ;;  %v57_v29 = vld [vmem:[%s3602_s0 + $0x158] sm:$0xff] }
  0x3b   :  { %500 = vmatprep.subr.mxu0 %v2288_v0  ;;  %1995 = vmatprep.subr.mxu1 %v2288_v0 }
  0x3c   :  { %501 = vmatpush2.msra.mxu0 %v224_v30  ;;  %2027 = vmatpush2.msra.mxu1 %v224_v30  ;;  %v201_v30 = vld [vmem:[%s3602_s0 + $0x5d8] sm:$0xff] }
  0x3d   :  { %502 = vmatprep.subr.mxu0 %v2288_v0  ;;  %1996 = vmatprep.subr.mxu1 %v2288_v0 }
  0x3e   :  { %503 = vmatpush2.msra.mxu0 %v223_v31  ;;  %2028 = vmatpush2.msra.mxu1 %v223_v31  ;;  %v56_v31 = vld [vmem:[%s3602_s0 + $0x150] sm:$0xff] }
  0x3f   :  { %504 = vmatprep.subr.mxu0 %v2288_v0  ;;  %1997 = vmatprep.subr.mxu1 %v2288_v0  ;;  %v176_v0 = vld [vmem:[%s3602_s0 + $0x510] sm:$0xff] }
  0x40   :  { %505 = vmatpush2.msra.mxu0 %v222_v32  ;;  %2029 = vmatpush2.msra.mxu1 %v222_v32  ;;  %v200_v32 = vld [vmem:[%s3602_s0 + $0x5d0] sm:$0xff] }
  0x41   :  { %506 = vmatprep.mubr.f32.mxu0 %v15_v33  ;;  %746 = vmatprep.mubr.f32.mxu1 %v159_v34  ;;  %v60_v33 = vld [vmem:[%s3602_s0 + $0x170] sm:$0xff] }
  0x42   :  { %507 = vmatmul.mubr.f32.vlgmr.msra.gmra.mxu0 %v14_v35  ;;  %747 = vmatmul.mubr.f32.vlgmr.msra.gmra.mxu1 %v158_v36  ;;  %v204_v34 = vld [vmem:[%s3602_s0 + $0x5f0] sm:$0xff]  ;;  %v59_v35 = vld [vmem:[%s3602_s0 + $0x168] sm:$0xff] }
  0x43   :  { %1862 = vmatprep.subr.mxu1 %v241_v37  ;;  %511 = vmatprep.mubr.f32.mxu0 %v18_v38  ;;  %v203_v36 = vld [vmem:[%s3602_s0 + $0x5e8] sm:$0xff]  ;;  %v16_v38 = vld [vmem:[%s3602_s0 + $0x10] sm:$0xff] }
  0x44   :  { %1863 = vmatpush3.msra.mxu1 %v241_v37  ;;  %751 = vmatprep.mubr.f32.mxu1 %v162_v39  ;;  %v63_v37 = vld [vmem:[%s3602_s0 + $0x188] sm:$0xff]  ;;  %v62_v39 = vld [vmem:[%s3602_s0 + $0x180] sm:$0xff] }
  0x45   :  { %1864 = vmatprep.subr.mxu1 %v240_v40 }
  0x46   :  { %512 = vmatmul.mubr.f32.gmra.mxu0 %v17_v41  ;;  %752 = vmatmul.mubr.f32.gmra.mxu1 %v161_v42  ;;  %v66_v41 = vld [vmem:[%s3602_s0 + $0x1a0] sm:$0xff] }
  0x47   :  { %516 = vmatprep.mubr.f32.mxu0 %v21_v43  ;;  %756 = vmatprep.mubr.f32.mxu1 %v165_v44  ;;  %v22_v42 = vld [vmem:[%s3602_s0 + $0x40] sm:$0xff]  ;;  %v65_v43 = vld [vmem:[%s3602_s0 + $0x198] sm:$0xff] }
  0x48   :  { %1865 = vmatpush3.msra.mxu1 %v240_v40  ;;  %v19_v40 = vld [vmem:[%s3602_s0 + $0x28] sm:$0xff]  ;;  %v25_v44 = vld [vmem:[%s3602_s0 + $0x58] sm:$0xff] }
  0x49   :  { %1866 = vmatprep.subr.mxu1 %v239_v45 }
  0x4a   :  { %517 = vmatmul.mubr.f32.gmra.mxu0 %v20_v46  ;;  %757 = vmatmul.mubr.f32.gmra.mxu1 %v164_v47  ;;  %v28_v46 = vld [vmem:[%s3602_s0 + $0x70] sm:$0xff] }
  0x4b   :  { %521 = vmatprep.mubr.f32.mxu0 %v24_v48  ;;  %761 = vmatprep.mubr.f32.mxu1 %v168_v49  ;;  %v68_v47 = vld [vmem:[%s3602_s0 + $0x1b0] sm:$0xff]  ;;  %v31_v48 = vld [vmem:[%s3602_s0 + $0x88] sm:$0xff] }
  0x4c   :  { %1867 = vmatpush3.msra.mxu1 %v239_v45  ;;  %v69_v45 = vld [vmem:[%s3602_s0 + $0x1b8] sm:$0xff]  ;;  %v72_v49 = vld [vmem:[%s3602_s0 + $0x1d0] sm:$0xff] }
  0x4d   :  { %1868 = vmatprep.subr.mxu1 %v238_v50 }
  0x4e   :  { %522 = vmatmul.mubr.f32.gmra.mxu0 %v23_v51  ;;  %762 = vmatmul.mubr.f32.gmra.mxu1 %v167_v52  ;;  %v71_v51 = vld [vmem:[%s3602_s0 + $0x1c8] sm:$0xff]  ;;  %v37_v52 = vld [vmem:[%s3602_s0 + $0xb8] sm:$0xff] }
  0x4f   :  { %526 = vmatprep.mubr.f32.mxu0 %v27_v53  ;;  %766 = vmatprep.mubr.f32.mxu1 %v171_v54  ;;  %v75_v53 = vld [vmem:[%s3602_s0 + $0x1e8] sm:$0xff]  ;;  %v40_v54 = vld [vmem:[%s3602_s0 + $0xd0] sm:$0xff] }
  0x50   :  { %1869 = vmatpush3.msra.mxu1 %v238_v50  ;;  %v34_v50 = vld [vmem:[%s3602_s0 + $0xa0] sm:$0xff] }
  0x52   :  { %527 = vmatmul.mubr.f32.gmra.mxu0 %v26_v55  ;;  %767 = vmatmul.mubr.f32.gmra.mxu1 %v170_v56  ;;  %v74_v55 = vld [vmem:[%s3602_s0 + $0x1e0] sm:$0xff]  ;;  %v43_v56 = vld [vmem:[%s3602_s0 + $0xe8] sm:$0xff] }
  0x53   :  { %531 = vmatprep.mubr.f32.mxu0 %v30_v57  ;;  %771 = vmatprep.mubr.f32.mxu1 %v174_v58  ;;  %v78_v57 = vld [vmem:[%s3602_s0 + $0x200] sm:$0xff] }
  0x54   :  { %v46_v58 = vld [vmem:[%s3602_s0 + $0x100] sm:$0xff] }
  0x56   :  { %532 = vmatmul.mubr.f32.gmra.mxu0 %v29_v59  ;;  %772 = vmatmul.mubr.f32.gmra.mxu1 %v173_v60  ;;  %v77_v59 = vld [vmem:[%s3602_s0 + $0x1f8] sm:$0xff] }
  0x57   :  { %536 = vmatprep.mubr.f32.mxu0 %v33_v61  ;;  %776 = vmatprep.mubr.f32.mxu1 %v177_v62  ;;  %v49_v60 = vld [vmem:[%s3602_s0 + $0x118] sm:$0xff]  ;;  %v52_v62 = vld [vmem:[%s3602_s0 + $0x130] sm:$0xff] }
  0x58   :  { %v81_v61 = vld [vmem:[%s3602_s0 + $0x218] sm:$0xff] }
  0x5a   :  { %537 = vmatmul.mubr.f32.gmra.mxu0 %v32_v63  ;;  %777 = vmatmul.mubr.f32.gmra.mxu1 %v176_v0  ;;  %v80_v63 = vld [vmem:[%s3602_s0 + $0x210] sm:$0xff]  ;;  %v55_v0 = vld [vmem:[%s3602_s0 + $0x148] sm:$0xff] }
  0x5b   :  { %541 = vmatprep.mubr.f32.mxu0 %v36_v1  ;;  %781 = vmatprep.mubr.f32.mxu1 %v180_v2  ;;  %v84_v1 = vld [vmem:[%s3602_s0 + $0x230] sm:$0xff]  ;;  %v58_v2 = vld [vmem:[%s3602_s0 + $0x160] sm:$0xff] }
  0x5e   :  { %542 = vmatmul.mubr.f32.gmra.mxu0 %v35_v3  ;;  %782 = vmatmul.mubr.f32.gmra.mxu1 %v179_v4  ;;  %v83_v3 = vld [vmem:[%s3602_s0 + $0x228] sm:$0xff]  ;;  %v61_v4 = vld [vmem:[%s3602_s0 + $0x178] sm:$0xff] }
  0x5f   :  { %546 = vmatprep.mubr.f32.mxu0 %v39_v5  ;;  %786 = vmatprep.mubr.f32.mxu1 %v183_v6  ;;  %v87_v5 = vld [vmem:[%s3602_s0 + $0x248] sm:$0xff]  ;;  %v64_v6 = vld [vmem:[%s3602_s0 + $0x190] sm:$0xff] }
  0x62   :  { %547 = vmatmul.mubr.f32.gmra.mxu0 %v38_v7  ;;  %787 = vmatmul.mubr.f32.gmra.mxu1 %v182_v8  ;;  %v86_v7 = vld [vmem:[%s3602_s0 + $0x240] sm:$0xff]  ;;  %v67_v8 = vld [vmem:[%s3602_s0 + $0x1a8] sm:$0xff] }
  0x63   :  { %551 = vmatprep.mubr.f32.mxu0 %v42_v9  ;;  %791 = vmatprep.mubr.f32.mxu1 %v186_v10  ;;  %v90_v9 = vld [vmem:[%s3602_s0 + $0x260] sm:$0xff] }
  0x64   :  { %v70_v10 = vld [vmem:[%s3602_s0 + $0x1c0] sm:$0xff] }
  0x66   :  { %552 = vmatmul.mubr.f32.gmra.mxu0 %v41_v11  ;;  %792 = vmatmul.mubr.f32.gmra.mxu1 %v185_v12  ;;  %v89_v11 = vld [vmem:[%s3602_s0 + $0x258] sm:$0xff] }
  0x67   :  { %556 = vmatprep.mubr.f32.mxu0 %v45_v13  ;;  %796 = vmatprep.mubr.f32.mxu1 %v189_v14  ;;  %v73_v12 = vld [vmem:[%s3602_s0 + $0x1d8] sm:$0xff]  ;;  %v76_v14 = vld [vmem:[%s3602_s0 + $0x1f0] sm:$0xff] }
  0x68   :  { %v93_v13 = vld [vmem:[%s3602_s0 + $0x278] sm:$0xff] }
  0x6a   :  { %557 = vmatmul.mubr.f32.gmra.mxu0 %v44_v15  ;;  %797 = vmatmul.mubr.f32.gmra.mxu1 %v188_v16  ;;  %v92_v15 = vld [vmem:[%s3602_s0 + $0x270] sm:$0xff]  ;;  %v79_v16 = vld [vmem:[%s3602_s0 + $0x208] sm:$0xff] }
  0x6b   :  { %561 = vmatprep.mubr.f32.mxu0 %v48_v17  ;;  %801 = vmatprep.mubr.f32.mxu1 %v192_v18  ;;  %v96_v17 = vld [vmem:[%s3602_s0 + $0x290] sm:$0xff]  ;;  %v82_v18 = vld [vmem:[%s3602_s0 + $0x220] sm:$0xff] }
  0x6e   :  { %562 = vmatmul.mubr.f32.gmra.mxu0 %v47_v19  ;;  %802 = vmatmul.mubr.f32.gmra.mxu1 %v191_v20  ;;  %v95_v19 = vld [vmem:[%s3602_s0 + $0x288] sm:$0xff]  ;;  %v85_v20 = vld [vmem:[%s3602_s0 + $0x238] sm:$0xff] }
  0x6f   :  { %566 = vmatprep.mubr.f32.mxu0 %v51_v21  ;;  %806 = vmatprep.mubr.f32.mxu1 %v195_v22  ;;  %v99_v21 = vld [vmem:[%s3602_s0 + $0x2a8] sm:$0xff]  ;;  %v88_v22 = vld [vmem:[%s3602_s0 + $0x250] sm:$0xff] }
  0x72   :  { %567 = vmatmul.mubr.f32.gmra.mxu0 %v50_v23  ;;  %807 = vmatmul.mubr.f32.gmra.mxu1 %v194_v24  ;;  %v98_v23 = vld [vmem:[%s3602_s0 + $0x2a0] sm:$0xff]  ;;  %v91_v24 = vld [vmem:[%s3602_s0 + $0x268] sm:$0xff] }
  0x73   :  { %571 = vmatprep.mubr.f32.mxu0 %v54_v25  ;;  %811 = vmatprep.mubr.f32.mxu1 %v198_v26  ;;  %v102_v25 = vld [vmem:[%s3602_s0 + $0x2c0] sm:$0xff] }
  0x74   :  { %v94_v26 = vld [vmem:[%s3602_s0 + $0x280] sm:$0xff] }
  0x76   :  { %572 = vmatmul.mubr.f32.gmra.mxu0 %v53_v27  ;;  %812 = vmatmul.mubr.f32.gmra.mxu1 %v197_v28  ;;  %v101_v27 = vld [vmem:[%s3602_s0 + $0x2b8] sm:$0xff] }
  0x77   :  { %576 = vmatprep.mubr.f32.mxu0 %v57_v29  ;;  %816 = vmatprep.mubr.f32.mxu1 %v201_v30  ;;  %v97_v28 = vld [vmem:[%s3602_s0 + $0x298] sm:$0xff]  ;;  %v100_v30 = vld [vmem:[%s3602_s0 + $0x2b0] sm:$0xff] }
  0x78   :  { %v105_v29 = vld [vmem:[%s3602_s0 + $0x2d8] sm:$0xff] }
  0x7a   :  { %577 = vmatmul.mubr.f32.gmra.mxu0 %v56_v31  ;;  %817 = vmatmul.mubr.f32.gmra.mxu1 %v200_v32  ;;  %v104_v31 = vld [vmem:[%s3602_s0 + $0x2d0] sm:$0xff]  ;;  %v103_v32 = vld [vmem:[%s3602_s0 + $0x2c8] sm:$0xff] }
  0x7b   :  { %581 = vmatprep.mubr.f32.mxu0 %v60_v33  ;;  %821 = vmatprep.mubr.f32.mxu1 %v204_v34  ;;  %v108_v33 = vld [vmem:[%s3602_s0 + $0x2f0] sm:$0xff]  ;;  %v106_v34 = vld [vmem:[%s3602_s0 + $0x2e0] sm:$0xff] }
  0x7e   :  { %582 = vmatmul.mubr.f32.gmra.mxu0 %v59_v35  ;;  %822 = vmatmul.mubr.f32.gmra.mxu1 %v203_v36  ;;  %v107_v35 = vld [vmem:[%s3602_s0 + $0x2e8] sm:$0xff]  ;;  %v109_v36 = vld [vmem:[%s3602_s0 + $0x2f8] sm:$0xff] }
  0x7f   :  { %586 = vmatprep.mubr.f32.mxu0 %v63_v37  ;;  %1870 = vmatprep.mubr.msk.f32.mxu1 %vm249_vm0, %v16_v38  ;;  %v111_v37 = vld [vmem:[%s3602_s0 + $0x308] sm:$0xff]  ;;  %v112_v38 = vld [vmem:[%s3602_s0 + $0x310] sm:$0xff] }
  0x82   :  { %587 = vmatmul.mubr.f32.gmra.mxu0 %v62_v39  ;;  %1871 = vmatmul.mubr.msk.f32.vlgmr.msra.gmra.mxu1 %vm249_vm0, %v19_v40  ;;  %v110_v39 = vld [vmem:[%s3602_s0 + $0x300] sm:$0xff]  ;;  %v115_v40 = vld [vmem:[%s3602_s0 + $0x328] sm:$0xff] }
  0x83   :  { %591 = vmatprep.mubr.f32.mxu0 %v66_v41  ;;  %1873 = vmatprep.mubr.msk.f32.mxu1 %vm249_vm0, %v22_v42  ;;  %v114_v41 = vld [vmem:[%s3602_s0 + $0x320] sm:$0xff] }
  0x84   :  { %v118_v42 = vld [vmem:[%s3602_s0 + $0x340] sm:$0xff] }
  0x86   :  { %592 = vmatmul.mubr.f32.gmra.mxu0 %v65_v43  ;;  %1874 = vmatmul.mubr.msk.f32.gmra.mxu1 %vm249_vm0, %v25_v44  ;;  %v113_v43 = vld [vmem:[%s3602_s0 + $0x318] sm:$0xff] }
  0x87   :  { %596 = vmatprep.mubr.f32.mxu0 %v69_v45  ;;  %1876 = vmatprep.mubr.msk.f32.mxu1 %vm249_vm0, %v28_v46  ;;  %v121_v44 = vld [vmem:[%s3602_s0 + $0x358] sm:$0xff]  ;;  %v124_v46 = vld [vmem:[%s3602_s0 + $0x370] sm:$0xff] }
  0x88   :  { %v117_v45 = vld [vmem:[%s3602_s0 + $0x338] sm:$0xff] }
  0x8a   :  { %597 = vmatmul.mubr.f32.gmra.mxu0 %v68_v47  ;;  %1877 = vmatmul.mubr.msk.f32.gmra.mxu1 %vm249_vm0, %v31_v48  ;;  %v116_v47 = vld [vmem:[%s3602_s0 + $0x330] sm:$0xff]  ;;  %v127_v48 = vld [vmem:[%s3602_s0 + $0x388] sm:$0xff] }
  0x8b   :  { %601 = vmatprep.mubr.f32.mxu0 %v72_v49  ;;  %1879 = vmatprep.mubr.msk.f32.mxu1 %vm249_vm0, %v34_v50  ;;  %v120_v49 = vld [vmem:[%s3602_s0 + $0x350] sm:$0xff]  ;;  %v130_v50 = vld [vmem:[%s3602_s0 + $0x3a0] sm:$0xff] }
  0x8e   :  { %602 = vmatmul.mubr.f32.gmra.mxu0 %v71_v51  ;;  %1880 = vmatmul.mubr.msk.f32.gmra.mxu1 %vm249_vm0, %v37_v52  ;;  %v119_v51 = vld [vmem:[%s3602_s0 + $0x348] sm:$0xff]  ;;  %v133_v52 = vld [vmem:[%s3602_s0 + $0x3b8] sm:$0xff] }
  0x8f   :  { %606 = vmatprep.mubr.f32.mxu0 %v75_v53  ;;  %1882 = vmatprep.mubr.msk.f32.mxu1 %vm249_vm0, %v40_v54  ;;  %v123_v53 = vld [vmem:[%s3602_s0 + $0x368] sm:$0xff]  ;;  %v136_v54 = vld [vmem:[%s3602_s0 + $0x3d0] sm:$0xff] }
  0x92   :  { %607 = vmatmul.mubr.f32.gmra.mxu0 %v74_v55  ;;  %1883 = vmatmul.mubr.msk.f32.gmra.mxu1 %vm249_vm0, %v43_v56  ;;  %v122_v55 = vld [vmem:[%s3602_s0 + $0x360] sm:$0xff]  ;;  %v139_v56 = vld [vmem:[%s3602_s0 + $0x3e8] sm:$0xff] }
  0x93   :  { %611 = vmatprep.mubr.f32.mxu0 %v78_v57  ;;  %1885 = vmatprep.mubr.msk.f32.mxu1 %vm249_vm0, %v46_v58  ;;  %v126_v57 = vld [vmem:[%s3602_s0 + $0x380] sm:$0xff] }
  0x94   :  { %v142_v58 = vld [vmem:[%s3602_s0 + $0x400] sm:$0xff] }
  0x96   :  { %612 = vmatmul.mubr.f32.gmra.mxu0 %v77_v59  ;;  %1886 = vmatmul.mubr.msk.f32.gmra.mxu1 %vm249_vm0, %v49_v60  ;;  %v125_v59 = vld [vmem:[%s3602_s0 + $0x378] sm:$0xff] }
  0x97   :  { %616 = vmatprep.mubr.f32.mxu0 %v81_v61  ;;  %1888 = vmatprep.mubr.msk.f32.mxu1 %vm249_vm0, %v52_v62  ;;  %v145_v60 = vld [vmem:[%s3602_s0 + $0x418] sm:$0xff]  ;;  %v148_v62 = vld [vmem:[%s3602_s0 + $0x430] sm:$0xff] }
  0x98   :  { %v129_v61 = vld [vmem:[%s3602_s0 + $0x398] sm:$0xff] }
  0x9a   :  { %617 = vmatmul.mubr.f32.gmra.mxu0 %v80_v63  ;;  %1889 = vmatmul.mubr.msk.f32.gmra.mxu1 %vm249_vm0, %v55_v0  ;;  %v128_v63 = vld [vmem:[%s3602_s0 + $0x390] sm:$0xff]  ;;  %v151_v0 = vld [vmem:[%s3602_s0 + $0x448] sm:$0xff] }
  0x9b   :  { %621 = vmatprep.mubr.f32.mxu0 %v84_v1  ;;  %1891 = vmatprep.mubr.msk.f32.mxu1 %vm249_vm0, %v58_v2  ;;  %v132_v1 = vld [vmem:[%s3602_s0 + $0x3b0] sm:$0xff]  ;;  %v154_v2 = vld [vmem:[%s3602_s0 + $0x460] sm:$0xff] }
  0x9e   :  { %622 = vmatmul.mubr.f32.gmra.mxu0 %v83_v3  ;;  %1892 = vmatmul.mubr.msk.f32.gmra.mxu1 %vm249_vm0, %v61_v4  ;;  %v131_v3 = vld [vmem:[%s3602_s0 + $0x3a8] sm:$0xff]  ;;  %v157_v4 = vld [vmem:[%s3602_s0 + $0x478] sm:$0xff] }
  0x9f   :  { %626 = vmatprep.mubr.f32.mxu0 %v87_v5  ;;  %1894 = vmatprep.mubr.msk.f32.mxu1 %vm249_vm0, %v64_v6  ;;  %v135_v5 = vld [vmem:[%s3602_s0 + $0x3c8] sm:$0xff]  ;;  %v160_v6 = vld [vmem:[%s3602_s0 + $0x490] sm:$0xff] }
  0xa2   :  { %627 = vmatmul.mubr.f32.gmra.mxu0 %v86_v7  ;;  %1895 = vmatmul.mubr.msk.f32.gmra.mxu1 %vm249_vm0, %v67_v8  ;;  %v134_v7 = vld [vmem:[%s3602_s0 + $0x3c0] sm:$0xff]  ;;  %v163_v8 = vld [vmem:[%s3602_s0 + $0x4a8] sm:$0xff] }
  0xa3   :  { %631 = vmatprep.mubr.f32.mxu0 %v90_v9  ;;  %1897 = vmatprep.mubr.msk.f32.mxu1 %vm249_vm0, %v70_v10  ;;  %v138_v9 = vld [vmem:[%s3602_s0 + $0x3e0] sm:$0xff] }
  0xa4   :  { %v166_v10 = vld [vmem:[%s3602_s0 + $0x4c0] sm:$0xff] }
  0xa6   :  { %632 = vmatmul.mubr.f32.gmra.mxu0 %v89_v11  ;;  %1898 = vmatmul.mubr.msk.f32.gmra.mxu1 %vm249_vm0, %v73_v12  ;;  %v137_v11 = vld [vmem:[%s3602_s0 + $0x3d8] sm:$0xff] }
  0xa7   :  { %636 = vmatprep.mubr.f32.mxu0 %v93_v13  ;;  %1900 = vmatprep.mubr.msk.f32.mxu1 %vm249_vm0, %v76_v14  ;;  %v169_v12 = vld [vmem:[%s3602_s0 + $0x4d8] sm:$0xff]  ;;  %v172_v14 = vld [vmem:[%s3602_s0 + $0x4f0] sm:$0xff] }
  0xa8   :  { %v141_v13 = vld [vmem:[%s3602_s0 + $0x3f8] sm:$0xff] }
  0xaa   :  { %637 = vmatmul.mubr.f32.gmra.mxu0 %v92_v15  ;;  %1901 = vmatmul.mubr.msk.f32.gmra.mxu1 %vm249_vm0, %v79_v16  ;;  %v140_v15 = vld [vmem:[%s3602_s0 + $0x3f0] sm:$0xff]  ;;  %v175_v16 = vld [vmem:[%s3602_s0 + $0x508] sm:$0xff] }
  0xab   :  { %641 = vmatprep.mubr.f32.mxu0 %v96_v17  ;;  %1903 = vmatprep.mubr.msk.f32.mxu1 %vm249_vm0, %v82_v18  ;;  %v144_v17 = vld [vmem:[%s3602_s0 + $0x410] sm:$0xff]  ;;  %v178_v18 = vld [vmem:[%s3602_s0 + $0x520] sm:$0xff] }
  0xae   :  { %642 = vmatmul.mubr.f32.gmra.mxu0 %v95_v19  ;;  %1904 = vmatmul.mubr.msk.f32.gmra.mxu1 %vm249_vm0, %v85_v20  ;;  %v143_v19 = vld [vmem:[%s3602_s0 + $0x408] sm:$0xff]  ;;  %v181_v20 = vld [vmem:[%s3602_s0 + $0x538] sm:$0xff] }
  0xaf   :  { %646 = vmatprep.mubr.f32.mxu0 %v99_v21  ;;  %1906 = vmatprep.mubr.msk.f32.mxu1 %vm249_vm0, %v88_v22  ;;  %v147_v21 = vld [vmem:[%s3602_s0 + $0x428] sm:$0xff]  ;;  %v184_v22 = vld [vmem:[%s3602_s0 + $0x550] sm:$0xff] }
  0xb2   :  { %647 = vmatmul.mubr.f32.gmra.mxu0 %v98_v23  ;;  %1907 = vmatmul.mubr.msk.f32.gmra.mxu1 %vm249_vm0, %v91_v24  ;;  %v146_v23 = vld [vmem:[%s3602_s0 + $0x420] sm:$0xff]  ;;  %v187_v24 = vld [vmem:[%s3602_s0 + $0x568] sm:$0xff] }
  0xb3   :  { %651 = vmatprep.mubr.f32.mxu0 %v102_v25  ;;  %1909 = vmatprep.mubr.msk.f32.mxu1 %vm249_vm0, %v94_v26  ;;  %v150_v25 = vld [vmem:[%s3602_s0 + $0x440] sm:$0xff] }
  0xb4   :  { %v190_v26 = vld [vmem:[%s3602_s0 + $0x580] sm:$0xff] }
  0xb6   :  { %652 = vmatmul.mubr.f32.gmra.mxu0 %v101_v27  ;;  %1910 = vmatmul.mubr.msk.f32.gmra.mxu1 %vm249_vm0, %v97_v28  ;;  %v149_v27 = vld [vmem:[%s3602_s0 + $0x438] sm:$0xff] }
  0xb7   :  { %656 = vmatprep.mubr.f32.mxu0 %v105_v29  ;;  %1912 = vmatprep.mubr.msk.f32.mxu1 %vm249_vm0, %v100_v30  ;;  %v193_v28 = vld [vmem:[%s3602_s0 + $0x598] sm:$0xff]  ;;  %v196_v30 = vld [vmem:[%s3602_s0 + $0x5b0] sm:$0xff] }
  0xb8   :  { %v153_v29 = vld [vmem:[%s3602_s0 + $0x458] sm:$0xff] }
  0xba   :  { %657 = vmatmul.mubr.f32.gmra.mxu0 %v104_v31  ;;  %1913 = vmatmul.mubr.msk.f32.gmra.mxu1 %vm249_vm0, %v103_v32  ;;  %v152_v31 = vld [vmem:[%s3602_s0 + $0x450] sm:$0xff]  ;;  %v199_v32 = vld [vmem:[%s3602_s0 + $0x5c8] sm:$0xff] }
  0xbb   :  { %661 = vmatprep.mubr.f32.mxu0 %v108_v33  ;;  %1915 = vmatprep.mubr.msk.f32.mxu1 %vm249_vm0, %v106_v34  ;;  %v156_v33 = vld [vmem:[%s3602_s0 + $0x470] sm:$0xff]  ;;  %v202_v34 = vld [vmem:[%s3602_s0 + $0x5e0] sm:$0xff] }
  0xbe   :  { %662 = vmatmul.mubr.f32.gmra.mxu0 %v107_v35  ;;  %1916 = vmatmul.mubr.msk.f32.gmra.mxu1 %vm249_vm0, %v109_v36  ;;  %v155_v35 = vld [vmem:[%s3602_s0 + $0x468] sm:$0xff]  ;;  %v205_v36 = vld [vmem:[%s3602_s0 + $0x5f8] sm:$0xff] }
  0xbf   :  { %666 = vmatprep.mubr.f32.mxu0 %v111_v37  ;;  %1918 = vmatprep.mubr.msk.f32.mxu1 %vm249_vm0, %v112_v38 }
  0xc2   :  { %667 = vmatmul.mubr.f32.gmra.mxu0 %v110_v39  ;;  %1919 = vmatmul.mubr.msk.f32.gmra.mxu1 %vm249_vm0, %v115_v40 }
  0xc3   :  { %671 = vmatprep.mubr.f32.mxu0 %v114_v41  ;;  %1921 = vmatprep.mubr.msk.f32.mxu1 %vm249_vm0, %v118_v42 }
  0xc6   :  { %672 = vmatmul.mubr.f32.gmra.mxu0 %v113_v43  ;;  %1922 = vmatmul.mubr.msk.f32.gmra.mxu1 %vm249_vm0, %v121_v44 }
  0xc7   :  { %676 = vmatprep.mubr.f32.mxu0 %v117_v45  ;;  %1924 = vmatprep.mubr.msk.f32.mxu1 %vm249_vm0, %v124_v46 }
  0xca   :  { %677 = vmatmul.mubr.f32.gmra.mxu0 %v116_v47  ;;  %1925 = vmatmul.mubr.msk.f32.gmra.mxu1 %vm249_vm0, %v127_v48 }
  0xcb   :  { %681 = vmatprep.mubr.f32.mxu0 %v120_v49  ;;  %1927 = vmatprep.mubr.msk.f32.mxu1 %vm249_vm0, %v130_v50 }
  0xce   :  { %682 = vmatmul.mubr.f32.gmra.mxu0 %v119_v51  ;;  %1928 = vmatmul.mubr.msk.f32.gmra.mxu1 %vm249_vm0, %v133_v52 }
  0xcf   :  { %686 = vmatprep.mubr.f32.mxu0 %v123_v53  ;;  %1930 = vmatprep.mubr.msk.f32.mxu1 %vm249_vm0, %v136_v54 }
  0xd2   :  { %687 = vmatmul.mubr.f32.gmra.mxu0 %v122_v55  ;;  %1931 = vmatmul.mubr.msk.f32.gmra.mxu1 %vm249_vm0, %v139_v56 }
  0xd3   :  { %691 = vmatprep.mubr.f32.mxu0 %v126_v57  ;;  %1933 = vmatprep.mubr.msk.f32.mxu1 %vm249_vm0, %v142_v58 }
  0xd6   :  { %692 = vmatmul.mubr.f32.gmra.mxu0 %v125_v59  ;;  %1934 = vmatmul.mubr.msk.f32.gmra.mxu1 %vm249_vm0, %v145_v60 }
  0xd7   :  { %696 = vmatprep.mubr.f32.mxu0 %v129_v61  ;;  %1936 = vmatprep.mubr.msk.f32.mxu1 %vm249_vm0, %v148_v62 }
  0xda   :  { %697 = vmatmul.mubr.f32.gmra.mxu0 %v128_v63  ;;  %1937 = vmatmul.mubr.msk.f32.gmra.mxu1 %vm249_vm0, %v151_v0 }
  0xdb   :  { %701 = vmatprep.mubr.f32.mxu0 %v132_v1  ;;  %1939 = vmatprep.mubr.msk.f32.mxu1 %vm249_vm0, %v154_v2 }
  0xde   :  { %702 = vmatmul.mubr.f32.gmra.mxu0 %v131_v3  ;;  %1940 = vmatmul.mubr.msk.f32.gmra.mxu1 %vm249_vm0, %v157_v4 }
  0xdf   :  { %706 = vmatprep.mubr.f32.mxu0 %v135_v5  ;;  %1942 = vmatprep.mubr.msk.f32.mxu1 %vm249_vm0, %v160_v6 }
  0xe2   :  { %707 = vmatmul.mubr.f32.gmra.mxu0 %v134_v7  ;;  %1943 = vmatmul.mubr.msk.f32.gmra.mxu1 %vm249_vm0, %v163_v8 }
  0xe3   :  { %711 = vmatprep.mubr.f32.mxu0 %v138_v9  ;;  %1945 = vmatprep.mubr.msk.f32.mxu1 %vm249_vm0, %v166_v10 }
  0xe6   :  { %712 = vmatmul.mubr.f32.gmra.mxu0 %v137_v11  ;;  %1946 = vmatmul.mubr.msk.f32.gmra.mxu1 %vm249_vm0, %v169_v12 }
  0xe7   :  { %716 = vmatprep.mubr.f32.mxu0 %v141_v13  ;;  %1948 = vmatprep.mubr.msk.f32.mxu1 %vm249_vm0, %v172_v14 }
  0xea   :  { %717 = vmatmul.mubr.f32.gmra.mxu0 %v140_v15  ;;  %1949 = vmatmul.mubr.msk.f32.gmra.mxu1 %vm249_vm0, %v175_v16 }
  0xeb   :  { %721 = vmatprep.mubr.f32.mxu0 %v144_v17  ;;  %1951 = vmatprep.mubr.msk.f32.mxu1 %vm249_vm0, %v178_v18 }
  0xee   :  { %722 = vmatmul.mubr.f32.gmra.mxu0 %v143_v19  ;;  %1952 = vmatmul.mubr.msk.f32.gmra.mxu1 %vm249_vm0, %v181_v20 }
  0xef   :  { %726 = vmatprep.mubr.f32.mxu0 %v147_v21  ;;  %1954 = vmatprep.mubr.msk.f32.mxu1 %vm249_vm0, %v184_v22 }
  0xf2   :  { %727 = vmatmul.mubr.f32.gmra.mxu0 %v146_v23  ;;  %1955 = vmatmul.mubr.msk.f32.gmra.mxu1 %vm249_vm0, %v187_v24 }
  0xf3   :  { %731 = vmatprep.mubr.f32.mxu0 %v150_v25  ;;  %1957 = vmatprep.mubr.msk.f32.mxu1 %vm249_vm0, %v190_v26 }
  0xf6   :  { %732 = vmatmul.mubr.f32.gmra.mxu0 %v149_v27  ;;  %1958 = vmatmul.mubr.msk.f32.gmra.mxu1 %vm249_vm0, %v193_v28 }
  0xf7   :  { %736 = vmatprep.mubr.f32.mxu0 %v153_v29  ;;  %1960 = vmatprep.mubr.msk.f32.mxu1 %vm249_vm0, %v196_v30 }
  0xfa   :  { %737 = vmatmul.mubr.f32.gmra.mxu0 %v152_v31  ;;  %1961 = vmatmul.mubr.msk.f32.gmra.mxu1 %vm249_vm0, %v199_v32 }
  0xfb   :  { %741 = vmatprep.mubr.f32.mxu0 %v156_v33  ;;  %1963 = vmatprep.mubr.msk.f32.mxu1 %vm249_vm0, %v202_v34 }
  0xfe   :  { %742 = vmatmul.mubr.f32.gmra.mxu0 %v155_v35  ;;  %1964 = vmatmul.mubr.msk.f32.gmra.mxu1 %vm249_vm0, %v205_v36  ;;  %v3184_v35 = vld [vmem:[%s3603_s2] ss:$0 sm:$0xff] }
 0x102   :  { %v3121_v37 = vpop.f32.mrf.mxu0  ;;  %v3123_v38 = vpop.f32.mrf.mxu1 }
 0x104   :  { %v510_v39 = vpop.f32.mrf.mxu0  ;;  %v750_v40 = vpop.f32.mrf.mxu1 }
 0x106   :  { %v513_v41 = vpop.f32.mrf.mxu0  ;;  %v3125_v42 = vpop.f32.mrf.mxu1 }
 0x107   :  { %v514_v40 = vadd.f32 %v3184_v35, %v513_v41 }
 0x108   :  { %v515_v43 = vpop.f32.mrf.mxu0  ;;  %v755_v44 = vpop.f32.mrf.mxu1 }
 0x10a   :  { %v3127_v45 = vpop.f32.mrf.mxu0  ;;  %v3129_v46 = vpop.f32.mrf.mxu1 }
 0x10c   :  { %v520_v47 = vpop.f32.mrf.mxu0  ;;  %v760_v48 = vpop.f32.mrf.mxu1 }
 0x10d   :  { %v509_v47 = vadd.f32 %v3184_v35, %v3121_v37 }
 0x10e   :  { %v523_v49 = vpop.f32.mrf.mxu0  ;;  %v3131_v50 = vpop.f32.mrf.mxu1 }
 0x110   :  { %v525_v51 = vpop.f32.mrf.mxu0  ;;  %v765_v52 = vpop.f32.mrf.mxu1 }
 0x112   :  { %v3133_v53 = vpop.f32.mrf.mxu0  ;;  %v3135_v54 = vpop.f32.mrf.mxu1 }
 0x114   :  { %v530_v55 = vpop.f32.mrf.mxu0  ;;  %v770_v56 = vpop.f32.mrf.mxu1 }
 0x115   :  { %v524_v55 = vadd.f32 %v3184_v35, %v523_v49 }
 0x116   :  { %v3137_v57 = vpop.f32.mrf.mxu0  ;;  %v3139_v58 = vpop.f32.mrf.mxu1 }
 0x117   :  { %v534_v37 = vadd.f32 %v3184_v35, %v3137_v57 }
 0x118   :  { %v535_v59 = vpop.f32.mrf.mxu0  ;;  %v775_v60 = vpop.f32.mrf.mxu1 }
 0x11a   :  { %v3141_v61 = vpop.f32.mrf.mxu0  ;;  %v3143_v62 = vpop.f32.mrf.mxu1 }
 0x11c   :  { %v540_v63 = vpop.f32.mrf.mxu0  ;;  %v780_v0 = vpop.f32.mrf.mxu1 }
 0x11d   :  { %v519_v0 = vadd.f32 %v3184_v35, %v3127_v45 }
 0x11e   :  { %v3145_v1 = vpop.f32.mrf.mxu0  ;;  %v3147_v2 = vpop.f32.mrf.mxu1 }
 0x120   :  { %v545_v3 = vpop.f32.mrf.mxu0  ;;  %v785_v4 = vpop.f32.mrf.mxu1 }
 0x122   :  { %v3149_v5 = vpop.f32.mrf.mxu0  ;;  %v3151_v6 = vpop.f32.mrf.mxu1 }
 0x124   :  { %v550_v7 = vpop.f32.mrf.mxu0  ;;  %v790_v8 = vpop.f32.mrf.mxu1 }
 0x126   :  { %v3153_v9 = vpop.f32.mrf.mxu0  ;;  %v3155_v10 = vpop.f32.mrf.mxu1 }
 0x128   :  { %v555_v11 = vpop.f32.mrf.mxu0  ;;  %v795_v12 = vpop.f32.mrf.mxu1 }
 0x12a   :  { %v3157_v13 = vpop.f32.mrf.mxu0  ;;  %v3159_v14 = vpop.f32.mrf.mxu1 }
 0x12c   :  { %v560_v15 = vpop.f32.mrf.mxu0  ;;  %v800_v16 = vpop.f32.mrf.mxu1 }
 0x12d   :  { %v529_v15 = vadd.f32 %v3184_v35, %v3133_v53 }
 0x12e   :  { %v3161_v17 = vpop.f32.mrf.mxu0  ;;  %v3163_v18 = vpop.f32.mrf.mxu1 }
 0x130   :  { %v565_v19 = vpop.f32.mrf.mxu0  ;;  %v805_v20 = vpop.f32.mrf.mxu1 }
 0x132   :  { %v3165_v21 = vpop.f32.mrf.mxu0  ;;  %v3167_v22 = vpop.f32.mrf.mxu1 }
 0x134   :  { %v570_v23 = vpop.f32.mrf.mxu0  ;;  %v810_v24 = vpop.f32.mrf.mxu1 }
 0x135   :  { %v544_v23 = vadd.f32 %v3184_v35, %v3145_v1 }
 0x136   :  { %v3169_v25 = vpop.f32.mrf.mxu0  ;;  %v3171_v26 = vpop.f32.mrf.mxu1 }
 0x138   :  { %v575_v27 = vpop.f32.mrf.mxu0  ;;  %v815_v28 = vpop.f32.mrf.mxu1 }
 0x13a   :  { %v3173_v29 = vpop.f32.mrf.mxu0  ;;  %v3175_v30 = vpop.f32.mrf.mxu1 }
 0x13c   :  { %v580_v31 = vpop.f32.mrf.mxu0  ;;  %v820_v32 = vpop.f32.mrf.mxu1 }
 0x13d   :  { %v539_v31 = vadd.f32 %v3184_v35, %v3141_v61 }
 0x13e   :  { %v3177_v33 = vpop.f32.mrf.mxu0  ;;  %v3179_v34 = vpop.f32.mrf.mxu1 }
 0x140   :  { %v585_v36 = vpop.f32.mrf.mxu0  ;;  %v825_v39 = vpop.f32.mrf.mxu1 }
 0x142   :  { %v3187_v43 = vpop.f32.mrf.mxu0  ;;  %v1872_v44 = vpop.f32.mrf.mxu1 }
 0x143   :  { %v899_v48 = vadd.f32 %v1872_v44, %v514_v40  ;;  %v554_v40 = vadd.f32 %v3184_v35, %v3153_v9 }
 0x144   :  { %v590_v51 = vpop.f32.mrf.mxu0  ;;  %v893_v52 = vpop.f32.mrf.mxu1 }
 0x145   :  { %v1731_v56 = vmul.f32 -1.442695, %v899_v48  ;;  %v894_v59 = vadd.f32 %v893_v52, %v509_v47  ;;  %v549_v51 = vadd.f32 %v3184_v35, %v3149_v5  ;;  %v559_v5 = vadd.f32 %v3184_v35, %v3157_v13 }
 0x146   :  { %v3192_v60 = vpop.f32.mrf.mxu0  ;;  %v1875_v63 = vpop.f32.mrf.mxu1 }
 0x147   :  { %2031 = vpow2.f32 %v1731_v56  ;;  %v1730_v41 = vmul.f32 -1.442695, %v894_v59  ;;  %v909_v3 = vadd.f32 %v1875_v63, %v524_v55 }
 0x148   :  { %v595_v4 = vpop.f32.mrf.mxu0  ;;  %v903_v7 = vpop.f32.mrf.mxu1 }
 0x149   :  { %2033 = vpow2.f32 %v1730_v41  ;;  %v1733_v8 = vmul.f32 -1.442695, %v909_v3  ;;  %v904_v11 = vadd.f32 %v903_v7, %v519_v0  ;;  %v564_v3 = vadd.f32 %v3184_v35, %v3161_v17 }
 0x14a   :  { %v3198_v49 = vpop.f32.mrf.mxu0  ;;  %v1878_v12 = vpop.f32.mrf.mxu1  ;;  %v574_v17 = vadd.f32 %v3184_v35, %v3169_v25 }
 0x14b   :  { %2035 = vpow2.f32 %v1733_v8  ;;  %v1732_v16 = vmul.f32 -1.442695, %v904_v11  ;;  %v919_v45 = vadd.f32 %v1878_v12, %v534_v37 }
 0x14c   :  { %v600_v19 = vpop.f32.mrf.mxu0  ;;  %v913_v20 = vpop.f32.mrf.mxu1 }
 0x14d   :  { %2037 = vpow2.f32 %v1732_v16  ;;  %v1735_v24 = vmul.f32 -1.442695, %v919_v45  ;;  %v914_v57 = vadd.f32 %v913_v20, %v529_v15 }
 0x14e   :  { %v3204_v27 = vpop.f32.mrf.mxu0  ;;  %v1881_v28 = vpop.f32.mrf.mxu1 }
 0x14f   :  { %2039 = vpow2.f32 %v1735_v24  ;;  %v1734_v32 = vmul.f32 -1.442695, %v914_v57  ;;  %v929_v53 = vadd.f32 %v1881_v28, %v544_v23  ;;  %v569_v57 = vadd.f32 %v3184_v35, %v3165_v21 }
 0x150   :  { %v605_v36 = vpop.f32.mrf.mxu0  ;;  %v923_v39 = vpop.f32.mrf.mxu1 }
 0x151   :  { %2041 = vpow2.f32 %v1734_v32  ;;  %v1737_v44 = vmul.f32 -1.442695, %v929_v53  ;;  %v924_v1 = vadd.f32 %v923_v39, %v539_v31 }
 0x152   :  { %v3210_v47 = vpop.f32.mrf.mxu0  ;;  %v1884_v48 = vpop.f32.mrf.mxu1 }
 0x153   :  { %2043 = vpow2.f32 %v1737_v44  ;;  %v1736_v52 = vmul.f32 -1.442695, %v924_v1  ;;  %v939_v61 = vadd.f32 %v1884_v48, %v554_v40  ;;  %v584_v1 = vadd.f32 %v3184_v35, %v3177_v33 }
 0x154   :  { %v2032_v55 = vpop.eup %2031  ;;  %v610_v56 = vpop.f32.mrf.mxu0 }
 0x155   :  { %v933_v59 = vpop.f32.mrf.mxu1  ;;  %v1405_v63 = vadd.f32 1.0, %v2032_v55  ;;  %2045 = vpow2.f32 %v1736_v52  ;;  %v1739_v0 = vmul.f32 -1.442695, %v939_v61  ;;  %v579_v52 = vadd.f32 %v3184_v35, %v3173_v29 }
 0x156   :  { %v934_v41 = vadd.f32 %v933_v59, %v549_v51  ;;  %v2034_v9 = vpop.eup %2033  ;;  %v3216_v4 = vpop.f32.mrf.mxu0 }
 0x157   :  { %v1887_v7 = vpop.f32.mrf.mxu1  ;;  %2047 = vrcp.f32 %v1405_v63  ;;  %v1404_v37 = vadd.f32 1.0, %v2034_v9 }
 0x158   :  { %v1738_v8 = vmul.f32 -1.442695, %v934_v41  ;;  %v2036_v11 = vpop.eup %2035  ;;  %2049 = vpow2.f32 %v1739_v0  ;;  %v949_v12 = vadd.f32 %v1887_v7, %v564_v3  ;;  %v615_v15 = vpop.f32.mrf.mxu0  ;;  %v594_v3 = vadd.f32 %v3184_v35, %v3192_v60 }
 0x159   :  { %v943_v16 = vpop.f32.mrf.mxu1  ;;  %2051 = vrcp.f32 %v1404_v37  ;;  %v1407_v45 = vadd.f32 1.0, %v2036_v11  ;;  %v589_v37 = vadd.f32 %v3184_v35, %v3187_v43  ;;  %v604_v60 = vadd.f32 %v3184_v35, %v3204_v27 }
 0x15a   :  { %v944_v19 = vadd.f32 %v943_v16, %v559_v5  ;;  %v2038_v20 = vpop.eup %2037  ;;  %2053 = vpow2.f32 %v1738_v8  ;;  %v1741_v23 = vmul.f32 -1.442695, %v949_v12  ;;  %v3222_v24 = vpop.f32.mrf.mxu0 }
 0x15b   :  { %v1890_v13 = vpop.f32.mrf.mxu1  ;;  %2055 = vrcp.f32 %v1407_v45  ;;  %v1406_v28 = vadd.f32 1.0, %v2038_v20 }
 0x15c   :  { %v1740_v31 = vmul.f32 -1.442695, %v944_v19  ;;  %v2040_v32 = vpop.eup %2039  ;;  %2057 = vpow2.f32 %v1741_v23  ;;  %v959_v53 = vadd.f32 %v1890_v13, %v574_v17  ;;  %v620_v36 = vpop.f32.mrf.mxu0 }
 0x15d   :  { %v953_v39 = vpop.f32.mrf.mxu1  ;;  %2059 = vrcp.f32 %v1406_v28  ;;  %v1409_v40 = vadd.f32 1.0, %v2040_v32 }
 0x15e   :  { %v954_v44 = vadd.f32 %v953_v39, %v569_v57  ;;  %v2042_v25 = vpop.eup %2041  ;;  %2061 = vpow2.f32 %v1740_v31  ;;  %v1743_v48 = vmul.f32 -1.442695, %v959_v53  ;;  %v3228_v51 = vpop.f32.mrf.mxu0  ;;  %v599_v31 = vadd.f32 %v3184_v35, %v3198_v49 }
 0x15f   :  { %v1893_v21 = vpop.f32.mrf.mxu1  ;;  %2063 = vrcp.f32 %v1409_v40  ;;  %v1408_v61 = vadd.f32 1.0, %v2042_v25  ;;  %v614_v25 = vadd.f32 %v3184_v35, %v3216_v4 }
 0x160   :  { %v1742_v55 = vmul.f32 -1.442695, %v954_v44  ;;  %v2044_v56 = vpop.eup %2043  ;;  %2065 = vpow2.f32 %v1743_v48  ;;  %v969_v59 = vadd.f32 %v1893_v21, %v584_v1  ;;  %v625_v63 = vpop.f32.mrf.mxu0 }
 0x161   :  { %v963_v0 = vpop.f32.mrf.mxu1  ;;  %2067 = vrcp.f32 %v1408_v61  ;;  %v1411_v41 = vadd.f32 1.0, %v2044_v56  ;;  %v609_v56 = vadd.f32 %v3184_v35, %v3210_v47 }
 0x162   :  { %v964_v9 = vadd.f32 %v963_v0, %v579_v52  ;;  %v2046_v33 = vpop.eup %2045  ;;  %2069 = vpow2.f32 %v1742_v55  ;;  %v1745_v7 = vmul.f32 -1.442695, %v969_v59  ;;  %v3234_v5 = vpop.f32.mrf.mxu0 }
 0x163   :  { %v1896_v29 = vpop.f32.mrf.mxu1  ;;  %2071 = vrcp.f32 %v1411_v41  ;;  %v1410_v8 = vadd.f32 1.0, %v2046_v33 }
 0x164   :  { %v1744_v11 = vmul.f32 -1.442695, %v964_v9  ;;  %v2048_v12 = vpop.eup %2047  ;;  %2073 = vpow2.f32 %v1745_v7  ;;  %v979_v15 = vadd.f32 %v1896_v29, %v594_v3  ;;  %v630_v16 = vpop.f32.mrf.mxu0  ;;  %v624_v3 = vadd.f32 %v3184_v35, %v3228_v51 }
 0x165   :  { %v973_v45 = vpop.f32.mrf.mxu1  ;;  %v2050_v19 = vpop.eup %2049  ;;  %1598 = vst.msk [vmem:[%s3604_s3 + $0x8] sm:$0xff] %vm1596_vm1, %v2048_v12  ;;  %2075 = vrcp.f32 %v1410_v8 }
 0x166   :  { %v974_v20 = vadd.f32 %v973_v45, %v589_v37  ;;  %v2052_v43 = vpop.eup %2051  ;;  %v1413_v17 = vadd.f32 1.0, %v2050_v19  ;;  %2077 = vpow2.f32 %v1744_v11  ;;  %v1747_v23 = vmul.f32 -1.442695, %v979_v15  ;;  %v633_v13 = vpop.f32.mrf.mxu0 }
 0x167   :  { %v1899_v57 = vpop.f32.mrf.mxu1  ;;  %v2054_v28 = vpop.eup %2053  ;;  %1597 = vst.msk [vmem:[%s3604_s3] sm:$0xff] %vm1596_vm1, %v2052_v43  ;;  %v619_v15 = vadd.f32 %v3184_v35, %v3222_v24 }
 0x168   :  { %v1746_v32 = vmul.f32 -1.442695, %v974_v20  ;;  %v989_v53 = vadd.f32 %v1899_v57, %v604_v60  ;;  %v2056_v27 = vpop.eup %2055  ;;  %2079 = vrcp.f32 %v1413_v17  ;;  %v1412_v36 = vadd.f32 1.0, %v2054_v28  ;;  %v635_v39 = vpop.f32.mrf.mxu0 }
 0x169   :  { %v983_v40 = vpop.f32.mrf.mxu1  ;;  %v2058_v44 = vpop.eup %2057  ;;  %1600 = vst.msk [vmem:[%s3604_s3 + $0x18] sm:$0xff] %vm1596_vm1, %v2056_v27  ;;  %2081 = vpow2.f32 %v1747_v23  ;;  %v634_v17 = vadd.f32 %v3184_v35, %v633_v13  ;;  %v629_v27 = vadd.f32 %v3184_v35, %v3234_v5 }
 0x16a   :  { %v1749_v1 = vmul.f32 -1.442695, %v989_v53  ;;  %v984_v48 = vadd.f32 %v983_v40, %v599_v31  ;;  %v2060_v49 = vpop.eup %2059  ;;  %2083 = vrcp.f32 %v1412_v36  ;;  %v1415_v21 = vadd.f32 1.0, %v2058_v44  ;;  %v3256_v52 = vpop.f32.mrf.mxu0 }
 0x16b   :  { %v1902_v61 = vpop.f32.mrf.mxu1  ;;  %v2062_v55 = vpop.eup %2061  ;;  %1599 = vst.msk [vmem:[%s3604_s3 + $0x10] sm:$0xff] %vm1596_vm1, %v2060_v49  ;;  %2085 = vpow2.f32 %v1746_v32 }
 0x16c   :  { %v1748_v4 = vmul.f32 -1.442695, %v984_v48  ;;  %v999_v59 = vadd.f32 %v1902_v61, %v614_v25  ;;  %v2064_v63 = vpop.eup %2063  ;;  %2087 = vrcp.f32 %v1415_v21  ;;  %v1414_v0 = vadd.f32 1.0, %v2062_v55  ;;  %v640_v41 = vpop.f32.mrf.mxu0 }
 0x16d   :  { %v993_v9 = vpop.f32.mrf.mxu1  ;;  %v2066_v33 = vpop.eup %2065  ;;  %1602 = vst.msk [vmem:[%s3604_s3 + $0x28] sm:$0xff] %vm1596_vm1, %v2064_v63  ;;  %2089 = vpow2.f32 %v1749_v1 }
 0x16e   :  { %v1751_v7 = vmul.f32 -1.442695, %v999_v59  ;;  %v994_v47 = vadd.f32 %v993_v9, %v609_v56  ;;  %v2068_v29 = vpop.eup %2067  ;;  %2091 = vrcp.f32 %v1414_v0  ;;  %v1417_v37 = vadd.f32 1.0, %v2066_v33  ;;  %v643_v8 = vpop.f32.mrf.mxu0 }
 0x16f   :  { %v1905_v11 = vpop.f32.mrf.mxu1  ;;  %v2070_v12 = vpop.eup %2069  ;;  %1601 = vst.msk [vmem:[%s3604_s3 + $0x20] sm:$0xff] %vm1596_vm1, %v2068_v29  ;;  %2093 = vpow2.f32 %v1748_v4  ;;  %v644_v5 = vadd.f32 %v3184_v35, %v643_v8  ;;  %v639_v4 = vadd.f32 %v3184_v35, %v3256_v52 }
 0x170   :  { %v1750_v16 = vmul.f32 -1.442695, %v994_v47  ;;  %v1009_v51 = vadd.f32 %v1905_v11, %v624_v3  ;;  %v2072_v45 = vpop.eup %2071  ;;  %2095 = vrcp.f32 %v1417_v37  ;;  %v1416_v19 = vadd.f32 1.0, %v2070_v12  ;;  %v645_v60 = vpop.f32.mrf.mxu0 }
 0x171   :  { %v1003_v20 = vpop.f32.mrf.mxu1  ;;  %v2074_v43 = vpop.eup %2073  ;;  %1604 = vst.msk [vmem:[%s3604_s3 + $0x38] sm:$0xff] %vm1596_vm1, %v2072_v45  ;;  %2097 = vpow2.f32 %v1751_v7 }
 0x172   :  { %v1753_v23 = vmul.f32 -1.442695, %v1009_v51  ;;  %v1004_v57 = vadd.f32 %v1003_v20, %v619_v15  ;;  %v2076_v24 = vpop.eup %2075  ;;  %2099 = vrcp.f32 %v1416_v19  ;;  %v1419_v28 = vadd.f32 1.0, %v2074_v43  ;;  %v648_v31 = vpop.f32.mrf.mxu0 }
 0x173   :  { %v1908_v32 = vpop.f32.mrf.mxu1  ;;  %v2078_v53 = vpop.eup %2077  ;;  %1603 = vst.msk [vmem:[%s3604_s3 + $0x30] sm:$0xff] %vm1596_vm1, %v2076_v24  ;;  %2101 = vpow2.f32 %v1750_v16  ;;  %v649_v15 = vadd.f32 %v3184_v35, %v648_v31 }
 0x174   :  { %v1752_v36 = vmul.f32 -1.442695, %v1004_v57  ;;  %v1019_v13 = vadd.f32 %v1908_v32, %v634_v17  ;;  %2103 = vrcp.f32 %v1419_v28  ;;  %v1418_v39 = vadd.f32 1.0, %v2078_v53  ;;  %v650_v40 = vpop.f32.mrf.mxu0 }
 0x175   :  { %v1013_v44 = vpop.f32.mrf.mxu1  ;;  %v2080_v25 = vpop.eup %2079  ;;  %2105 = vpow2.f32 %v1753_v23 }
 0x176   :  { %v1755_v1 = vmul.f32 -1.442695, %v1019_v13  ;;  %v1014_v48 = vadd.f32 %v1013_v44, %v629_v27  ;;  %v2082_v49 = vpop.eup %2081  ;;  %1606 = vst.msk [vmem:[%s3604_s3 + $0x48] sm:$0xff] %vm1596_vm1, %v2080_v25  ;;  %2107 = vrcp.f32 %v1418_v39  ;;  %v653_v21 = vpop.f32.mrf.mxu0 }
 0x177   :  { %v1911_v61 = vpop.f32.mrf.mxu1  ;;  %v2084_v55 = vpop.eup %2083  ;;  %v1421_v56 = vadd.f32 1.0, %v2082_v49  ;;  %2109 = vpow2.f32 %v1752_v36  ;;  %v654_v52 = vadd.f32 %v3184_v35, %v653_v21 }
 0x178   :  { %v1754_v59 = vmul.f32 -1.442695, %v1014_v48  ;;  %v2086_v63 = vpop.eup %2085  ;;  %1605 = vst.msk [vmem:[%s3604_s3 + $0x40] sm:$0xff] %vm1596_vm1, %v2084_v55  ;;  %2111 = vpow2.f32 %v1755_v1  ;;  %v1029_v0 = vadd.f32 %v1911_v61, %v644_v5  ;;  %v655_v41 = vpop.f32.mrf.mxu0 }
 0x179   :  { %v1023_v9 = vpop.f32.mrf.mxu1  ;;  %v2088_v33 = vpop.eup %2087  ;;  %2113 = vrcp.f32 %v1421_v56  ;;  %v1420_v3 = vadd.f32 1.0, %v2086_v63 }
 0x17a   :  { %v1024_v7 = vadd.f32 %v1023_v9, %v639_v4  ;;  %v2090_v47 = vpop.eup %2089  ;;  %1608 = vst.msk [vmem:[%s3604_s3 + $0x58] sm:$0xff] %vm1596_vm1, %v2088_v33  ;;  %2115 = vpow2.f32 %v1754_v59  ;;  %v1757_v29 = vmul.f32 -1.442695, %v1029_v0  ;;  %v658_v37 = vpop.f32.mrf.mxu0 }
 0x17b   :  { %v1914_v8 = vpop.f32.mrf.mxu1  ;;  %v2092_v11 = vpop.eup %2091  ;;  %2117 = vrcp.f32 %v1420_v3  ;;  %v1423_v12 = vadd.f32 1.0, %v2090_v47  ;;  %v659_v57 = vadd.f32 %v3184_v35, %v658_v37 }
 0x17c   :  { %v1756_v16 = vmul.f32 -1.442695, %v1024_v7  ;;  %v2094_v51 = vpop.eup %2093  ;;  %1607 = vst.msk [vmem:[%s3604_s3 + $0x50] sm:$0xff] %vm1596_vm1, %v2092_v11  ;;  %2119 = vpow2.f32 %v1757_v29  ;;  %v1039_v45 = vadd.f32 %v1914_v8, %v654_v52  ;;  %v660_v19 = vpop.f32.mrf.mxu0 }
 0x17d   :  { %v1033_v60 = vpop.f32.mrf.mxu1  ;;  %v2096_v20 = vpop.eup %2095  ;;  %2121 = vrcp.f32 %v1423_v12  ;;  %v1422_v43 = vadd.f32 1.0, %v2094_v51 }
 0x17e   :  { %v1034_v17 = vadd.f32 %v1033_v60, %v649_v15  ;;  %v2098_v23 = vpop.eup %2097  ;;  %1610 = vst.msk [vmem:[%s3604_s3 + $0x68] sm:$0xff] %vm1596_vm1, %v2096_v20  ;;  %2123 = vpow2.f32 %v1756_v16  ;;  %v1759_v24 = vmul.f32 -1.442695, %v1039_v45  ;;  %v663_v28 = vpop.f32.mrf.mxu0 }
 0x17f   :  { %v1917_v31 = vpop.f32.mrf.mxu1  ;;  %v2100_v32 = vpop.eup %2099  ;;  %2125 = vrcp.f32 %v1422_v43  ;;  %v1425_v53 = vadd.f32 1.0, %v2098_v23  ;;  %v664_v36 = vadd.f32 %v3184_v35, %v663_v28 }
 0x180   :  { %v1758_v27 = vmul.f32 -1.442695, %v1034_v17  ;;  %v2102_v13 = vpop.eup %2101  ;;  %1609 = vst.msk [vmem:[%s3604_s3 + $0x60] sm:$0xff] %vm1596_vm1, %v2100_v32  ;;  %2127 = vpow2.f32 %v1759_v24  ;;  %v665_v39 = vpop.f32.mrf.mxu0 }
 0x181   :  { %v1043_v40 = vpop.f32.mrf.mxu1  ;;  %v2104_v44 = vpop.eup %2103  ;;  %2129 = vrcp.f32 %v1425_v53  ;;  %v1424_v25 = vadd.f32 1.0, %v2102_v13  ;;  %v1049_v1 = vadd.f32 %v1917_v31, %v664_v36 }
 0x182   :  { %v1044_v48 = vadd.f32 %v1043_v40, %v659_v57  ;;  %v2106_v49 = vpop.eup %2105  ;;  %1612 = vst.msk [vmem:[%s3604_s3 + $0x78] sm:$0xff] %vm1596_vm1, %v2104_v44  ;;  %2131 = vpow2.f32 %v1758_v27  ;;  %v668_v5 = vpop.f32.mrf.mxu0 }
 0x183   :  { %v1920_v21 = vpop.f32.mrf.mxu1  ;;  %v2108_v61 = vpop.eup %2107  ;;  %2133 = vrcp.f32 %v1424_v25  ;;  %v1427_v55 = vadd.f32 1.0, %v2106_v49  ;;  %v1761_v56 = vmul.f32 -1.442695, %v1049_v1  ;;  %v669_v59 = vadd.f32 %v3184_v35, %v668_v5 }
 0x184   :  { %v2110_v4 = vpop.eup %2109  ;;  %1611 = vst.msk [vmem:[%s3604_s3 + $0x70] sm:$0xff] %vm1596_vm1, %v2108_v61  ;;  %v670_v63 = vpop.f32.mrf.mxu0  ;;  %v1760_v33 = vmul.f32 -1.442695, %v1044_v48 }
 0x185   :  { %v1053_v0 = vpop.f32.mrf.mxu1  ;;  %v2112_v41 = vpop.eup %2111  ;;  %2135 = vrcp.f32 %v1427_v55  ;;  %v1426_v9 = vadd.f32 1.0, %v2110_v4 }
 0x186   :  { %v2114_v3 = vpop.eup %2113  ;;  %v1429_v7 = vadd.f32 1.0, %v2112_v41  ;;  %2137 = vpow2.f32 %v1761_v56  ;;  %v1054_v47 = vadd.f32 %v1053_v0, %v669_v59  ;;  %v673_v52 = vpop.f32.mrf.mxu0 }
 0x187   :  { %v1923_v29 = vpop.f32.mrf.mxu1  ;;  %v2116_v37 = vpop.eup %2115  ;;  %1614 = vst.msk [vmem:[%s3604_s3 + $0x88] sm:$0xff] %vm1596_vm1, %v2114_v3  ;;  %2139 = vrcp.f32 %v1426_v9  ;;  %v674_v8 = vadd.f32 %v3184_v35, %v673_v52 }
 0x188   :  { %v2118_v11 = vpop.eup %2117  ;;  %2141 = vrcp.f32 %v1429_v7  ;;  %v1428_v12 = vadd.f32 1.0, %v2116_v37  ;;  %v1762_v15 = vmul.f32 -1.442695, %v1054_v47  ;;  %v675_v16 = vpop.f32.mrf.mxu0 }
 0x189   :  { %v1063_v51 = vpop.f32.mrf.mxu1  ;;  %v2120_v45 = vpop.eup %2119  ;;  %1613 = vst.msk [vmem:[%s3604_s3 + $0x80] sm:$0xff] %vm1596_vm1, %v2118_v11  ;;  %2143 = vpow2.f32 %v1760_v33  ;;  %v1059_v19 = vadd.f32 %v1920_v21, %v674_v8 }
 0x18a   :  { %v2122_v60 = vpop.eup %2121  ;;  %2145 = vrcp.f32 %v1428_v12  ;;  %v1431_v20 = vadd.f32 1.0, %v2120_v45  ;;  %v678_v43 = vpop.f32.mrf.mxu0 }
 0x18b   :  { %v3336_v17 = vpop.f32.mrf.mxu1  ;;  %v2124_v23 = vpop.eup %2123  ;;  %1616 = vst.msk [vmem:[%s3604_s3 + $0x98] sm:$0xff] %vm1596_vm1, %v2122_v60  ;;  %2147 = vpow2.f32 %v1762_v15  ;;  %v1763_v57 = vmul.f32 -1.442695, %v1059_v19  ;;  %v679_v24 = vadd.f32 %v3184_v35, %v678_v43 }
 0x18c   :  { %v2126_v28 = vpop.eup %2125  ;;  %2149 = vrcp.f32 %v1431_v20  ;;  %v1430_v31 = vadd.f32 1.0, %v2124_v23  ;;  %v680_v32 = vpop.f32.mrf.mxu0 }
 0x18d   :  { %v1073_v53 = vpop.f32.mrf.mxu1  ;;  %v2128_v27 = vpop.eup %2127  ;;  %1615 = vst.msk [vmem:[%s3604_s3 + $0x90] sm:$0xff] %vm1596_vm1, %v2126_v28  ;;  %2151 = vpow2.f32 %v1763_v57  ;;  %v1064_v36 = vadd.f32 %v1063_v51, %v679_v24 }
 0x18e   :  { %v2130_v13 = vpop.eup %2129  ;;  %2153 = vrcp.f32 %v1430_v31  ;;  %v1433_v39 = vadd.f32 1.0, %v2128_v27  ;;  %v683_v40 = vpop.f32.mrf.mxu0 }
 0x18f   :  { %v3347_v44 = vpop.f32.mrf.mxu1  ;;  %v2132_v25 = vpop.eup %2131  ;;  %1618 = vst.msk [vmem:[%s3604_s3 + $0xa8] sm:$0xff] %vm1596_vm1, %v2130_v13  ;;  %v1764_v1 = vmul.f32 -1.442695, %v1064_v36  ;;  %v684_v48 = vadd.f32 %v3184_v35, %v683_v40 }
 0x190   :  { %v2134_v49 = vpop.eup %2133  ;;  %2155 = vrcp.f32 %v1433_v39  ;;  %v1432_v5 = vadd.f32 1.0, %v2132_v25  ;;  %v685_v21 = vpop.f32.mrf.mxu0 }
 0x191   :  { %v1083_v61 = vpop.f32.mrf.mxu1  ;;  %1617 = vst.msk [vmem:[%s3604_s3 + $0xa0] sm:$0xff] %vm1596_vm1, %v2134_v49  ;;  %2157 = vpow2.f32 %v1764_v1  ;;  %v1069_v55 = vadd.f32 %v1923_v29, %v684_v48 }
 0x192   :  { %v2136_v56 = vpop.eup %2135  ;;  %2159 = vrcp.f32 %v1432_v5  ;;  %v688_v4 = vpop.f32.mrf.mxu0 }
 0x193   :  { %v3358_v59 = vpop.f32.mrf.mxu1  ;;  %v2138_v63 = vpop.eup %2137  ;;  %1620 = vst.msk [vmem:[%s3604_s3 + $0xb8] sm:$0xff] %vm1596_vm1, %v2136_v56  ;;  %v1765_v0 = vmul.f32 -1.442695, %v1069_v55  ;;  %v689_v41 = vadd.f32 %v3184_v35, %v688_v4  ;;  %v754_v55 = vadd.f32 %v3184_v35, %v3125_v42 }
 0x194   :  { %v2140_v9 = vpop.eup %2139  ;;  %v1435_v33 = vadd.f32 1.0, %v2138_v63  ;;  %v690_v3 = vpop.f32.mrf.mxu0  ;;  %v749_v63 = vadd.f32 %v3184_v35, %v3123_v38 }
 0x195   :  { %v3365_v7 = vpop.f32.mrf.mxu1  ;;  %v2142_v47 = vpop.eup %2141  ;;  %1619 = vst.msk [vmem:[%s3604_s3 + $0xb0] sm:$0xff] %vm1596_vm1, %v2140_v9  ;;  %2161 = vpow2.f32 %v1765_v0  ;;  %v1074_v52 = vadd.f32 %v1073_v53, %v689_v41 }
 0x196   :  { %v2144_v29 = vpop.eup %2143  ;;  %1622 = vst.msk [vmem:[%s3604_s3 + $0xc8] sm:$0xff] %vm1596_vm1, %v2142_v47  ;;  %2163 = vrcp.f32 %v1435_v33  ;;  %v693_v37 = vpop.f32.mrf.mxu0 }
 0x197   :  { %v3375_v8 = vpop.f32.mrf.mxu1  ;;  %v2146_v11 = vpop.eup %2145  ;;  %v1434_v12 = vadd.f32 1.0, %v2144_v29  ;;  %v1766_v15 = vmul.f32 -1.442695, %v1074_v52  ;;  %v694_v16 = vadd.f32 %v3184_v35, %v693_v37 }
 0x198   :  { %v2148_v51 = vpop.eup %2147  ;;  %1621 = vst.msk [vmem:[%s3604_s3 + $0xc0] sm:$0xff] %vm1596_vm1, %v2146_v11  ;;  %v695_v45 = vpop.f32.mrf.mxu0 }
 0x199   :  { %v3382_v19 = vpop.f32.mrf.mxu1  ;;  %v2150_v60 = vpop.eup %2149  ;;  %2165 = vrcp.f32 %v1434_v12  ;;  %v1436_v20 = vadd.f32 1.0, %v2148_v51  ;;  %v1079_v43 = vadd.f32 %v3336_v17, %v694_v16  ;;  %v759_v12 = vadd.f32 %v3184_v35, %v3129_v46 }
 0x19a   :  { %v2152_v23 = vpop.eup %2151  ;;  %1624 = vst.msk [vmem:[%s3604_s3 + $0xd8] sm:$0xff] %vm1596_vm1, %v2150_v60  ;;  %2167 = vpow2.f32 %v1766_v15  ;;  %v698_v57 = vpop.f32.mrf.mxu0  ;;  %v764_v15 = vadd.f32 %v3184_v35, %v3131_v50 }
 0x19b   :  { %v3389_v24 = vpop.f32.mrf.mxu1  ;;  %v2154_v28 = vpop.eup %2153  ;;  %2169 = vrcp.f32 %v1436_v20  ;;  %v1437_v31 = vadd.f32 1.0, %v2152_v23  ;;  %v1767_v32 = vmul.f32 -1.442695, %v1079_v43  ;;  %v699_v53 = vadd.f32 %v3184_v35, %v698_v57 }
 0x19c   :  { %1623 = vst.msk [vmem:[%s3604_s3 + $0xd0] sm:$0xff] %vm1596_vm1, %v2154_v28  ;;  %v700_v17 = vpop.f32.mrf.mxu0 }
 0x19d   :  { %v3396_v27 = vpop.f32.mrf.mxu1  ;;  %v2156_v36 = vpop.eup %2155  ;;  %2171 = vrcp.f32 %v1437_v31  ;;  %v1084_v13 = vadd.f32 %v1083_v61, %v699_v53  ;;  %v769_v53 = vadd.f32 %v3184_v35, %v3135_v54  ;;  %v774_v17 = vadd.f32 %v3184_v35, %v3139_v58 }
 0x19e   :  { %v2158_v39 = vpop.eup %2157  ;;  %1626 = vst.msk [vmem:[%s3604_s3 + $0xe8] sm:$0xff] %vm1596_vm1, %v2156_v36  ;;  %2173 = vpow2.f32 %v1767_v32  ;;  %v703_v40 = vpop.f32.mrf.mxu0 }
 0x19f   :  { %v3402_v25 = vpop.f32.mrf.mxu1  ;;  %v2160_v1 = vpop.eup %2159  ;;  %v1438_v48 = vadd.f32 1.0, %v2158_v39  ;;  %v1768_v49 = vmul.f32 -1.442695, %v1084_v13  ;;  %v704_v5 = vadd.f32 %v3184_v35, %v703_v40 }
 0x1a0   :  { %1625 = vst.msk [vmem:[%s3604_s3 + $0xe0] sm:$0xff] %vm1596_vm1, %v2160_v1  ;;  %v705_v21 = vpop.f32.mrf.mxu0 }
 0x1a1   :  { %v3409_v61 = vpop.f32.mrf.mxu1  ;;  %2175 = vrcp.f32 %v1438_v48  ;;  %v1089_v56 = vadd.f32 %v3347_v44, %v704_v5 }
 0x1a2   :  { %v2162_v4 = vpop.eup %2161  ;;  %2177 = vpow2.f32 %v1768_v49  ;;  %v708_v0 = vpop.f32.mrf.mxu0 }
 0x1a3   :  { %v1944_v41 = vpop.f32.mrf.mxu1  ;;  %v2164_v9 = vpop.eup %2163  ;;  %v1439_v33 = vadd.f32 1.0, %v2162_v4  ;;  %v1769_v3 = vmul.f32 -1.442695, %v1089_v56  ;;  %v709_v47 = vadd.f32 %v3184_v35, %v708_v0  ;;  %v779_v4 = vadd.f32 %v3184_v35, %v3143_v62 }
 0x1a4   :  { %v1139_v52 = vadd.f32 %v1944_v41, %v754_v55  ;;  %1628 = vst.msk [vmem:[%s3604_s3 + $0xf8] sm:$0xff] %vm1596_vm1, %v2164_v9  ;;  %v710_v42 = vpop.f32.mrf.mxu0 }
 0x1a5   :  { %v1133_v44 = vpop.f32.mrf.mxu1  ;;  %2179 = vrcp.f32 %v1439_v33  ;;  %v1094_v29 = vadd.f32 %v3365_v7, %v709_v47 }
 0x1a6   :  { %v1779_v38 = vmul.f32 -1.442695, %v1139_v52  ;;  %v1134_v37 = vadd.f32 %v1133_v44, %v749_v63  ;;  %v2166_v11 = vpop.eup %2165  ;;  %2181 = vpow2.f32 %v1769_v3  ;;  %v713_v16 = vpop.f32.mrf.mxu0  ;;  %v784_v63 = vadd.f32 %v3184_v35, %v3147_v2 }
 0x1a7   :  { %v1947_v51 = vpop.f32.mrf.mxu1  ;;  %v2168_v45 = vpop.eup %2167  ;;  %1627 = vst.msk [vmem:[%s3604_s3 + $0xf0] sm:$0xff] %vm1596_vm1, %v2166_v11  ;;  %v1770_v60 = vmul.f32 -1.442695, %v1094_v29  ;;  %v714_v20 = vadd.f32 %v3184_v35, %v713_v16  ;;  %v3463_v16 = vld [vmem:[%s3603_s2] ss:$0 sm:$0xff] }
 0x1a8   :  { %2183 = vpow2.f32 %v1779_v38  ;;  %v1778_v7 = vmul.f32 -1.442695, %v1134_v37  ;;  %v2170_v43 = vpop.eup %2169  ;;  %v1440_v23 = vadd.f32 1.0, %v2168_v45  ;;  %v1149_v46 = vadd.f32 %v1947_v51, %v764_v15  ;;  %v715_v57 = vpop.f32.mrf.mxu0 }
 0x1a9   :  { %v1143_v28 = vpop.f32.mrf.mxu1  ;;  %1629 = vst.msk [vmem:[%s3604_s3 + $0x100] sm:$0xff] %vm1596_vm1, %v2170_v43  ;;  %2185 = vpow2.f32 %v1770_v60  ;;  %v1099_v50 = vadd.f32 %v3358_v59, %v714_v20  ;;  %v794_v45 = vadd.f32 %v3463_v16, %v3155_v10 }
 0x1aa   :  { %v1144_v31 = vadd.f32 %v1143_v28, %v759_v12  ;;  %v2172_v32 = vpop.eup %2171  ;;  %2187 = vrcp.f32 %v1440_v23  ;;  %v1781_v36 = vmul.f32 -1.442695, %v1149_v46  ;;  %v718_v13 = vpop.f32.mrf.mxu0 }
 0x1ab   :  { %v1950_v39 = vpop.f32.mrf.mxu1  ;;  %v2174_v40 = vpop.eup %2173  ;;  %1630 = vst.msk [vmem:[%s3604_s3 + $0x108] sm:$0xff] %vm1596_vm1, %v2172_v32  ;;  %2189 = vpow2.f32 %v1778_v7  ;;  %v1771_v59 = vmul.f32 -1.442695, %v1099_v50  ;;  %v719_v48 = vadd.f32 %v3184_v35, %v718_v13 }
 0x1ac   :  { %v1780_v1 = vmul.f32 -1.442695, %v1144_v31  ;;  %v1441_v49 = vadd.f32 1.0, %v2174_v40  ;;  %2191 = vpow2.f32 %v1781_v36  ;;  %v1159_v54 = vadd.f32 %v1950_v39, %v774_v17  ;;  %v720_v5 = vpop.f32.mrf.mxu0 }
 0x1ad   :  { %v1153_v58 = vpop.f32.mrf.mxu1  ;;  %2193 = vpow2.f32 %v1771_v59  ;;  %v1104_v21 = vadd.f32 %v3382_v19, %v719_v48 }
 0x1ae   :  { %v1154_v55 = vadd.f32 %v1153_v58, %v769_v53  ;;  %v2176_v56 = vpop.eup %2175  ;;  %2195 = vrcp.f32 %v1441_v49  ;;  %v1783_v0 = vmul.f32 -1.442695, %v1159_v54  ;;  %v723_v41 = vpop.f32.mrf.mxu0  ;;  %v789_v53 = vadd.f32 %v3463_v16, %v3151_v6 }
 0x1af   :  { %v1953_v9 = vpop.f32.mrf.mxu1  ;;  %v2178_v33 = vpop.eup %2177  ;;  %1631 = vst.msk [vmem:[%s3604_s3 + $0x110] sm:$0xff] %vm1596_vm1, %v2176_v56  ;;  %2197 = vpow2.f32 %v1780_v1  ;;  %v1772_v19 = vmul.f32 -1.442695, %v1104_v21  ;;  %v724_v47 = vadd.f32 %v3184_v35, %v723_v41  ;;  %v804_v56 = vadd.f32 %v3463_v16, %v3163_v18 }
 0x1b0   :  { %v1782_v3 = vmul.f32 -1.442695, %v1154_v55  ;;  %v1442_v52 = vadd.f32 1.0, %v2178_v33  ;;  %2199 = vpow2.f32 %v1783_v0  ;;  %v1169_v62 = vadd.f32 %v1953_v9, %v784_v63  ;;  %v725_v42 = vpop.f32.mrf.mxu0 }
 0x1b1   :  { %v1163_v2 = vpop.f32.mrf.mxu1  ;;  %2201 = vpow2.f32 %v1772_v19  ;;  %v1109_v44 = vadd.f32 %v3375_v8, %v724_v47 }
 0x1b2   :  { %v1164_v29 = vadd.f32 %v1163_v2, %v779_v4  ;;  %v2180_v38 = vpop.eup %2179  ;;  %2203 = vrcp.f32 %v1442_v52  ;;  %v1785_v37 = vmul.f32 -1.442695, %v1169_v62  ;;  %v728_v11 = vpop.f32.mrf.mxu0  ;;  %v799_v62 = vadd.f32 %v3463_v16, %v3159_v14 }
 0x1b3   :  { %v1956_v12 = vpop.f32.mrf.mxu1  ;;  %v2182_v15 = vpop.eup %2181  ;;  %1632 = vst.msk [vmem:[%s3604_s3 + $0x118] sm:$0xff] %vm1596_vm1, %v2180_v38  ;;  %2205 = vpow2.f32 %v1782_v3  ;;  %v1773_v35 = vmul.f32 -1.442695, %v1109_v44  ;;  %v729_v8 = vadd.f32 %v3463_v16, %v728_v11 }
 0x1b4   :  { %v1443_v60 = vadd.f32 1.0, %v2182_v15  ;;  %2207 = vpow2.f32 %v1785_v37  ;;  %v1784_v7 = vmul.f32 -1.442695, %v1164_v29  ;;  %v730_v20 = vpop.f32.mrf.mxu0  ;;  %v1179_v28 = vadd.f32 %v1956_v12, %v794_v45 }
 0x1b5   :  { %v2184_v51 = vpop.eup %2183  ;;  %v1173_v43 = vpop.f32.mrf.mxu1  ;;  %2209 = vpow2.f32 %v1773_v35  ;;  %v1114_v46 = vadd.f32 %v3396_v27, %v729_v8  ;;  %v809_v29 = vadd.f32 %v3463_v16, %v3167_v22  ;;  %v814_v37 = vadd.f32 %v3463_v16, %v3171_v26 }
 0x1b6   :  { %v1453_v23 = vadd.f32 1.0, %v2184_v51  ;;  %v2186_v57 = vpop.eup %2185  ;;  %2211 = vrcp.f32 %v1443_v60  ;;  %v733_v50 = vpop.f32.mrf.mxu0  ;;  %v1174_v59 = vadd.f32 %v1173_v43, %v789_v53  ;;  %v1787_v6 = vmul.f32 -1.442695, %v1179_v28 }
 0x1b7   :  { %v1959_v31 = vpop.f32.mrf.mxu1  ;;  %v2188_v32 = vpop.eup %2187  ;;  %v1444_v17 = vadd.f32 1.0, %v2186_v57  ;;  %v1774_v10 = vmul.f32 -1.442695, %v1114_v46  ;;  %v734_v49 = vadd.f32 %v3463_v16, %v733_v50  ;;  %v824_v57 = vadd.f32 %v3463_v16, %v3179_v34 }
 0x1b8   :  { %2213 = vrcp.f32 %v1453_v23  ;;  %v2190_v36 = vpop.eup %2189  ;;  %1633 = vst.msk [vmem:[%s3604_s3 + $0x120] sm:$0xff] %vm1596_vm1, %v2188_v32  ;;  %v735_v27 = vpop.f32.mrf.mxu0  ;;  %v1786_v41 = vmul.f32 -1.442695, %v1174_v59  ;;  %v1189_v3 = vadd.f32 %v1959_v31, %v804_v56  ;;  %v819_v32 = vadd.f32 %v3463_v16, %v3175_v30 }
 0x1b9   :  { %2215 = vpow2.f32 %v1784_v7  ;;  %v1183_v13 = vpop.f32.mrf.mxu1  ;;  %v2192_v39 = vpop.eup %2191  ;;  %v1452_v40 = vadd.f32 1.0, %v2190_v36  ;;  %v1119_v19 = vadd.f32 %v3389_v24, %v734_v49 }
 0x1ba   :  { %2217 = vrcp.f32 %v1444_v17  ;;  %v2194_v1 = vpop.eup %2193  ;;  %v1455_v48 = vadd.f32 1.0, %v2192_v39  ;;  %v738_v54 = vpop.f32.mrf.mxu0  ;;  %v1184_v11 = vadd.f32 %v1183_v13, %v799_v62  ;;  %v1789_v8 = vmul.f32 -1.442695, %v1189_v3 }
 0x1bb   :  { %2219 = vpow2.f32 %v1774_v10  ;;  %v1962_v5 = vpop.f32.mrf.mxu1  ;;  %v2196_v58 = vpop.eup %2195  ;;  %v1445_v21 = vadd.f32 1.0, %v2194_v1  ;;  %v739_v2 = vadd.f32 %v3463_v16, %v738_v54  ;;  %v1775_v35 = vmul.f32 -1.442695, %v1119_v19 }
 0x1bc   :  { %2221 = vrcp.f32 %v1452_v40  ;;  %v2198_v55 = vpop.eup %2197  ;;  %1634 = vst.msk [vmem:[%s3604_s3 + $0x128] sm:$0xff] %vm1596_vm1, %v2196_v58  ;;  %v740_v4 = vpop.f32.mrf.mxu0  ;;  %v1199_v26 = vadd.f32 %v1962_v5, %v814_v37  ;;  %v1788_v23 = vmul.f32 -1.442695, %v1184_v11 }
 0x1bd   :  { %2223 = vrcp.f32 %v1455_v48  ;;  %v2200_v63 = vpop.eup %2199  ;;  %v1454_v0 = vadd.f32 1.0, %v2198_v55  ;;  %v1193_v47 = vpop.f32.mrf.mxu1  ;;  %v1124_v60 = vadd.f32 %v3409_v61, %v739_v2 }
 0x1be   :  { %2225 = vrcp.f32 %v1445_v21  ;;  %v2202_v9 = vpop.eup %2201  ;;  %v1457_v33 = vadd.f32 1.0, %v2200_v63  ;;  %v743_v52 = vpop.f32.mrf.mxu0  ;;  %v1194_v46 = vadd.f32 %v1193_v47, %v809_v29  ;;  %v1791_v34 = vmul.f32 -1.442695, %v1199_v26 }
 0x1bf   :  { %2227 = vpow2.f32 %v1787_v6  ;;  %v2204_v18 = vpop.eup %2203  ;;  %v1446_v42 = vadd.f32 1.0, %v2202_v9  ;;  %v1965_v22 = vpop.f32.mrf.mxu1  ;;  %v744_v7 = vadd.f32 %v3463_v16, %v743_v52  ;;  %v1776_v53 = vmul.f32 -1.442695, %v1124_v60 }
 0x1c0   :  { %2229 = vrcp.f32 %v1454_v0  ;;  %v2206_v44 = vpop.eup %2205  ;;  %1635 = vst.msk [vmem:[%s3604_s3 + $0x130] sm:$0xff] %vm1596_vm1, %v2204_v18  ;;  %v745_v24 = vpop.f32.mrf.mxu0  ;;  %v1209_v27 = vadd.f32 %v1965_v22, %v824_v57  ;;  %v1790_v30 = vmul.f32 -1.442695, %v1194_v46 }
 0x1c1   :  { %2231 = vrcp.f32 %v1457_v33  ;;  %v2208_v38 = vpop.eup %2207  ;;  %v1456_v14 = vadd.f32 1.0, %v2206_v44  ;;  %v1203_v50 = vpop.f32.mrf.mxu1  ;;  %v1129_v17 = vadd.f32 %v3402_v25, %v744_v7 }
 0x1c2   :  { %2233 = vrcp.f32 %v1446_v42  ;;  %v2210_v12 = vpop.eup %2209  ;;  %v1459_v15 = vadd.f32 1.0, %v2208_v38  ;;  %v1204_v16 = vadd.f32 %v1203_v50, %v819_v32  ;;  %v1793_v48 = vmul.f32 -1.442695, %v1209_v27 }
 0x1c3   :  { %2235 = vpow2.f32 %v1786_v41  ;;  %v2212_v51 = vpop.eup %2211  ;;  %v1447_v45 = vadd.f32 1.0, %v2210_v12  ;;  %v1777_v40 = vmul.f32 -1.442695, %v1129_v17 }
 0x1c4   :  { %2237 = vrcp.f32 %v1456_v14  ;;  %1636 = vst.msk [vmem:[%s3604_s3 + $0x138] sm:$0xff] %vm1596_vm1, %v2212_v51  ;;  %v1792_v49 = vmul.f32 -1.442695, %v1204_v16 }
 0x1c5   :  { %v2214_v20 = vpop.eup %2213  ;;  %2239 = vrcp.f32 %v1459_v15 }
 0x1c6   :  { %v2216_v43 = vpop.eup %2215  ;;  %1646 = vst.msk [vmem:[%s3604_s3 + $0x188] sm:$0xff] %vm1596_vm1, %v2214_v20  ;;  %2241 = vrcp.f32 %v1447_v45 }
 0x1c7   :  { %v2218_v61 = vpop.eup %2217  ;;  %v1458_v28 = vadd.f32 1.0, %v2216_v43  ;;  %2243 = vpow2.f32 %v1775_v35 }
 0x1c8   :  { %v2220_v31 = vpop.eup %2219  ;;  %1637 = vst.msk [vmem:[%s3604_s3 + $0x140] sm:$0xff] %vm1596_vm1, %v2218_v61  ;;  %2245 = vpow2.f32 %v1789_v8 }
 0x1c9   :  { %v2222_v10 = vpop.eup %2221  ;;  %2247 = vrcp.f32 %v1458_v28  ;;  %v1448_v36 = vadd.f32 1.0, %v2220_v31 }
 0x1ca   :  { %v2224_v13 = vpop.eup %2223  ;;  %1645 = vst.msk [vmem:[%s3604_s3 + $0x180] sm:$0xff] %vm1596_vm1, %v2222_v10  ;;  %2249 = vpow2.f32 %v1788_v23 }
 0x1cb   :  { %v2226_v39 = vpop.eup %2225  ;;  %1648 = vst.msk [vmem:[%s3604_s3 + $0x198] sm:$0xff] %vm1596_vm1, %v2224_v13  ;;  %2251 = vrcp.f32 %v1448_v36 }
 0x1cc   :  { %v2228_v25 = vpop.eup %2227  ;;  %1638 = vst.msk [vmem:[%s3604_s3 + $0x148] sm:$0xff] %vm1596_vm1, %v2226_v39  ;;  %2253 = vpow2.f32 %v1776_v53 }
 0x1cd   :  { %v2230_v59 = vpop.eup %2229  ;;  %v1461_v1 = vadd.f32 1.0, %v2228_v25  ;;  %2255 = vpow2.f32 %v1791_v34 }
 0x1ce   :  { %v2232_v6 = vpop.eup %2231  ;;  %1647 = vst.msk [vmem:[%s3604_s3 + $0x190] sm:$0xff] %vm1596_vm1, %v2230_v59  ;;  %2257 = vpow2.f32 %v1790_v30 }
 0x1cf   :  { %v2234_v54 = vpop.eup %2233  ;;  %1650 = vst.msk [vmem:[%s3604_s3 + $0x1a8] sm:$0xff] %vm1596_vm1, %v2232_v6  ;;  %2259 = vrcp.f32 %v1461_v1 }
 0x1d0   :  { %v2236_v5 = vpop.eup %2235  ;;  %1639 = vst.msk [vmem:[%s3604_s3 + $0x150] sm:$0xff] %vm1596_vm1, %v2234_v54  ;;  %2261 = vpow2.f32 %v1777_v40 }
 0x1d1   :  { %v2238_v58 = vpop.eup %2237  ;;  %v1460_v21 = vadd.f32 1.0, %v2236_v5  ;;  %2263 = vpow2.f32 %v1793_v48 }
 0x1d2   :  { %v2240_v55 = vpop.eup %2239  ;;  %1649 = vst.msk [vmem:[%s3604_s3 + $0x1a0] sm:$0xff] %vm1596_vm1, %v2238_v58  ;;  %2265 = vpow2.f32 %v1792_v49 }
 0x1d3   :  { %v2242_v56 = vpop.eup %2241  ;;  %1652 = vst.msk [vmem:[%s3604_s3 + $0x1b8] sm:$0xff] %vm1596_vm1, %v2240_v55  ;;  %2267 = vrcp.f32 %v1460_v21 }
 0x1d4   :  { %v2244_v4 = vpop.eup %2243  ;;  %1640 = vst.msk [vmem:[%s3604_s3 + $0x158] sm:$0xff] %vm1596_vm1, %v2242_v56 }
 0x1d5   :  { %v2246_v63 = vpop.eup %2245  ;;  %v1449_v0 = vadd.f32 1.0, %v2244_v4 }
 0x1d6   :  { %v2248_v41 = vpop.eup %2247  ;;  %v1463_v9 = vadd.f32 1.0, %v2246_v63 }
 0x1d7   :  { %v2250_v33 = vpop.eup %2249  ;;  %1651 = vst.msk [vmem:[%s3604_s3 + $0x1b0] sm:$0xff] %vm1596_vm1, %v2248_v41  ;;  %2269 = vrcp.f32 %v1449_v0 }
 0x1d8   :  { %v2252_v19 = vpop.eup %2251  ;;  %2271 = vrcp.f32 %v1463_v9  ;;  %v1462_v3 = vadd.f32 1.0, %v2250_v33 }
 0x1d9   :  { %v2254_v47 = vpop.eup %2253  ;;  %1641 = vst.msk [vmem:[%s3604_s3 + $0x160] sm:$0xff] %vm1596_vm1, %v2252_v19 }
 0x1da   :  { %v2256_v52 = vpop.eup %2255  ;;  %2273 = vrcp.f32 %v1462_v3  ;;  %v1450_v18 = vadd.f32 1.0, %v2254_v47 }
 0x1db   :  { %v2258_v62 = vpop.eup %2257  ;;  %v1465_v42 = vadd.f32 1.0, %v2256_v52 }
 0x1dc   :  { %v2260_v2 = vpop.eup %2259  ;;  %2275 = vrcp.f32 %v1450_v18  ;;  %v1464_v44 = vadd.f32 1.0, %v2258_v62 }
 0x1dd   :  { %v2262_v29 = vpop.eup %2261  ;;  %1654 = vst.msk [vmem:[%s3604_s3 + $0x1c8] sm:$0xff] %vm1596_vm1, %v2260_v2  ;;  %2277 = vrcp.f32 %v1465_v42 }
 0x1de   :  { %v2264_v24 = vpop.eup %2263  ;;  %2279 = vrcp.f32 %v1464_v44  ;;  %v1451_v38 = vadd.f32 1.0, %v2262_v29 }
 0x1df   :  { %v2266_v37 = vpop.eup %2265  ;;  %v1467_v14 = vadd.f32 1.0, %v2264_v24 }
 0x1e0   :  { %v2268_v11 = vpop.eup %2267  ;;  %2281 = vrcp.f32 %v1451_v38  ;;  %v1466_v12 = vadd.f32 1.0, %v2266_v37 }
 0x1e1   :  { %1653 = vst.msk [vmem:[%s3604_s3 + $0x1c0] sm:$0xff] %vm1596_vm1, %v2268_v11  ;;  %2283 = vrcp.f32 %v1467_v14 }
 0x1e2   :  { %2285 = vrcp.f32 %v1466_v12 }
 0x1e4   :  { %v2270_v15 = vpop.eup %2269 }
 0x1e5   :  { %v2272_v35 = vpop.eup %2271  ;;  %1642 = vst.msk [vmem:[%s3604_s3 + $0x168] sm:$0xff] %vm1596_vm1, %v2270_v15 }
 0x1e6   :  { %1656 = vst.msk [vmem:[%s3604_s3 + $0x1d8] sm:$0xff] %vm1596_vm1, %v2272_v35 }
 0x1e7   :  { %v2274_v8 = vpop.eup %2273 }
 0x1e8   :  { %1655 = vst.msk [vmem:[%s3604_s3 + $0x1d0] sm:$0xff] %vm1596_vm1, %v2274_v8 }
 0x1e9   :  { %v2276_v22 = vpop.eup %2275 }
 0x1ea   :  { %v2278_v51 = vpop.eup %2277  ;;  %1643 = vst.msk [vmem:[%s3604_s3 + $0x170] sm:$0xff] %vm1596_vm1, %v2276_v22 }
 0x1eb   :  { %v2280_v45 = vpop.eup %2279  ;;  %1658 = vst.msk [vmem:[%s3604_s3 + $0x1e8] sm:$0xff] %vm1596_vm1, %v2278_v51 }
 0x1ec   :  { %1657 = vst.msk [vmem:[%s3604_s3 + $0x1e0] sm:$0xff] %vm1596_vm1, %v2280_v45 }
 0x1ed   :  { %v2282_v60 = vpop.eup %2281 }
 0x1ee   :  { %v2284_v7 = vpop.eup %2283  ;;  %1644 = vst.msk [vmem:[%s3604_s3 + $0x178] sm:$0xff] %vm1596_vm1, %v2282_v60 }
 0x1ef   :  { %v2286_v20 = vpop.eup %2285  ;;  %1660 = vst.msk [vmem:[%s3604_s3 + $0x1f8] sm:$0xff] %vm1596_vm1, %v2284_v7 }
 0x1f0   :  { %1659 = vst.msk [vmem:[%s3604_s3 + $0x1f0] sm:$0xff] %vm1596_vm1, %v2286_v20 }

</bundles_post_ra>
